<compile_context>
chip_gen: v7x
topology: tpu7x:2x2x1
jax: 0.10.0
libtpu: 0.0.40
codegen_flags: <defaults>
</compile_context>

<pallas_src>
import math

import jax
import jax.numpy as jnp
from jax.experimental import pallas as pl
from jax.experimental.pallas import tpu as pltpu

LANE = 128                      # channel (N) dims padded to lane width at prepare time
MAX_TM = 1024                   # row-tile cap; double-buffered tiles stay << VMEM limits
VMEM_LIMIT = 32 * 1024 * 1024   # explicit scoped-VMEM budget (safe on v5e/v6e/v7x)


def _ceil_to(x, m):
    return ((x + m - 1) // m) * m


def _choose_tile_m(m):
    """Row tile TM (multiple of 8) and padded row extent Mp (multiple of TM)."""
    mp8 = _ceil_to(max(m, 1), 8)
    if mp8 <= MAX_TM:
        return mp8, mp8
    return MAX_TM, _ceil_to(m, MAX_TM)


def _compiler_params():
    return pltpu.CompilerParams(
        dimension_semantics=("parallel",),
        vmem_limit_bytes=VMEM_LIMIT,
    )


# ----------------------------- Pallas kernels -----------------------------

def _conv_relu_pool_kernel(p_ref, w_ref, b_ref, o_ref):
    """Fused conv(+bias) + ReLU + 2x2 maxpool for one tile of pooled positions.

    p_ref : (4, TM, K) im2col patches, one slab per pooling-window corner.
    w_ref : (K, LANE) flattened conv weight (lane-padded), b_ref: (1, LANE).
    """
    w = w_ref[...]
    m = jnp.dot(p_ref[0], w, preferred_element_type=jnp.float32)
    for c in range(1, 4):
        m = jnp.maximum(m, jnp.dot(p_ref[c], w, preferred_element_type=jnp.float32))
    o_ref[...] = jnp.maximum(m + b_ref[...], 0.0)


def _fc_fused_kernel(x_ref, w1_ref, b1_ref, w2_ref, b2_ref, w3_ref, b3_ref, o_ref):
    """fc1 + ReLU -> fc2 + ReLU -> fc3, chained in VMEM; only logits stored."""
    h = jnp.dot(x_ref[...], w1_ref[...], preferred_element_type=jnp.float32) + b1_ref[...]
    h = jnp.maximum(h, 0.0)
    h = jnp.dot(h, w2_ref[...], preferred_element_type=jnp.float32) + b2_ref[...]
    h = jnp.maximum(h, 0.0)
    o_ref[...] = jnp.dot(h, w3_ref[...], preferred_element_type=jnp.float32) + b3_ref[...]


# ----------------------------- wrappers (glue) -----------------------------

def _im2col_pool_corners(x_nhwc, k, hp, wp):
    """All four 2x2-pool-corner im2col patch matrices in one pass.

    Returns (4, B*hp*wp, k*k*C).  Corner index = 2*dh + dw; row index is the
    flattened (b, i, j) pooled position; column order is (kh, kw, c), matching
    the prepared conv-weight row order.  One strided slice per conv tap —
    no padded activation copies.
    """
    b = x_nhwc.shape[0]
    c = x_nhwc.shape[3]
    taps = []
    for kh in range(k):
        for kw in range(k):
            sl = x_nhwc[:, kh: kh + 2 * hp, kw: kw + 2 * wp, :]   # (B, 2hp, 2wp, C)
            taps.append(sl.reshape(b, hp, 2, wp, 2, c))
    t = jnp.stack(taps, axis=5)                                   # (B,hp,2,wp,2,kk,C)
    t = jnp.transpose(t, (2, 4, 0, 1, 3, 5, 6))                   # (2,2,B,hp,wp,kk,C)
    return t.reshape(4, b * hp * wp, k * k * c)


def conv_relu_pool(x_nhwc, w_mat, b_mat, k, cout):
    """Fused conv(k x k, valid, stride 1) + bias + ReLU + MaxPool2d(2,2).

    x_nhwc: (B, H, W, Cin).  w_mat: (k*k*Cin, LANE) pre-padded.  b_mat: (1, LANE).
    Returns (B, Ho//2, Wo//2, cout) channels-last.
    """
    B, H, W, _ = x_nhwc.shape
    Ho, Wo = H - k + 1, W - k + 1
    Hp, Wp = Ho // 2, Wo // 2
    patches = _im2col_pool_corners(x_nhwc, k, Hp, Wp)             # (4, M, K)
    M, K = patches.shape[1], patches.shape[2]
    TM, Mp = _choose_tile_m(M)
    if Mp != M:   # tiny tail pad only (rows sliced off below)
        patches = jnp.pad(patches, ((0, 0), (0, Mp - M), (0, 0)))

    out = pl.pallas_call(
        _conv_relu_pool_kernel,
        out_shape=jax.ShapeDtypeStruct((Mp, LANE), jnp.float32),
        grid_spec=pltpu.PrefetchScalarGridSpec(
            num_scalar_prefetch=0,
            grid=(Mp // TM,),
            in_specs=[pl.BlockSpec((4, TM, K), lambda i: (0, i, 0)),
                      pl.BlockSpec((K, LANE), lambda i: (0, 0)),
                      pl.BlockSpec((1, LANE), lambda i: (0, 0))],
            out_specs=pl.BlockSpec((TM, LANE), lambda i: (i, 0)),
        ),
        compiler_params=_compiler_params(),
    )(patches, w_mat, b_mat)
    return out[:M, :cout].reshape(B, Hp, Wp, cout)


def fc_fused(x, prep):
    """relu(x@W1+b1) -> relu(.@W2+b2) -> .@W3+b3 in one kernel.  x: (B, 400)."""
    B, K = x.shape
    TM, Mp = _choose_tile_m(B)
    xp = jnp.pad(x, ((0, Mp - B), (0, 0))) if Mp != B else x

    out = pl.pallas_call(
        _fc_fused_kernel,
        out_shape=jax.ShapeDtypeStruct((Mp, LANE), jnp.float32),
        grid_spec=pltpu.PrefetchScalarGridSpec(
            num_scalar_prefetch=0,
            grid=(Mp // TM,),
            in_specs=[pl.BlockSpec((TM, K), lambda i: (i, 0)),
                      pl.BlockSpec((K, LANE), lambda i: (0, 0)),
                      pl.BlockSpec((1, LANE), lambda i: (0, 0)),
                      pl.BlockSpec((LANE, LANE), lambda i: (0, 0)),
                      pl.BlockSpec((1, LANE), lambda i: (0, 0)),
                      pl.BlockSpec((LANE, LANE), lambda i: (0, 0)),
                      pl.BlockSpec((1, LANE), lambda i: (0, 0))],
            out_specs=pl.BlockSpec((TM, LANE), lambda i: (i, 0)),
        ),
        compiler_params=_compiler_params(),
    )(xp, prep["fc1_w"], prep["fc1_b"], prep["fc2_w"], prep["fc2_b"],
      prep["fc3_w"], prep["fc3_b"])
    return out[:B, :10]


# ----------------------------- params -----------------------------

def init_params(key):
    """Deterministic PyTorch-style uniform(+-1/sqrt(fan_in)) init (raw layout)."""
    ks = jax.random.split(key, 10)

    def u(k, shape, fan_in):
        bound = 1.0 / math.sqrt(fan_in)
        return jax.random.uniform(k, shape, jnp.float32, -bound, bound)

    return {
        "conv1_w": u(ks[0], (6, 3, 5, 5), 3 * 5 * 5),
        "conv1_b": u(ks[1], (6,), 3 * 5 * 5),
        "conv2_w": u(ks[2], (16, 6, 5, 5), 6 * 5 * 5),
        "conv2_b": u(ks[3], (16,), 6 * 5 * 5),
        "fc1_w": u(ks[4], (120, 400), 400),   # PyTorch layout (out, in)
        "fc1_b": u(ks[5], (120,), 400),
        "fc2_w": u(ks[6], (84, 120), 120),
        "fc2_b": u(ks[7], (84,), 120),
        "fc3_w": u(ks[8], (10, 84), 84),
        "fc3_b": u(ks[9], (10,), 84),
    }


def prepare_params(params):
    """One-time (outside jit) transpose / permutation / lane padding of weights."""

    def pad2(a, rows, cols):
        out = jnp.zeros((rows, cols), jnp.float32)
        return out.at[:a.shape[0], :a.shape[1]].set(a)

    def conv_w(w):
        # (Cout, Cin, k, k) -> (k*k*Cin, LANE) with row order (kh, kw, cin),
        # matching the NHWC im2col column order.
        cout, cin, k, _ = w.shape
        wm = jnp.transpose(w, (2, 3, 1, 0)).reshape(k * k * cin, cout)
        return pad2(wm, k * k * cin, LANE)

    def bias(b):
        return pad2(b.reshape(1, -1), 1, LANE)

    # fc1 consumes the pool2 activation flattened in our (h, w, c) order,
    # whereas PyTorch flattens (c, h, w): permute the weight columns once.
    fc1 = params["fc1_w"].reshape(120, 16, 5, 5)               # (out, c, h, w)
    fc1 = jnp.transpose(fc1, (0, 2, 3, 1)).reshape(120, 400)   # (out, h*w*c)
    return {
        "conv1_w": conv_w(params["conv1_w"]), "conv1_b": bias(params["conv1_b"]),
        "conv2_w": conv_w(params["conv2_w"]), "conv2_b": bias(params["conv2_b"]),
        "fc1_w": pad2(fc1.T, 400, LANE),              "fc1_b": bias(params["fc1_b"]),
        "fc2_w": pad2(params["fc2_w"].T, LANE, LANE), "fc2_b": bias(params["fc2_b"]),
        "fc3_w": pad2(params["fc3_w"].T, LANE, LANE), "fc3_b": bias(params["fc3_b"]),
    }


# ----------------------------- model -----------------------------

def forward(prepared, x_nchw):
    # x: (B, 3, 32, 32) NCHW float32 (PyTorch convention); convert once to NHWC.
    x = jnp.transpose(x_nchw, (0, 2, 3, 1))
    B = x.shape[0]
    # conv1(5x5) + ReLU + pool -> (B, 14, 14, 6)
    a1 = conv_relu_pool(x, prepared["conv1_w"], prepared["conv1_b"], k=5, cout=6)
    # conv2(5x5) + ReLU + pool -> (B, 5, 5, 16)
    a2 = conv_relu_pool(a1, prepared["conv2_w"], prepared["conv2_b"], k=5, cout=16)
    # flatten in (h, w, c) order — fc1 weights were permuted to match.
    flat = a2.reshape(B, 5 * 5 * 16)
    # fc1+ReLU -> fc2+ReLU -> fc3 in one fused kernel.
    return fc_fused(flat, prepared)


# ----------------------------- pure-JAX reference -----------------------------

def reference_forward(params, x_nchw):
    hi = jax.lax.Precision.HIGHEST

    def conv(x, w, b):
        y = jax.lax.conv_general_dilated(
            x, w, (1, 1), "VALID",
            dimension_numbers=("NCHW", "OIHW", "NCHW"), precision=hi)
        return y + b[None, :, None, None]

    def pool(x):
        return jax.lax.reduce_window(x, -jnp.inf, jax.lax.max,
                                     (1, 1, 2, 2), (1, 1, 2, 2), "VALID")

    x = pool(jnp.maximum(conv(x_nchw, params["conv1_w"], params["conv1_b"]), 0.0))
    x = pool(jnp.maximum(conv(x, params["conv2_w"], params["conv2_b"]), 0.0))
    x = x.reshape(x.shape[0], -1)                                # (c, h, w) order
    x = jnp.maximum(jnp.dot(x, params["fc1_w"].T, precision=hi) + params["fc1_b"], 0.0)
    x = jnp.maximum(jnp.dot(x, params["fc2_w"].T, precision=hi) + params["fc2_b"], 0.0)
    return jnp.dot(x, params["fc3_w"].T, precision=hi) + params["fc3_b"]


if __name__ == "__main__":
    key = jax.random.PRNGKey(0)
    pkey, xkey = jax.random.split(key)
    params = init_params(pkey)
    prepared = prepare_params(params)          # one-time weight prep, outside jit
    # fc1 expects 16*5*5 features -> spatial size must be 32x32 (CIFAR10).
    x = jax.random.normal(xkey, (2, 3, 32, 32), jnp.float32)

    out = jax.jit(forward)(prepared, x)
    jax.block_until_ready(out)

    ref = reference_forward(params, x)
    err = float(jnp.max(jnp.abs(out - ref)))
    assert out.shape == (2, 10) and out.dtype == jnp.float32
    assert err < 2e-2, f"max abs err vs reference: {err}"
    print("KERNEL_OK")
</pallas_src>

<mosaic_0001>
module attributes {stable_mosaic.version = 11 : i64} {
  func.func @_conv_relu_pool_kernel(%arg0: i32, %arg1: memref<4x392x75xf32, #tpu.memory_space<vmem>>, %arg2: memref<75x128xf32, #tpu.memory_space<vmem>>, %arg3: memref<1x128xf32, #tpu.memory_space<vmem>>, %arg4: memref<392x128xf32, #tpu.memory_space<vmem>>) attributes {dimension_semantics = [#tpu.dimension_semantics<parallel>], iteration_bounds = array<i64: 1>, scalar_prefetch = 0 : i64, scratch_operands = 0 : i64, tpu.core_type = #tpu.core_type<tc>, window_params = [{transform_indices = @transform_0, window_bounds = array<i64: 4, 392, 75>}, {pipeline_mode = #tpu.pipeline_mode<synchronous>, transform_indices = @transform_1, window_bounds = array<i64: 75, 128>}, {pipeline_mode = #tpu.pipeline_mode<synchronous>, transform_indices = @transform_2, window_bounds = array<i64: 1, 128>}, {transform_indices = @transform_3, window_bounds = array<i64: 392, 128>}]} {
    %c0 = arith.constant 0 : index
    %c0_0 = arith.constant 0 : index
    %0 = vector.load %arg2[%c0, %c0_0] : memref<75x128xf32, #tpu.memory_space<vmem>>, vector<75x128xf32>
    %c0_1 = arith.constant 0 : index
    %c0_2 = arith.constant 0 : index
    %c0_3 = arith.constant 0 : index
    %1 = vector.load %arg1[%c0_1, %c0_2, %c0_3] : memref<4x392x75xf32, #tpu.memory_space<vmem>>, vector<1x392x75xf32>
    %2 = vector.shape_cast %1 : vector<1x392x75xf32> to vector<392x75xf32>
    %cst = arith.constant dense<0.000000e+00> : vector<392x128xf32>
    %3 = tpu.matmul %2, %0, %cst {dimension_numbers = #tpu.dot_dimension_numbers<[1], [0], [0], [1], [0, 0, 1, 1], [], []>} : vector<392x75xf32>, vector<75x128xf32>, vector<392x128xf32> -> vector<392x128xf32>
    %c1 = arith.constant 1 : index
    %c0_4 = arith.constant 0 : index
    %c0_5 = arith.constant 0 : index
    %4 = vector.load %arg1[%c1, %c0_4, %c0_5] : memref<4x392x75xf32, #tpu.memory_space<vmem>>, vector<1x392x75xf32>
    %5 = vector.shape_cast %4 : vector<1x392x75xf32> to vector<392x75xf32>
    %cst_6 = arith.constant dense<0.000000e+00> : vector<392x128xf32>
    %6 = tpu.matmul %5, %0, %cst_6 {dimension_numbers = #tpu.dot_dimension_numbers<[1], [0], [0], [1], [0, 0, 1, 1], [], []>} : vector<392x75xf32>, vector<75x128xf32>, vector<392x128xf32> -> vector<392x128xf32>
    %7 = arith.maximumf %3, %6 : vector<392x128xf32>
    %c2 = arith.constant 2 : index
    %c0_7 = arith.constant 0 : index
    %c0_8 = arith.constant 0 : index
    %8 = vector.load %arg1[%c2, %c0_7, %c0_8] : memref<4x392x75xf32, #tpu.memory_space<vmem>>, vector<1x392x75xf32>
    %9 = vector.shape_cast %8 : vector<1x392x75xf32> to vector<392x75xf32>
    %cst_9 = arith.constant dense<0.000000e+00> : vector<392x128xf32>
    %10 = tpu.matmul %9, %0, %cst_9 {dimension_numbers = #tpu.dot_dimension_numbers<[1], [0], [0], [1], [0, 0, 1, 1], [], []>} : vector<392x75xf32>, vector<75x128xf32>, vector<392x128xf32> -> vector<392x128xf32>
    %11 = arith.maximumf %7, %10 : vector<392x128xf32>
    %c3 = arith.constant 3 : index
    %c0_10 = arith.constant 0 : index
    %c0_11 = arith.constant 0 : index
    %12 = vector.load %arg1[%c3, %c0_10, %c0_11] : memref<4x392x75xf32, #tpu.memory_space<vmem>>, vector<1x392x75xf32>
    %13 = vector.shape_cast %12 : vector<1x392x75xf32> to vector<392x75xf32>
    %cst_12 = arith.constant dense<0.000000e+00> : vector<392x128xf32>
    %14 = tpu.matmul %13, %0, %cst_12 {dimension_numbers = #tpu.dot_dimension_numbers<[1], [0], [0], [1], [0, 0, 1, 1], [], []>} : vector<392x75xf32>, vector<75x128xf32>, vector<392x128xf32> -> vector<392x128xf32>
    %15 = arith.maximumf %11, %14 : vector<392x128xf32>
    %c0_13 = arith.constant 0 : index
    %c0_14 = arith.constant 0 : index
    %16 = vector.load %arg3[%c0_13, %c0_14] : memref<1x128xf32, #tpu.memory_space<vmem>>, vector<1x128xf32>
    %17 = vector.broadcast %16 : vector<1x128xf32> to vector<392x128xf32>
    %18 = arith.addf %15, %17 : vector<392x128xf32>
    %cst_15 = arith.constant 0.000000e+00 : f32
    %19 = vector.broadcast %cst_15 : f32 to vector<392x128xf32>
    %20 = arith.maximumf %18, %19 : vector<392x128xf32>
    %c0_16 = arith.constant 0 : index
    %c0_17 = arith.constant 0 : index
    %21 = vector.load %arg4[%c0_16, %c0_17] : memref<392x128xf32, #tpu.memory_space<vmem>>, vector<392x128xf32>
    tpu.vector_store %arg4[%c0_16, %c0_17], %20 {strides = array<i32>} : memref<392x128xf32, #tpu.memory_space<vmem>>, vector<392x128xf32>,
    return
  }
  func.func @transform_0(%arg0: i32) -> (i32, i32, i32) {
    %c0_i32 = arith.constant 0 : i32
    %c0_i32_0 = arith.constant 0 : i32
    %c0_i32_1 = arith.constant 0 : i32
    return %c0_i32, %arg0, %c0_i32_0 : i32, i32, i32
  }
  func.func @transform_1(%arg0: i32) -> (i32, i32) {
    %c0_i32 = arith.constant 0 : i32
    %c0_i32_0 = arith.constant 0 : i32
    %c0_i32_1 = arith.constant 0 : i32
    return %c0_i32, %c0_i32_0 : i32, i32
  }
  func.func @transform_2(%arg0: i32) -> (i32, i32) {
    %c0_i32 = arith.constant 0 : i32
    %c0_i32_0 = arith.constant 0 : i32
    %c0_i32_1 = arith.constant 0 : i32
    return %c0_i32, %c0_i32_0 : i32, i32
  }
  func.func @transform_3(%arg0: i32) -> (i32, i32) {
    %c0_i32 = arith.constant 0 : i32
    %c0_i32_0 = arith.constant 0 : i32
    return %arg0, %c0_i32 : i32, i32
  }
}

module attributes {stable_mosaic.version = 11 : i64} {
  func.func @_conv_relu_pool_kernel(%arg0: i32, %arg1: memref<4x56x150xf32, #tpu.memory_space<vmem>>, %arg2: memref<150x128xf32, #tpu.memory_space<vmem>>, %arg3: memref<1x128xf32, #tpu.memory_space<vmem>>, %arg4: memref<56x128xf32, #tpu.memory_space<vmem>>) attributes {dimension_semantics = [#tpu.dimension_semantics<parallel>], iteration_bounds = array<i64: 1>, scalar_prefetch = 0 : i64, scratch_operands = 0 : i64, tpu.core_type = #tpu.core_type<tc>, window_params = [{transform_indices = @transform_0, window_bounds = array<i64: 4, 56, 150>}, {pipeline_mode = #tpu.pipeline_mode<synchronous>, transform_indices = @transform_1, window_bounds = array<i64: 150, 128>}, {pipeline_mode = #tpu.pipeline_mode<synchronous>, transform_indices = @transform_2, window_bounds = array<i64: 1, 128>}, {transform_indices = @transform_3, window_bounds = array<i64: 56, 128>}]} {
    %c0 = arith.constant 0 : index
    %c0_0 = arith.constant 0 : index
    %0 = vector.load %arg2[%c0, %c0_0] : memref<150x128xf32, #tpu.memory_space<vmem>>, vector<150x128xf32>
    %c0_1 = arith.constant 0 : index
    %c0_2 = arith.constant 0 : index
    %c0_3 = arith.constant 0 : index
    %1 = vector.load %arg1[%c0_1, %c0_2, %c0_3] : memref<4x56x150xf32, #tpu.memory_space<vmem>>, vector<1x56x150xf32>
    %2 = vector.shape_cast %1 : vector<1x56x150xf32> to vector<56x150xf32>
    %cst = arith.constant dense<0.000000e+00> : vector<56x128xf32>
    %3 = tpu.matmul %2, %0, %cst {dimension_numbers = #tpu.dot_dimension_numbers<[1], [0], [0], [1], [0, 0, 1, 1], [], []>} : vector<56x150xf32>, vector<150x128xf32>, vector<56x128xf32> -> vector<56x128xf32>
    %c1 = arith.constant 1 : index
    %c0_4 = arith.constant 0 : index
    %c0_5 = arith.constant 0 : index
    %4 = vector.load %arg1[%c1, %c0_4, %c0_5] : memref<4x56x150xf32, #tpu.memory_space<vmem>>, vector<1x56x150xf32>
    %5 = vector.shape_cast %4 : vector<1x56x150xf32> to vector<56x150xf32>
    %cst_6 = arith.constant dense<0.000000e+00> : vector<56x128xf32>
    %6 = tpu.matmul %5, %0, %cst_6 {dimension_numbers = #tpu.dot_dimension_numbers<[1], [0], [0], [1], [0, 0, 1, 1], [], []>} : vector<56x150xf32>, vector<150x128xf32>, vector<56x128xf32> -> vector<56x128xf32>
    %7 = arith.maximumf %3, %6 : vector<56x128xf32>
    %c2 = arith.constant 2 : index
    %c0_7 = arith.constant 0 : index
    %c0_8 = arith.constant 0 : index
    %8 = vector.load %arg1[%c2, %c0_7, %c0_8] : memref<4x56x150xf32, #tpu.memory_space<vmem>>, vector<1x56x150xf32>
    %9 = vector.shape_cast %8 : vector<1x56x150xf32> to vector<56x150xf32>
    %cst_9 = arith.constant dense<0.000000e+00> : vector<56x128xf32>
    %10 = tpu.matmul %9, %0, %cst_9 {dimension_numbers = #tpu.dot_dimension_numbers<[1], [0], [0], [1], [0, 0, 1, 1], [], []>} : vector<56x150xf32>, vector<150x128xf32>, vector<56x128xf32> -> vector<56x128xf32>
    %11 = arith.maximumf %7, %10 : vector<56x128xf32>
    %c3 = arith.constant 3 : index
    %c0_10 = arith.constant 0 : index
    %c0_11 = arith.constant 0 : index
    %12 = vector.load %arg1[%c3, %c0_10, %c0_11] : memref<4x56x150xf32, #tpu.memory_space<vmem>>, vector<1x56x150xf32>
    %13 = vector.shape_cast %12 : vector<1x56x150xf32> to vector<56x150xf32>
    %cst_12 = arith.constant dense<0.000000e+00> : vector<56x128xf32>
    %14 = tpu.matmul %13, %0, %cst_12 {dimension_numbers = #tpu.dot_dimension_numbers<[1], [0], [0], [1], [0, 0, 1, 1], [], []>} : vector<56x150xf32>, vector<150x128xf32>, vector<56x128xf32> -> vector<56x128xf32>
    %15 = arith.maximumf %11, %14 : vector<56x128xf32>
    %c0_13 = arith.constant 0 : index
    %c0_14 = arith.constant 0 : index
    %16 = vector.load %arg3[%c0_13, %c0_14] : memref<1x128xf32, #tpu.memory_space<vmem>>, vector<1x128xf32>
    %17 = vector.broadcast %16 : vector<1x128xf32> to vector<56x128xf32>
    %18 = arith.addf %15, %17 : vector<56x128xf32>
    %cst_15 = arith.constant 0.000000e+00 : f32
    %19 = vector.broadcast %cst_15 : f32 to vector<56x128xf32>
    %20 = arith.maximumf %18, %19 : vector<56x128xf32>
    %c0_16 = arith.constant 0 : index
    %c0_17 = arith.constant 0 : index
    %21 = vector.load %arg4[%c0_16, %c0_17] : memref<56x128xf32, #tpu.memory_space<vmem>>, vector<56x128xf32>
    tpu.vector_store %arg4[%c0_16, %c0_17], %20 {strides = array<i32>} : memref<56x128xf32, #tpu.memory_space<vmem>>, vector<56x128xf32>,
    return
  }
  func.func @transform_0(%arg0: i32) -> (i32, i32, i32) {
    %c0_i32 = arith.constant 0 : i32
    %c0_i32_0 = arith.constant 0 : i32
    %c0_i32_1 = arith.constant 0 : i32
    return %c0_i32, %arg0, %c0_i32_0 : i32, i32, i32
  }
  func.func @transform_1(%arg0: i32) -> (i32, i32) {
    %c0_i32 = arith.constant 0 : i32
    %c0_i32_0 = arith.constant 0 : i32
    %c0_i32_1 = arith.constant 0 : i32
    return %c0_i32, %c0_i32_0 : i32, i32
  }
  func.func @transform_2(%arg0: i32) -> (i32, i32) {
    %c0_i32 = arith.constant 0 : i32
    %c0_i32_0 = arith.constant 0 : i32
    %c0_i32_1 = arith.constant 0 : i32
    return %c0_i32, %c0_i32_0 : i32, i32
  }
  func.func @transform_3(%arg0: i32) -> (i32, i32) {
    %c0_i32 = arith.constant 0 : i32
    %c0_i32_0 = arith.constant 0 : i32
    return %arg0, %c0_i32 : i32, i32
  }
}

module attributes {stable_mosaic.version = 11 : i64} {
  func.func @_fc_fused_kernel(%arg0: i32, %arg1: memref<8x400xf32, #tpu.memory_space<vmem>>, %arg2: memref<400x128xf32, #tpu.memory_space<vmem>>, %arg3: memref<1x128xf32, #tpu.memory_space<vmem>>, %arg4: memref<128x128xf32, #tpu.memory_space<vmem>>, %arg5: memref<1x128xf32, #tpu.memory_space<vmem>>, %arg6: memref<128x128xf32, #tpu.memory_space<vmem>>, %arg7: memref<1x128xf32, #tpu.memory_space<vmem>>, %arg8: memref<8x128xf32, #tpu.memory_space<vmem>>) attributes {dimension_semantics = [#tpu.dimension_semantics<parallel>], iteration_bounds = array<i64: 1>, scalar_prefetch = 0 : i64, scratch_operands = 0 : i64, tpu.core_type = #tpu.core_type<tc>, window_params = [{transform_indices = @transform_0, window_bounds = array<i64: 8, 400>}, {pipeline_mode = #tpu.pipeline_mode<synchronous>, transform_indices = @transform_1, window_bounds = array<i64: 400, 128>}, {pipeline_mode = #tpu.pipeline_mode<synchronous>, transform_indices = @transform_2, window_bounds = array<i64: 1, 128>}, {pipeline_mode = #tpu.pipeline_mode<synchronous>, transform_indices = @transform_3, window_bounds = array<i64: 128, 128>}, {pipeline_mode = #tpu.pipeline_mode<synchronous>, transform_indices = @transform_4, window_bounds = array<i64: 1, 128>}, {pipeline_mode = #tpu.pipeline_mode<synchronous>, transform_indices = @transform_5, window_bounds = array<i64: 128, 128>}, {pipeline_mode = #tpu.pipeline_mode<synchronous>, transform_indices = @transform_6, window_bounds = array<i64: 1, 128>}, {transform_indices = @transform_7, window_bounds = array<i64: 8, 128>}]} {
    %c0 = arith.constant 0 : index
    %c0_0 = arith.constant 0 : index
    %0 = vector.load %arg1[%c0, %c0_0] : memref<8x400xf32, #tpu.memory_space<vmem>>, vector<8x400xf32>
    %c0_1 = arith.constant 0 : index
    %c0_2 = arith.constant 0 : index
    %1 = vector.load %arg2[%c0_1, %c0_2] : memref<400x128xf32, #tpu.memory_space<vmem>>, vector<400x128xf32>
    %cst = arith.constant dense<0.000000e+00> : vector<8x128xf32>
    %2 = tpu.matmul %0, %1, %cst {dimension_numbers = #tpu.dot_dimension_numbers<[1], [0], [0], [1], [0, 0, 1, 1], [], []>} : vector<8x400xf32>, vector<400x128xf32>, vector<8x128xf32> -> vector<8x128xf32>
    %c0_3 = arith.constant 0 : index
    %c0_4 = arith.constant 0 : index
    %3 = vector.load %arg3[%c0_3, %c0_4] : memref<1x128xf32, #tpu.memory_space<vmem>>, vector<1x128xf32>
    %4 = vector.broadcast %3 : vector<1x128xf32> to vector<8x128xf32>
    %5 = arith.addf %2, %4 : vector<8x128xf32>
    %cst_5 = arith.constant 0.000000e+00 : f32
    %6 = vector.broadcast %cst_5 : f32 to vector<8x128xf32>
    %7 = arith.maximumf %5, %6 : vector<8x128xf32>
    %c0_6 = arith.constant 0 : index
    %c0_7 = arith.constant 0 : index
    %8 = vector.load %arg4[%c0_6, %c0_7] : memref<128x128xf32, #tpu.memory_space<vmem>>, vector<128x128xf32>
    %cst_8 = arith.constant dense<0.000000e+00> : vector<8x128xf32>
    %9 = tpu.matmul %7, %8, %cst_8 {dimension_numbers = #tpu.dot_dimension_numbers<[1], [0], [0], [1], [0, 0, 1, 1], [], []>} : vector<8x128xf32>, vector<128x128xf32>, vector<8x128xf32> -> vector<8x128xf32>
    %c0_9 = arith.constant 0 : index
    %c0_10 = arith.constant 0 : index
    %10 = vector.load %arg5[%c0_9, %c0_10] : memref<1x128xf32, #tpu.memory_space<vmem>>, vector<1x128xf32>
    %11 = vector.broadcast %10 : vector<1x128xf32> to vector<8x128xf32>
    %12 = arith.addf %9, %11 : vector<8x128xf32>
    %cst_11 = arith.constant 0.000000e+00 : f32
    %13 = vector.broadcast %cst_11 : f32 to vector<8x128xf32>
    %14 = arith.maximumf %12, %13 : vector<8x128xf32>
    %c0_12 = arith.constant 0 : index
    %c0_13 = arith.constant 0 : index
    %15 = vector.load %arg6[%c0_12, %c0_13] : memref<128x128xf32, #tpu.memory_space<vmem>>, vector<128x128xf32>
    %cst_14 = arith.constant dense<0.000000e+00> : vector<8x128xf32>
    %16 = tpu.matmul %14, %15, %cst_14 {dimension_numbers = #tpu.dot_dimension_numbers<[1], [0], [0], [1], [0, 0, 1, 1], [], []>} : vector<8x128xf32>, vector<128x128xf32>, vector<8x128xf32> -> vector<8x128xf32>
    %c0_15 = arith.constant 0 : index
    %c0_16 = arith.constant 0 : index
    %17 = vector.load %arg7[%c0_15, %c0_16] : memref<1x128xf32, #tpu.memory_space<vmem>>, vector<1x128xf32>
    %18 = vector.broadcast %17 : vector<1x128xf32> to vector<8x128xf32>
    %19 = arith.addf %16, %18 : vector<8x128xf32>
    %c0_17 = arith.constant 0 : index
    %c0_18 = arith.constant 0 : index
    %20 = vector.load %arg8[%c0_17, %c0_18] : memref<8x128xf32, #tpu.memory_space<vmem>>, vector<8x128xf32>
    tpu.vector_store %arg8[%c0_17, %c0_18], %19 {strides = array<i32>} : memref<8x128xf32, #tpu.memory_space<vmem>>, vector<8x128xf32>,
    return
  }
  func.func @transform_0(%arg0: i32) -> (i32, i32) {
    %c0_i32 = arith.constant 0 : i32
    %c0_i32_0 = arith.constant 0 : i32
    return %arg0, %c0_i32 : i32, i32
  }
  func.func @transform_1(%arg0: i32) -> (i32, i32) {
    %c0_i32 = arith.constant 0 : i32
    %c0_i32_0 = arith.constant 0 : i32
    %c0_i32_1 = arith.constant 0 : i32
    return %c0_i32, %c0_i32_0 : i32, i32
  }
  func.func @transform_2(%arg0: i32) -> (i32, i32) {
    %c0_i32 = arith.constant 0 : i32
    %c0_i32_0 = arith.constant 0 : i32
    %c0_i32_1 = arith.constant 0 : i32
    return %c0_i32, %c0_i32_0 : i32, i32
  }
  func.func @transform_3(%arg0: i32) -> (i32, i32) {
    %c0_i32 = arith.constant 0 : i32
    %c0_i32_0 = arith.constant 0 : i32
    %c0_i32_1 = arith.constant 0 : i32
    return %c0_i32, %c0_i32_0 : i32, i32
  }
  func.func @transform_4(%arg0: i32) -> (i32, i32) {
    %c0_i32 = arith.constant 0 : i32
    %c0_i32_0 = arith.constant 0 : i32
    %c0_i32_1 = arith.constant 0 : i32
    return %c0_i32, %c0_i32_0 : i32, i32
  }
  func.func @transform_5(%arg0: i32) -> (i32, i32) {
    %c0_i32 = arith.constant 0 : i32
    %c0_i32_0 = arith.constant 0 : i32
    %c0_i32_1 = arith.constant 0 : i32
    return %c0_i32, %c0_i32_0 : i32, i32
  }
  func.func @transform_6(%arg0: i32) -> (i32, i32) {
    %c0_i32 = arith.constant 0 : i32
    %c0_i32_0 = arith.constant 0 : i32
    %c0_i32_1 = arith.constant 0 : i32
    return %c0_i32, %c0_i32_0 : i32, i32
  }
  func.func @transform_7(%arg0: i32) -> (i32, i32) {
    %c0_i32 = arith.constant 0 : i32
    %c0_i32_0 = arith.constant 0 : i32
    return %arg0, %c0_i32 : i32, i32
  }
}

</mosaic_0001>

<bundles_post_ra>
// kernel: forward.3
= control target key start
LH: loop header
LB: loop body
LE: loop exit
PB: predicated region body
PF: predicated region fallthrough
CT: control target
= control target key end

     0   :  { %v3681_v0 = vmov 0.0|0.0   ;;  %vm3682_vm0 = vmmov 0   ;;  %v3683_v6 = vmov 0.0   ;;  %vm221_vm1 = vcmask 1042432   ;;  %s5585_s1 = inlined_call_operand.vmem [shape: f32[75,128], index: 1, kind: input, shape index: {}]   ;;  %s5586_s0 = inlined_call_operand.vmem [shape: f32[4,392,75], index: 0, kind: input, shape index: {}]   ;;  %s5587_s2 = inlined_call_operand.vmem [shape: f32[1,128], index: 2, kind: input, shape index: {}]   ;;  %s5588_s3 = inlined_call_operand.vmem [shape: f32[392,128], index: 3, kind: output, shape index: {}]  }
   0x1   :  { %3613 = vmatprep.subr.bf16.mxu0 %v3681_v0  ;;  %v14_v1 = vld [vmem:[%s5585_s1] sm:$0xff]  ;;  %v15_v2 = vld [vmem:[%s5585_s1 + $0x8] sm:$0xff]  ;;  %3629 = vmatprep.subr.bf16.mxu1 %v3681_v0  ;;  %v16_v3 = vld [vmem:[%s5585_s1 + $0x10] sm:$0xff]  ;;  %vm3684_vm2 = vmmov 1   ;;  %vm73_vm4 = vcmask 613376  }
   0x2   :  { %v3614_v4 = vpack.c.bf16 %v15_v2, %v14_v1  ;;  %v17_v5 = vld [vmem:[%s5585_s1 + $0x18] sm:$0xff]  ;;  %2965 = vmatprep.mubr.msk.f32.mxu0 %vm3682_vm0, %v3683_v6  ;;  %3132 = vmatprep.mubr.msk.f32.mxu1 %vm3682_vm0, %v3683_v6  ;;  %v18_v8 = vld [vmem:[%s5585_s1 + $0x20] sm:$0xff]  ;;  %v19_v9 = vld [vmem:[%s5585_s1 + $0x28] sm:$0xff] }
   0x3   :  { %v3617_v7 = vpack.c.bf16 %v17_v5, %v16_v3  ;;  %v3620_v10 = vpack.c.bf16 %v19_v9, %v18_v8  ;;  %v20_v11 = vld [vmem:[%s5585_s1 + $0x30] sm:$0xff]  ;;  %v21_v12 = vld [vmem:[%s5585_s1 + $0x38] sm:$0xff]  ;;  %v22_v14 = vld [vmem:[%s5585_s1 + $0x40] sm:$0xff] }
   0x4   :  { %3615 = vmatpush3.bf16.msra.mxu0 %v3614_v4  ;;  %3631 = vmatpush3.bf16.msra.mxu1 %v3614_v4  ;;  %v3623_v13 = vpack.c.bf16 %v21_v12, %v20_v11  ;;  %v23_v15 = vld [vmem:[%s5585_s1 + $0x48] sm:$0x7]  ;;  %vm3748_vm3 = vmpackc.low %vm221_vm1, %vm3684_vm2  ;;  %v24_v18 = vld [vmem:[%s5586_s0] sm:$0xff] }
   0x5   :  { %3616 = vmatprep.subr.bf16.mxu0 %v3681_v0  ;;  %3632 = vmatprep.subr.bf16.mxu1 %v3681_v0  ;;  %v3626_v16 = vpack.c.bf16 %v23_v15, %v22_v14  ;;  %v2411_v19 = vld [vmem:[%s5586_s0 + $0x188] sm:$0xff]  ;;  %v2412_v21 = vld [vmem:[%s5586_s0 + $0x190] sm:$0xff]  ;;  %v2413_v23 = vld [vmem:[%s5586_s0 + $0x198] sm:$0xff] }
   0x6   :  { %v25_v20 = vld [vmem:[%s5586_s0 + $0x8] sm:$0xff]  ;;  %v26_v22 = vld [vmem:[%s5586_s0 + $0x10] sm:$0xff]  ;;  %v27_v24 = vld [vmem:[%s5586_s0 + $0x18] sm:$0xff] }
   0x7   :  { %v2414_v25 = vld [vmem:[%s5586_s0 + $0x1a0] sm:$0xff]  ;;  %v2415_v27 = vld [vmem:[%s5586_s0 + $0x1a8] sm:$0xff]  ;;  %v2416_v29 = vld [vmem:[%s5586_s0 + $0x1b0] sm:$0xff] }
   0x8   :  { %3618 = vmatpush3.bf16.msra.mxu0 %v3617_v7  ;;  %3634 = vmatpush3.bf16.msra.mxu1 %v3617_v7  ;;  %v28_v26 = vld [vmem:[%s5586_s0 + $0x20] sm:$0xff]  ;;  %v29_v28 = vld [vmem:[%s5586_s0 + $0x28] sm:$0xff]  ;;  %v30_v30 = vld [vmem:[%s5586_s0 + $0x30] sm:$0xff] }
   0x9   :  { %3619 = vmatprep.subr.bf16.mxu0 %v3681_v0  ;;  %3635 = vmatprep.subr.bf16.mxu1 %v3681_v0  ;;  %v2417_v31 = vld [vmem:[%s5586_s0 + $0x1b8] sm:$0xff]  ;;  %v2418_v33 = vld [vmem:[%s5586_s0 + $0x1c0] sm:$0xff]  ;;  %v2419_v35 = vld [vmem:[%s5586_s0 + $0x1c8] sm:$0xff] }
   0xa   :  { %v31_v32 = vld [vmem:[%s5586_s0 + $0x38] sm:$0xff]  ;;  %v32_v34 = vld [vmem:[%s5586_s0 + $0x40] sm:$0xff]  ;;  %v33_v36 = vld [vmem:[%s5586_s0 + $0x48] sm:$0xff] }
   0xb   :  { %v2420_v37 = vld [vmem:[%s5586_s0 + $0x1d0] sm:$0xff]  ;;  %v2421_v39 = vld [vmem:[%s5586_s0 + $0x1d8] sm:$0xff]  ;;  %v2422_v41 = vld [vmem:[%s5586_s0 + $0x1e0] sm:$0xff] }
   0xc   :  { %3621 = vmatpush3.bf16.msra.mxu0 %v3620_v10  ;;  %3637 = vmatpush3.bf16.msra.mxu1 %v3620_v10  ;;  %v34_v38 = vld [vmem:[%s5586_s0 + $0x50] sm:$0xff]  ;;  %v35_v40 = vld [vmem:[%s5586_s0 + $0x58] sm:$0xff]  ;;  %v36_v42 = vld [vmem:[%s5586_s0 + $0x60] sm:$0xff] }
   0xd   :  { %3622 = vmatprep.subr.bf16.mxu0 %v3681_v0  ;;  %3638 = vmatprep.subr.bf16.mxu1 %v3681_v0  ;;  %v2423_v43 = vld [vmem:[%s5586_s0 + $0x1e8] sm:$0xff]  ;;  %v2424_v45 = vld [vmem:[%s5586_s0 + $0x1f0] sm:$0xff]  ;;  %v2425_v47 = vld [vmem:[%s5586_s0 + $0x1f8] sm:$0xff] }
   0xe   :  { %v37_v44 = vld [vmem:[%s5586_s0 + $0x68] sm:$0xff]  ;;  %v38_v46 = vld [vmem:[%s5586_s0 + $0x70] sm:$0xff]  ;;  %v39_v48 = vld [vmem:[%s5586_s0 + $0x78] sm:$0xff] }
   0xf   :  { %v2426_v49 = vld [vmem:[%s5586_s0 + $0x200] sm:$0xff]  ;;  %v2427_v51 = vld [vmem:[%s5586_s0 + $0x208] sm:$0xff]  ;;  %v2428_v53 = vld [vmem:[%s5586_s0 + $0x210] sm:$0xff] }
  0x10   :  { %3624 = vmatpush3.bf16.msra.mxu0 %v3623_v13  ;;  %3640 = vmatpush3.bf16.msra.mxu1 %v3623_v13  ;;  %v40_v50 = vld [vmem:[%s5586_s0 + $0x80] sm:$0xff]  ;;  %v41_v52 = vld [vmem:[%s5586_s0 + $0x88] sm:$0xff]  ;;  %v42_v54 = vld [vmem:[%s5586_s0 + $0x90] sm:$0xff] }
  0x11   :  { %3625 = vmatprep.subr.bf16.mxu0 %v3681_v0  ;;  %3641 = vmatprep.subr.bf16.mxu1 %v3681_v0  ;;  %v2429_v55 = vld [vmem:[%s5586_s0 + $0x218] sm:$0xff]  ;;  %v2430_v57 = vld [vmem:[%s5586_s0 + $0x220] sm:$0xff]  ;;  %v2431_v59 = vld [vmem:[%s5586_s0 + $0x228] sm:$0xff] }
  0x12   :  { %v43_v56 = vld [vmem:[%s5586_s0 + $0x98] sm:$0xff]  ;;  %v44_v58 = vld [vmem:[%s5586_s0 + $0xa0] sm:$0xff]  ;;  %v45_v60 = vld [vmem:[%s5586_s0 + $0xa8] sm:$0xff] }
  0x13   :  { %v2432_v61 = vld [vmem:[%s5586_s0 + $0x230] sm:$0xff]  ;;  %v2433_v63 = vld [vmem:[%s5586_s0 + $0x238] sm:$0xff]  ;;  %v2434_v1 = vld [vmem:[%s5586_s0 + $0x240] sm:$0xff] }
  0x14   :  { %3628 = vmatpush3.bf16.msk.msra.mxu0 %vm3748_vm3, %v3626_v16  ;;  %3644 = vmatpush3.bf16.msk.msra.mxu1 %vm3748_vm3, %v3626_v16  ;;  %v46_v62 = vld [vmem:[%s5586_s0 + $0xb0] sm:$0xff]  ;;  %v48_v2 = vld [vmem:[%s5586_s0 + $0xc0] sm:$0xff]  ;;  %v2435_v3 = vld [vmem:[%s5586_s0 + $0x248] sm:$0xff] }
  0x15   :  { %3645 = vmatprep.subr.bf16.mxu0 %v3681_v0  ;;  %3661 = vmatprep.subr.bf16.mxu1 %v3681_v0  ;;  %v2436_v5 = vld [vmem:[%s5586_s0 + $0x250] sm:$0xff]  ;;  %v2437_v8 = vld [vmem:[%s5586_s0 + $0x258] sm:$0xff]  ;;  %v52_v11 = vld [vmem:[%s5586_s0 + $0xe0] sm:$0xff] }
  0x16   :  { %v51_v9 = vld [vmem:[%s5586_s0 + $0xd8] sm:$0xff]  ;;  %v2439_v12 = vld [vmem:[%s5586_s0 + $0x268] sm:$0xff]  ;;  %v2440_v14 = vld [vmem:[%s5586_s0 + $0x270] sm:$0xff] }
  0x17   :  { %2966 = vmatmul.mubr.msk.f32.vlgmr.msra.gmra.mrb[0].mxu0 %vm73_vm4, %v24_v18  ;;  %3133 = vmatmul.mubr.msk.f32.vlgmr.msra.gmra.mrb[0].mxu1 %vm73_vm4, %v2411_v19  ;;  %v54_v15 = vld [vmem:[%s5586_s0 + $0xf0] sm:$0xff]  ;;  %v55_v17 = vld [vmem:[%s5586_s0 + $0xf8] sm:$0xff]  ;;  %v2442_v18 = vld [vmem:[%s5586_s0 + $0x280] sm:$0xff] }
  0x18   :  { %3647 = vmatpush3.bf16.msra.mxu0 %v3614_v4  ;;  %2968 = vmatprep.mubr.msk.f32.mxu0 %vm3682_vm0, %v3683_v6  ;;  %v56_v19 = vld [vmem:[%s5586_s0 + $0x100] sm:$0xff] }
  0x19   :  { %3663 = vmatpush3.bf16.msra.mxu1 %v3614_v4  ;;  %3135 = vmatprep.mubr.msk.f32.mxu1 %vm3682_vm0, %v3683_v6  ;;  %v49_v4 = vld [vmem:[%s5586_s0 + $0xc8] sm:$0xff] }
  0x1a   :  { %3648 = vmatprep.subr.bf16.mxu0 %v3681_v0  ;;  %3664 = vmatprep.subr.bf16.mxu1 %v3681_v0 }
  0x1b   :  { %2969 = vmatmul.mubr.msk.f32.gmra.mrb[2].mxu0 %vm73_vm4, %v25_v20  ;;  %3136 = vmatmul.mubr.msk.f32.gmra.mrb[2].mxu1 %vm73_vm4, %v2412_v21  ;;  %v2443_v20 = vld [vmem:[%s5586_s0 + $0x288] sm:$0xff] }
  0x1c   :  { %2971 = vmatprep.mubr.msk.f32.mxu0 %vm3682_vm0, %v3683_v6  ;;  %3138 = vmatprep.mubr.msk.f32.mxu1 %vm3682_vm0, %v3683_v6  ;;  %v57_v21 = vld [vmem:[%s5586_s0 + $0x108] sm:$0xff] }
  0x1d   :  { %3650 = vmatpush3.bf16.msra.mxu0 %v3617_v7  ;;  %3666 = vmatpush3.bf16.msra.mxu1 %v3617_v7  ;;  %v50_v7 = vld [vmem:[%s5586_s0 + $0xd0] sm:$0xff] }
  0x1e   :  { %3651 = vmatprep.subr.bf16.mxu0 %v3681_v0  ;;  %3667 = vmatprep.subr.bf16.mxu1 %v3681_v0 }
  0x1f   :  { %2972 = vmatmul.mubr.msk.f32.gmra.mrb[4].mxu0 %vm73_vm4, %v26_v22  ;;  %3139 = vmatmul.mubr.msk.f32.gmra.mrb[4].mxu1 %vm73_vm4, %v2413_v23  ;;  %v2444_v22 = vld [vmem:[%s5586_s0 + $0x290] sm:$0xff] }
  0x20   :  { %2974 = vmatprep.mubr.msk.f32.mxu0 %vm3682_vm0, %v3683_v6  ;;  %3141 = vmatprep.mubr.msk.f32.mxu1 %vm3682_vm0, %v3683_v6  ;;  %v58_v23 = vld [vmem:[%s5586_s0 + $0x110] sm:$0xff] }
  0x21   :  { %3653 = vmatpush3.bf16.msra.mxu0 %v3620_v10  ;;  %3669 = vmatpush3.bf16.msra.mxu1 %v3620_v10  ;;  %v2438_v10 = vld [vmem:[%s5586_s0 + $0x260] sm:$0xff] }
  0x22   :  { %3654 = vmatprep.subr.bf16.mxu0 %v3681_v0  ;;  %3670 = vmatprep.subr.bf16.mxu1 %v3681_v0 }
  0x23   :  { %2975 = vmatmul.mubr.msk.f32.gmra.mrb[6].mxu0 %vm73_vm4, %v27_v24  ;;  %3142 = vmatmul.mubr.msk.f32.gmra.mrb[6].mxu1 %vm73_vm4, %v2414_v25  ;;  %v2445_v24 = vld [vmem:[%s5586_s0 + $0x298] sm:$0xff] }
  0x24   :  { %2977 = vmatprep.mubr.msk.f32.mxu0 %vm3682_vm0, %v3683_v6  ;;  %3144 = vmatprep.mubr.msk.f32.mxu1 %vm3682_vm0, %v3683_v6  ;;  %v59_v25 = vld [vmem:[%s5586_s0 + $0x118] sm:$0xff] }
  0x25   :  { %3656 = vmatpush3.bf16.msra.mxu0 %v3623_v13  ;;  %3672 = vmatpush3.bf16.msra.mxu1 %v3623_v13  ;;  %v53_v13 = vld [vmem:[%s5586_s0 + $0xe8] sm:$0xff] }
  0x26   :  { %3657 = vmatprep.subr.bf16.mxu0 %v3681_v0  ;;  %3673 = vmatprep.subr.bf16.mxu1 %v3681_v0  ;;  %v47_v0 = vld [vmem:[%s5586_s0 + $0xb8] sm:$0xff] }
  0x27   :  { %2978 = vmatmul.mubr.msk.f32.gmra.mrb[8].mxu0 %vm73_vm4, %v28_v26  ;;  %3145 = vmatmul.mubr.msk.f32.gmra.mrb[8].mxu1 %vm73_vm4, %v2415_v27  ;;  %v2446_v26 = vld [vmem:[%s5586_s0 + $0x2a0] sm:$0xff] }
  0x28   :  { %2980 = vmatprep.mubr.msk.f32.mxu0 %vm3682_vm0, %v3683_v6  ;;  %3147 = vmatprep.mubr.msk.f32.mxu1 %vm3682_vm0, %v3683_v6  ;;  %v60_v27 = vld [vmem:[%s5586_s0 + $0x120] sm:$0xff] }
  0x29   :  { %3660 = vmatpush3.bf16.msk.msra.mxu0 %vm3748_vm3, %v3626_v16  ;;  %3676 = vmatpush3.bf16.msk.msra.mxu1 %vm3748_vm3, %v3626_v16  ;;  %v2441_v16 = vld [vmem:[%s5586_s0 + $0x278] sm:$0xff] }
  0x2b   :  { %2981 = vmatmul.mubr.msk.f32.gmra.mrb[10].mxu0 %vm73_vm4, %v29_v28  ;;  %3148 = vmatmul.mubr.msk.f32.gmra.mrb[10].mxu1 %vm73_vm4, %v2416_v29  ;;  %v2447_v28 = vld [vmem:[%s5586_s0 + $0x2a8] sm:$0xff] }
  0x2c   :  { %2983 = vmatprep.mubr.msk.f32.mxu0 %vm3682_vm0, %v3683_v6  ;;  %3150 = vmatprep.mubr.msk.f32.mxu1 %vm3682_vm0, %v3683_v6  ;;  %v61_v29 = vld [vmem:[%s5586_s0 + $0x128] sm:$0xff] }
  0x2f   :  { %2984 = vmatmul.mubr.msk.f32.gmra.mrb[12].mxu0 %vm73_vm4, %v30_v30  ;;  %3151 = vmatmul.mubr.msk.f32.gmra.mrb[12].mxu1 %vm73_vm4, %v2417_v31  ;;  %v2448_v30 = vld [vmem:[%s5586_s0 + $0x2b0] sm:$0xff] }
  0x30   :  { %2986 = vmatprep.mubr.msk.f32.mxu0 %vm3682_vm0, %v3683_v6  ;;  %3153 = vmatprep.mubr.msk.f32.mxu1 %vm3682_vm0, %v3683_v6  ;;  %v62_v31 = vld [vmem:[%s5586_s0 + $0x130] sm:$0xff] }
  0x33   :  { %2987 = vmatmul.mubr.msk.f32.gmra.mrb[14].mxu0 %vm73_vm4, %v31_v32  ;;  %3154 = vmatmul.mubr.msk.f32.gmra.mrb[14].mxu1 %vm73_vm4, %v2418_v33  ;;  %v2449_v32 = vld [vmem:[%s5586_s0 + $0x2b8] sm:$0xff] }
  0x34   :  { %2989 = vmatprep.mubr.msk.f32.mxu0 %vm3682_vm0, %v3683_v6  ;;  %3156 = vmatprep.mubr.msk.f32.mxu1 %vm3682_vm0, %v3683_v6  ;;  %v63_v33 = vld [vmem:[%s5586_s0 + $0x138] sm:$0xff] }
  0x37   :  { %2990 = vmatmul.mubr.msk.f32.gmra.mrb[16].mxu0 %vm73_vm4, %v32_v34  ;;  %3157 = vmatmul.mubr.msk.f32.gmra.mrb[16].mxu1 %vm73_vm4, %v2419_v35  ;;  %v2450_v34 = vld [vmem:[%s5586_s0 + $0x2c0] sm:$0xff] }
  0x38   :  { %2992 = vmatprep.mubr.msk.f32.mxu0 %vm3682_vm0, %v3683_v6  ;;  %3159 = vmatprep.mubr.msk.f32.mxu1 %vm3682_vm0, %v3683_v6  ;;  %v64_v35 = vld [vmem:[%s5586_s0 + $0x140] sm:$0xff] }
  0x3b   :  { %2993 = vmatmul.mubr.msk.f32.gmra.mrb[18].mxu0 %vm73_vm4, %v33_v36  ;;  %3160 = vmatmul.mubr.msk.f32.gmra.mrb[18].mxu1 %vm73_vm4, %v2420_v37  ;;  %v2451_v36 = vld [vmem:[%s5586_s0 + $0x2c8] sm:$0xff] }
  0x3c   :  { %2995 = vmatprep.mubr.msk.f32.mxu0 %vm3682_vm0, %v3683_v6  ;;  %3162 = vmatprep.mubr.msk.f32.mxu1 %vm3682_vm0, %v3683_v6  ;;  %v65_v37 = vld [vmem:[%s5586_s0 + $0x148] sm:$0xff] }
  0x3f   :  { %2996 = vmatmul.mubr.msk.f32.gmra.mrb[20].mxu0 %vm73_vm4, %v34_v38  ;;  %3163 = vmatmul.mubr.msk.f32.gmra.mrb[20].mxu1 %vm73_vm4, %v2421_v39  ;;  %v2452_v38 = vld [vmem:[%s5586_s0 + $0x2d0] sm:$0xff] }
  0x40   :  { %2998 = vmatprep.mubr.msk.f32.mxu0 %vm3682_vm0, %v3683_v6  ;;  %3165 = vmatprep.mubr.msk.f32.mxu1 %vm3682_vm0, %v3683_v6  ;;  %v66_v39 = vld [vmem:[%s5586_s0 + $0x150] sm:$0xff] }
  0x43   :  { %2999 = vmatmul.mubr.msk.f32.gmra.mrb[22].mxu0 %vm73_vm4, %v35_v40  ;;  %3166 = vmatmul.mubr.msk.f32.gmra.mrb[22].mxu1 %vm73_vm4, %v2422_v41  ;;  %v2453_v40 = vld [vmem:[%s5586_s0 + $0x2d8] sm:$0xff] }
  0x44   :  { %3001 = vmatprep.mubr.msk.f32.mxu0 %vm3682_vm0, %v3683_v6  ;;  %3168 = vmatprep.mubr.msk.f32.mxu1 %vm3682_vm0, %v3683_v6  ;;  %v67_v41 = vld [vmem:[%s5586_s0 + $0x158] sm:$0xff] }
  0x47   :  { %3002 = vmatmul.mubr.msk.f32.gmra.mrb[24].mxu0 %vm73_vm4, %v36_v42  ;;  %3169 = vmatmul.mubr.msk.f32.gmra.mrb[24].mxu1 %vm73_vm4, %v2423_v43  ;;  %v2454_v42 = vld [vmem:[%s5586_s0 + $0x2e0] sm:$0xff] }
  0x48   :  { %3004 = vmatprep.mubr.msk.f32.mxu0 %vm3682_vm0, %v3683_v6  ;;  %3171 = vmatprep.mubr.msk.f32.mxu1 %vm3682_vm0, %v3683_v6  ;;  %v68_v43 = vld [vmem:[%s5586_s0 + $0x160] sm:$0xff] }
  0x4b   :  { %3005 = vmatmul.mubr.msk.f32.gmra.mrb[26].mxu0 %vm73_vm4, %v37_v44  ;;  %3172 = vmatmul.mubr.msk.f32.gmra.mrb[26].mxu1 %vm73_vm4, %v2424_v45  ;;  %v2455_v44 = vld [vmem:[%s5586_s0 + $0x2e8] sm:$0xff] }
  0x4c   :  { %3007 = vmatprep.mubr.msk.f32.mxu0 %vm3682_vm0, %v3683_v6  ;;  %3174 = vmatprep.mubr.msk.f32.mxu1 %vm3682_vm0, %v3683_v6  ;;  %v69_v45 = vld [vmem:[%s5586_s0 + $0x168] sm:$0xff] }
  0x4f   :  { %3008 = vmatmul.mubr.msk.f32.gmra.mrb[28].mxu0 %vm73_vm4, %v38_v46  ;;  %3175 = vmatmul.mubr.msk.f32.gmra.mrb[28].mxu1 %vm73_vm4, %v2425_v47  ;;  %v2456_v46 = vld [vmem:[%s5586_s0 + $0x2f0] sm:$0xff] }
  0x50   :  { %3010 = vmatprep.mubr.msk.f32.mxu0 %vm3682_vm0, %v3683_v6  ;;  %3177 = vmatprep.mubr.msk.f32.mxu1 %vm3682_vm0, %v3683_v6  ;;  %v70_v47 = vld [vmem:[%s5586_s0 + $0x170] sm:$0xff] }
  0x53   :  { %3011 = vmatmul.mubr.msk.f32.gmra.mrb[30].mxu0 %vm73_vm4, %v39_v48  ;;  %3178 = vmatmul.mubr.msk.f32.gmra.mrb[30].mxu1 %vm73_vm4, %v2426_v49  ;;  %v2457_v48 = vld [vmem:[%s5586_s0 + $0x2f8] sm:$0xff] }
  0x54   :  { %3013 = vmatprep.mubr.msk.f32.mxu0 %vm3682_vm0, %v3683_v6  ;;  %3180 = vmatprep.mubr.msk.f32.mxu1 %vm3682_vm0, %v3683_v6  ;;  %v71_v49 = vld [vmem:[%s5586_s0 + $0x178] sm:$0xff] }
  0x57   :  { %3014 = vmatmul.mubr.msk.f32.gmra.mrb[32].mxu0 %vm73_vm4, %v40_v50  ;;  %3181 = vmatmul.mubr.msk.f32.gmra.mrb[32].mxu1 %vm73_vm4, %v2427_v51  ;;  %v2458_v50 = vld [vmem:[%s5586_s0 + $0x300] sm:$0xff] }
  0x58   :  { %3016 = vmatprep.mubr.msk.f32.mxu0 %vm3682_vm0, %v3683_v6  ;;  %3183 = vmatprep.mubr.msk.f32.mxu1 %vm3682_vm0, %v3683_v6  ;;  %v72_v51 = vld [vmem:[%s5586_s0 + $0x180] sm:$0xff] }
  0x5b   :  { %3017 = vmatmul.mubr.msk.f32.gmra.mrb[34].mxu0 %vm73_vm4, %v41_v52  ;;  %3184 = vmatmul.mubr.msk.f32.gmra.mrb[34].mxu1 %vm73_vm4, %v2428_v53  ;;  %v2459_v52 = vld [vmem:[%s5586_s0 + $0x308] sm:$0xff]  ;;  %v2510_v53 = vld [vmem:[%s5586_s0 + $0x310] sm:$0xff] }
  0x5c   :  { %3019 = vmatprep.mubr.msk.f32.mxu0 %vm3682_vm0, %v3683_v6  ;;  %3186 = vmatprep.mubr.msk.f32.mxu1 %vm3682_vm0, %v3683_v6 }
  0x5f   :  { %3020 = vmatmul.mubr.msk.f32.gmra.mrb[36].mxu0 %vm73_vm4, %v42_v54  ;;  %3187 = vmatmul.mubr.msk.f32.gmra.mrb[36].mxu1 %vm73_vm4, %v2429_v55  ;;  %v2609_v54 = vld [vmem:[%s5586_s0 + $0x498] sm:$0xff] }
  0x60   :  { %3022 = vmatprep.mubr.msk.f32.mxu0 %vm3682_vm0, %v3683_v6  ;;  %3189 = vmatprep.mubr.msk.f32.mxu1 %vm3682_vm0, %v3683_v6  ;;  %v2511_v55 = vld [vmem:[%s5586_s0 + $0x318] sm:$0xff] }
  0x63   :  { %3023 = vmatmul.mubr.msk.f32.gmra.mrb[38].mxu0 %vm73_vm4, %v43_v56  ;;  %3190 = vmatmul.mubr.msk.f32.gmra.mrb[38].mxu1 %vm73_vm4, %v2430_v57  ;;  %v2610_v56 = vld [vmem:[%s5586_s0 + $0x4a0] sm:$0xff] }
  0x64   :  { %3025 = vmatprep.mubr.msk.f32.mxu0 %vm3682_vm0, %v3683_v6  ;;  %3192 = vmatprep.mubr.msk.f32.mxu1 %vm3682_vm0, %v3683_v6  ;;  %v2512_v57 = vld [vmem:[%s5586_s0 + $0x320] sm:$0xff] }
  0x67   :  { %3026 = vmatmul.mubr.msk.f32.gmra.mrb[40].mxu0 %vm73_vm4, %v44_v58  ;;  %3193 = vmatmul.mubr.msk.f32.gmra.mrb[40].mxu1 %vm73_vm4, %v2431_v59  ;;  %v2611_v58 = vld [vmem:[%s5586_s0 + $0x4a8] sm:$0xff] }
  0x68   :  { %3028 = vmatprep.mubr.msk.f32.mxu0 %vm3682_vm0, %v3683_v6  ;;  %3195 = vmatprep.mubr.msk.f32.mxu1 %vm3682_vm0, %v3683_v6  ;;  %v2513_v59 = vld [vmem:[%s5586_s0 + $0x328] sm:$0xff] }
  0x6b   :  { %3029 = vmatmul.mubr.msk.f32.gmra.mrb[42].mxu0 %vm73_vm4, %v45_v60  ;;  %3196 = vmatmul.mubr.msk.f32.gmra.mrb[42].mxu1 %vm73_vm4, %v2432_v61  ;;  %v2612_v60 = vld [vmem:[%s5586_s0 + $0x4b0] sm:$0xff] }
  0x6c   :  { %3031 = vmatprep.mubr.msk.f32.mxu0 %vm3682_vm0, %v3683_v6  ;;  %3198 = vmatprep.mubr.msk.f32.mxu1 %vm3682_vm0, %v3683_v6  ;;  %v2514_v61 = vld [vmem:[%s5586_s0 + $0x330] sm:$0xff] }
  0x6f   :  { %3032 = vmatmul.mubr.msk.f32.gmra.mrb[44].mxu0 %vm73_vm4, %v46_v62  ;;  %3199 = vmatmul.mubr.msk.f32.gmra.mrb[44].mxu1 %vm73_vm4, %v2433_v63  ;;  %v2613_v62 = vld [vmem:[%s5586_s0 + $0x4b8] sm:$0xff] }
  0x70   :  { %3034 = vmatprep.mubr.msk.f32.mxu0 %vm3682_vm0, %v3683_v6  ;;  %3201 = vmatprep.mubr.msk.f32.mxu1 %vm3682_vm0, %v3683_v6 }
  0x73   :  { %3035 = vmatmul.mubr.msk.f32.gmra.mrb[46].mxu0 %vm73_vm4, %v47_v0  ;;  %3202 = vmatmul.mubr.msk.f32.gmra.mrb[46].mxu1 %vm73_vm4, %v2434_v1 }
  0x74   :  { %3037 = vmatprep.mubr.msk.f32.mxu0 %vm3682_vm0, %v3683_v6  ;;  %3204 = vmatprep.mubr.msk.f32.mxu1 %vm3682_vm0, %v3683_v6 }
  0x77   :  { %3038 = vmatmul.mubr.msk.f32.gmra.mrb[48].mxu0 %vm73_vm4, %v48_v2  ;;  %3205 = vmatmul.mubr.msk.f32.gmra.mrb[48].mxu1 %vm73_vm4, %v2435_v3 }
  0x78   :  { %3040 = vmatprep.mubr.msk.f32.mxu0 %vm3682_vm0, %v3683_v6  ;;  %3207 = vmatprep.mubr.msk.f32.mxu1 %vm3682_vm0, %v3683_v6 }
  0x7b   :  { %3041 = vmatmul.mubr.msk.f32.gmra.mrb[50].mxu0 %vm73_vm4, %v49_v4  ;;  %3208 = vmatmul.mubr.msk.f32.gmra.mrb[50].mxu1 %vm73_vm4, %v2436_v5  ;;  %v2515_v4 = vld [vmem:[%s5586_s0 + $0x338] sm:$0xff]  ;;  %v2614_v5 = vld [vmem:[%s5586_s0 + $0x4c0] sm:$0xff] }
  0x7c   :  { %3043 = vmatprep.mubr.msk.f32.mxu0 %vm3682_vm0, %v3683_v6  ;;  %3210 = vmatprep.mubr.msk.f32.mxu1 %vm3682_vm0, %v3683_v6 }
  0x7f   :  { %3044 = vmatmul.mubr.msk.f32.gmra.mrb[52].mxu0 %vm73_vm4, %v50_v7  ;;  %3211 = vmatmul.mubr.msk.f32.gmra.mrb[52].mxu1 %vm73_vm4, %v2437_v8 }
  0x80   :  { %3046 = vmatprep.mubr.msk.f32.mxu0 %vm3682_vm0, %v3683_v6  ;;  %3213 = vmatprep.mubr.msk.f32.mxu1 %vm3682_vm0, %v3683_v6 }
  0x83   :  { %3047 = vmatmul.mubr.msk.f32.gmra.mrb[54].mxu0 %vm73_vm4, %v51_v9  ;;  %3214 = vmatmul.mubr.msk.f32.gmra.mrb[54].mxu1 %vm73_vm4, %v2438_v10  ;;  %v2542_v10 = vld [vmem:[%s5586_s0 + $0x410] sm:$0xff] }
  0x84   :  { %3049 = vmatprep.mubr.msk.f32.mxu0 %vm3682_vm0, %v3683_v6  ;;  %3216 = vmatprep.mubr.msk.f32.mxu1 %vm3682_vm0, %v3683_v6 }
  0x87   :  { %3050 = vmatmul.mubr.msk.f32.gmra.mrb[56].mxu0 %vm73_vm4, %v52_v11  ;;  %3217 = vmatmul.mubr.msk.f32.gmra.mrb[56].mxu1 %vm73_vm4, %v2439_v12  ;;  %v2516_v12 = vld [vmem:[%s5586_s0 + $0x340] sm:$0xff] }
  0x88   :  { %3052 = vmatprep.mubr.msk.f32.mxu0 %vm3682_vm0, %v3683_v6  ;;  %3219 = vmatprep.mubr.msk.f32.mxu1 %vm3682_vm0, %v3683_v6 }
  0x8b   :  { %3053 = vmatmul.mubr.msk.f32.gmra.mrb[58].mxu0 %vm73_vm4, %v53_v13  ;;  %3220 = vmatmul.mubr.msk.f32.gmra.mrb[58].mxu1 %vm73_vm4, %v2440_v14  ;;  %v2615_v13 = vld [vmem:[%s5586_s0 + $0x4c8] sm:$0xff] }
  0x8c   :  { %3055 = vmatprep.mubr.msk.f32.mxu0 %vm3682_vm0, %v3683_v6  ;;  %3222 = vmatprep.mubr.msk.f32.mxu1 %vm3682_vm0, %v3683_v6 }
  0x8f   :  { %3056 = vmatmul.mubr.msk.f32.gmra.mrb[60].mxu0 %vm73_vm4, %v54_v15  ;;  %3223 = vmatmul.mubr.msk.f32.gmra.mrb[60].mxu1 %vm73_vm4, %v2441_v16 }
  0x90   :  { %3058 = vmatprep.mubr.msk.f32.mxu0 %vm3682_vm0, %v3683_v6  ;;  %3225 = vmatprep.mubr.msk.f32.mxu1 %vm3682_vm0, %v3683_v6 }
  0x93   :  { %3059 = vmatmul.mubr.msk.f32.gmra.mrb[62].mxu0 %vm73_vm4, %v55_v17  ;;  %3226 = vmatmul.mubr.msk.f32.gmra.mrb[62].mxu1 %vm73_vm4, %v2442_v18 }
  0x94   :  { %3061 = vmatprep.mubr.msk.f32.mxu0 %vm3682_vm0, %v3683_v6  ;;  %3228 = vmatprep.mubr.msk.f32.mxu1 %vm3682_vm0, %v3683_v6 }
  0x97   :  { %3062 = vmatmul.mubr.msk.f32.gmra.mrb[64].mxu0 %vm73_vm4, %v56_v19  ;;  %3229 = vmatmul.mubr.msk.f32.gmra.mrb[64].mxu1 %vm73_vm4, %v2443_v20  ;;  %v2517_v19 = vld [vmem:[%s5586_s0 + $0x348] sm:$0xff]  ;;  %v2616_v20 = vld [vmem:[%s5586_s0 + $0x4d0] sm:$0xff] }
  0x98   :  { %3064 = vmatprep.mubr.msk.f32.mxu0 %vm3682_vm0, %v3683_v6  ;;  %3231 = vmatprep.mubr.msk.f32.mxu1 %vm3682_vm0, %v3683_v6 }
  0x9b   :  { %3065 = vmatmul.mubr.msk.f32.gmra.mrb[66].mxu0 %vm73_vm4, %v57_v21  ;;  %3232 = vmatmul.mubr.msk.f32.gmra.mrb[66].mxu1 %vm73_vm4, %v2444_v22 }
  0x9c   :  { %3067 = vmatprep.mubr.msk.f32.mxu0 %vm3682_vm0, %v3683_v6  ;;  %3234 = vmatprep.mubr.msk.f32.mxu1 %vm3682_vm0, %v3683_v6 }
  0x9f   :  { %3068 = vmatmul.mubr.msk.f32.gmra.mrb[68].mxu0 %vm73_vm4, %v58_v23  ;;  %3235 = vmatmul.mubr.msk.f32.gmra.mrb[68].mxu1 %vm73_vm4, %v2445_v24  ;;  %v2541_v24 = vld [vmem:[%s5586_s0 + $0x408] sm:$0xff] }
  0xa0   :  { %3070 = vmatprep.mubr.msk.f32.mxu0 %vm3682_vm0, %v3683_v6  ;;  %3237 = vmatprep.mubr.msk.f32.mxu1 %vm3682_vm0, %v3683_v6 }
  0xa3   :  { %3071 = vmatmul.mubr.msk.f32.gmra.mrb[70].mxu0 %vm73_vm4, %v59_v25  ;;  %3238 = vmatmul.mubr.msk.f32.gmra.mrb[70].mxu1 %vm73_vm4, %v2446_v26  ;;  %v2518_v26 = vld [vmem:[%s5586_s0 + $0x350] sm:$0xff] }
  0xa4   :  { %3073 = vmatprep.mubr.msk.f32.mxu0 %vm3682_vm0, %v3683_v6  ;;  %3240 = vmatprep.mubr.msk.f32.mxu1 %vm3682_vm0, %v3683_v6 }
  0xa7   :  { %3074 = vmatmul.mubr.msk.f32.gmra.mrb[72].mxu0 %vm73_vm4, %v60_v27  ;;  %3241 = vmatmul.mubr.msk.f32.gmra.mrb[72].mxu1 %vm73_vm4, %v2447_v28  ;;  %v2617_v27 = vld [vmem:[%s5586_s0 + $0x4d8] sm:$0xff] }
  0xa8   :  { %3076 = vmatprep.mubr.msk.f32.mxu0 %vm3682_vm0, %v3683_v6  ;;  %3243 = vmatprep.mubr.msk.f32.mxu1 %vm3682_vm0, %v3683_v6 }
  0xab   :  { %3077 = vmatmul.mubr.msk.f32.gmra.mrb[74].mxu0 %vm73_vm4, %v61_v29  ;;  %3244 = vmatmul.mubr.msk.f32.gmra.mrb[74].mxu1 %vm73_vm4, %v2448_v30 }
  0xac   :  { %3079 = vmatprep.mubr.msk.f32.mxu0 %vm3682_vm0, %v3683_v6  ;;  %3246 = vmatprep.mubr.msk.f32.mxu1 %vm3682_vm0, %v3683_v6 }
  0xaf   :  { %3080 = vmatmul.mubr.msk.f32.gmra.mrb[76].mxu0 %vm73_vm4, %v62_v31  ;;  %3247 = vmatmul.mubr.msk.f32.gmra.mrb[76].mxu1 %vm73_vm4, %v2449_v32 }
  0xb0   :  { %3082 = vmatprep.mubr.msk.f32.mxu0 %vm3682_vm0, %v3683_v6  ;;  %3249 = vmatprep.mubr.msk.f32.mxu1 %vm3682_vm0, %v3683_v6 }
  0xb3   :  { %3083 = vmatmul.mubr.msk.f32.gmra.mrb[78].mxu0 %vm73_vm4, %v63_v33  ;;  %3250 = vmatmul.mubr.msk.f32.gmra.mrb[78].mxu1 %vm73_vm4, %v2450_v34  ;;  %v2519_v33 = vld [vmem:[%s5586_s0 + $0x358] sm:$0xff]  ;;  %v2618_v34 = vld [vmem:[%s5586_s0 + $0x4e0] sm:$0xff] }
  0xb4   :  { %3085 = vmatprep.mubr.msk.f32.mxu0 %vm3682_vm0, %v3683_v6  ;;  %3252 = vmatprep.mubr.msk.f32.mxu1 %vm3682_vm0, %v3683_v6 }
  0xb7   :  { %3086 = vmatmul.mubr.msk.f32.gmra.mrb[80].mxu0 %vm73_vm4, %v64_v35  ;;  %3253 = vmatmul.mubr.msk.f32.gmra.mrb[80].mxu1 %vm73_vm4, %v2451_v36 }
  0xb8   :  { %3088 = vmatprep.mubr.msk.f32.mxu0 %vm3682_vm0, %v3683_v6  ;;  %3255 = vmatprep.mubr.msk.f32.mxu1 %vm3682_vm0, %v3683_v6 }
  0xbb   :  { %3089 = vmatmul.mubr.msk.f32.gmra.mrb[82].mxu0 %vm73_vm4, %v65_v37  ;;  %3256 = vmatmul.mubr.msk.f32.gmra.mrb[82].mxu1 %vm73_vm4, %v2452_v38  ;;  %v2540_v38 = vld [vmem:[%s5586_s0 + $0x400] sm:$0xff] }
  0xbc   :  { %3091 = vmatprep.mubr.msk.f32.mxu0 %vm3682_vm0, %v3683_v6  ;;  %3258 = vmatprep.mubr.msk.f32.mxu1 %vm3682_vm0, %v3683_v6 }
  0xbf   :  { %3092 = vmatmul.mubr.msk.f32.gmra.mrb[84].mxu0 %vm73_vm4, %v66_v39  ;;  %3259 = vmatmul.mubr.msk.f32.gmra.mrb[84].mxu1 %vm73_vm4, %v2453_v40  ;;  %v2520_v40 = vld [vmem:[%s5586_s0 + $0x360] sm:$0xff] }
  0xc0   :  { %3094 = vmatprep.mubr.msk.f32.mxu0 %vm3682_vm0, %v3683_v6  ;;  %3261 = vmatprep.mubr.msk.f32.mxu1 %vm3682_vm0, %v3683_v6 }
  0xc3   :  { %3095 = vmatmul.mubr.msk.f32.gmra.mrb[86].mxu0 %vm73_vm4, %v67_v41  ;;  %3262 = vmatmul.mubr.msk.f32.gmra.mrb[86].mxu1 %vm73_vm4, %v2454_v42  ;;  %v2619_v41 = vld [vmem:[%s5586_s0 + $0x4e8] sm:$0xff] }
  0xc4   :  { %3097 = vmatprep.mubr.msk.f32.mxu0 %vm3682_vm0, %v3683_v6  ;;  %3264 = vmatprep.mubr.msk.f32.mxu1 %vm3682_vm0, %v3683_v6 }
  0xc7   :  { %3098 = vmatmul.mubr.msk.f32.gmra.mrb[88].mxu0 %vm73_vm4, %v68_v43  ;;  %3265 = vmatmul.mubr.msk.f32.gmra.mrb[88].mxu1 %vm73_vm4, %v2455_v44 }
  0xc8   :  { %3100 = vmatprep.mubr.msk.f32.mxu0 %vm3682_vm0, %v3683_v6  ;;  %3267 = vmatprep.mubr.msk.f32.mxu1 %vm3682_vm0, %v3683_v6 }
  0xcb   :  { %3101 = vmatmul.mubr.msk.f32.gmra.mrb[90].mxu0 %vm73_vm4, %v69_v45  ;;  %3268 = vmatmul.mubr.msk.f32.gmra.mrb[90].mxu1 %vm73_vm4, %v2456_v46 }
  0xcc   :  { %3103 = vmatprep.mubr.msk.f32.mxu0 %vm3682_vm0, %v3683_v6  ;;  %3270 = vmatprep.mubr.msk.f32.mxu1 %vm3682_vm0, %v3683_v6 }
  0xcf   :  { %3104 = vmatmul.mubr.msk.f32.gmra.mrb[92].mxu0 %vm73_vm4, %v70_v47  ;;  %3271 = vmatmul.mubr.msk.f32.gmra.mrb[92].mxu1 %vm73_vm4, %v2457_v48  ;;  %v2521_v47 = vld [vmem:[%s5586_s0 + $0x368] sm:$0xff]  ;;  %v2620_v48 = vld [vmem:[%s5586_s0 + $0x4f0] sm:$0xff] }
  0xd0   :  { %3106 = vmatprep.mubr.msk.f32.mxu0 %vm3682_vm0, %v3683_v6  ;;  %3273 = vmatprep.mubr.msk.f32.mxu1 %vm3682_vm0, %v3683_v6 }
  0xd3   :  { %3107 = vmatmul.mubr.msk.f32.gmra.mrb[94].mxu0 %vm73_vm4, %v71_v49  ;;  %3274 = vmatmul.mubr.msk.f32.gmra.mrb[94].mxu1 %vm73_vm4, %v2458_v50 }
  0xd4   :  { %3109 = vmatprep.mubr.msk.f32.mxu0 %vm3682_vm0, %v3683_v6  ;;  %3276 = vmatprep.mubr.msk.f32.mxu1 %vm3682_vm0, %v3683_v6 }
  0xd7   :  { %3110 = vmatmul.mubr.msk.f32.gmra.mrb[96].mxu0 %vm73_vm4, %v72_v51  ;;  %3277 = vmatmul.mubr.msk.f32.gmra.mrb[96].mxu1 %vm73_vm4, %v2459_v52  ;;  %v2539_v52 = vld [vmem:[%s5586_s0 + $0x3f8] sm:$0xff] }
  0xd8   :  { %3299 = vmatprep.mubr.msk.f32.mxu0 %vm3682_vm0, %v3683_v6  ;;  %3466 = vmatprep.mubr.msk.f32.mxu1 %vm3682_vm0, %v3683_v6 }
  0xdb   :  { %3300 = vmatmul.mubr.msk.f32.vlgmr.msra.gmra.mrb[98].mxu0 %vm73_vm4, %v2510_v53  ;;  %3467 = vmatmul.mubr.msk.f32.vlgmr.msra.gmra.mrb[98].mxu1 %vm73_vm4, %v2609_v54  ;;  %v2522_v54 = vld [vmem:[%s5586_s0 + $0x370] sm:$0xff] }
  0xdc   :  { %3302 = vmatprep.mubr.msk.f32.mxu0 %vm3682_vm0, %v3683_v6  ;;  %3469 = vmatprep.mubr.msk.f32.mxu1 %vm3682_vm0, %v3683_v6 }
  0xdf   :  { %3303 = vmatmul.mubr.msk.f32.gmra.mrb[100].mxu0 %vm73_vm4, %v2511_v55  ;;  %3470 = vmatmul.mubr.msk.f32.gmra.mrb[100].mxu1 %vm73_vm4, %v2610_v56  ;;  %v2621_v55 = vld [vmem:[%s5586_s0 + $0x4f8] sm:$0xff] }
  0xe0   :  { %3305 = vmatprep.mubr.msk.f32.mxu0 %vm3682_vm0, %v3683_v6  ;;  %3472 = vmatprep.mubr.msk.f32.mxu1 %vm3682_vm0, %v3683_v6 }
  0xe3   :  { %3306 = vmatmul.mubr.msk.f32.gmra.mrb[102].mxu0 %vm73_vm4, %v2512_v57  ;;  %3473 = vmatmul.mubr.msk.f32.gmra.mrb[102].mxu1 %vm73_vm4, %v2611_v58 }
  0xe4   :  { %3308 = vmatprep.mubr.msk.f32.mxu0 %vm3682_vm0, %v3683_v6  ;;  %3475 = vmatprep.mubr.msk.f32.mxu1 %vm3682_vm0, %v3683_v6 }
  0xe7   :  { %3309 = vmatmul.mubr.msk.f32.gmra.mrb[104].mxu0 %vm73_vm4, %v2513_v59  ;;  %3476 = vmatmul.mubr.msk.f32.gmra.mrb[104].mxu1 %vm73_vm4, %v2612_v60 }
  0xe8   :  { %3311 = vmatprep.mubr.msk.f32.mxu0 %vm3682_vm0, %v3683_v6  ;;  %3478 = vmatprep.mubr.msk.f32.mxu1 %vm3682_vm0, %v3683_v6 }
  0xea   :  { %v4413_v63 = vpop.f32.mrb[0].mxu0  ;;  %v4415_v0 = vpop.f32.mrb[0].mxu1 }
  0xeb   :  { %v2967_v1 = vpop.f32.mrb[1].mxu0  ;;  %3312 = vmatmul.mubr.msk.f32.gmra.mrb[106].mxu0 %vm73_vm4, %v2514_v61  ;;  %v3134_v3 = vpop.f32.mrb[1].mxu1  ;;  %3479 = vmatmul.mubr.msk.f32.gmra.mrb[106].mxu1 %vm73_vm4, %v2613_v62  ;;  %v2523_v61 = vld [vmem:[%s5586_s0 + $0x378] sm:$0xff]  ;;  %v2622_v62 = vld [vmem:[%s5586_s0 + $0x500] sm:$0xff] }
  0xec   :  { %3314 = vmatprep.mubr.msk.f32.mxu0 %vm3682_vm0, %v3683_v6  ;;  %3481 = vmatprep.mubr.msk.f32.mxu1 %vm3682_vm0, %v3683_v6 }
  0xee   :  { %v4431_v7 = vpop.f32.mrb[2].mxu0  ;;  %v4433_v8 = vpop.f32.mrb[2].mxu1 }
  0xef   :  { %v2970_v9 = vpop.f32.mrb[3].mxu0  ;;  %3315 = vmatmul.mubr.msk.f32.gmra.mrb[108].mxu0 %vm73_vm4, %v2515_v4  ;;  %v3137_v11 = vpop.f32.mrb[3].mxu1  ;;  %3482 = vmatmul.mubr.msk.f32.gmra.mrb[108].mxu1 %vm73_vm4, %v2614_v5  ;;  %v2538_v5 = vld [vmem:[%s5586_s0 + $0x3f0] sm:$0xff] }
  0xf0   :  { %3317 = vmatprep.mubr.msk.f32.mxu0 %vm3682_vm0, %v3683_v6  ;;  %3484 = vmatprep.mubr.msk.f32.mxu1 %vm3682_vm0, %v3683_v6  ;;  %v2524_v11 = vld [vmem:[%s5586_s0 + $0x380] sm:$0xff] }
  0xf2   :  { %v4449_v14 = vpop.f32.mrb[4].mxu0  ;;  %v4451_v15 = vpop.f32.mrb[4].mxu1 }
  0xf3   :  { %v2973_v16 = vpop.f32.mrb[5].mxu0  ;;  %3318 = vmatmul.mubr.msk.f32.gmra.mrb[110].mxu0 %vm73_vm4, %v2516_v12  ;;  %v3140_v18 = vpop.f32.mrb[5].mxu1  ;;  %3485 = vmatmul.mubr.msk.f32.gmra.mrb[110].mxu1 %vm73_vm4, %v2615_v13  ;;  %v2623_v12 = vld [vmem:[%s5586_s0 + $0x508] sm:$0xff] }
  0xf4   :  { %3320 = vmatprep.mubr.msk.f32.mxu0 %vm3682_vm0, %v3683_v6  ;;  %3487 = vmatprep.mubr.msk.f32.mxu1 %vm3682_vm0, %v3683_v6 }
  0xf6   :  { %v4467_v21 = vpop.f32.mrb[6].mxu0  ;;  %v4469_v22 = vpop.f32.mrb[6].mxu1 }
  0xf7   :  { %v2976_v23 = vpop.f32.mrb[7].mxu0  ;;  %3321 = vmatmul.mubr.msk.f32.gmra.mrb[112].mxu0 %vm73_vm4, %v2517_v19  ;;  %v3143_v25 = vpop.f32.mrb[7].mxu1  ;;  %3488 = vmatmul.mubr.msk.f32.gmra.mrb[112].mxu1 %vm73_vm4, %v2616_v20 }
  0xf8   :  { %3323 = vmatprep.mubr.msk.f32.mxu0 %vm3682_vm0, %v3683_v6  ;;  %3490 = vmatprep.mubr.msk.f32.mxu1 %vm3682_vm0, %v3683_v6  ;;  %v2525_v23 = vld [vmem:[%s5586_s0 + $0x388] sm:$0xff]  ;;  %v2624_v25 = vld [vmem:[%s5586_s0 + $0x510] sm:$0xff] }
  0xfa   :  { %v4485_v28 = vpop.f32.mrb[8].mxu0  ;;  %v4487_v29 = vpop.f32.mrb[8].mxu1 }
  0xfb   :  { %v2979_v30 = vpop.f32.mrb[9].mxu0  ;;  %3324 = vmatmul.mubr.msk.f32.gmra.mrb[114].mxu0 %vm73_vm4, %v2518_v26  ;;  %v3146_v32 = vpop.f32.mrb[9].mxu1  ;;  %3491 = vmatmul.mubr.msk.f32.gmra.mrb[114].mxu1 %vm73_vm4, %v2617_v27 }
  0xfc   :  { %3326 = vmatprep.mubr.msk.f32.mxu0 %vm3682_vm0, %v3683_v6  ;;  %3493 = vmatprep.mubr.msk.f32.mxu1 %vm3682_vm0, %v3683_v6  ;;  %v2537_v32 = vld [vmem:[%s5586_s0 + $0x3e8] sm:$0xff] }
  0xfe   :  { %v4503_v35 = vpop.f32.mrb[10].mxu0  ;;  %v4505_v36 = vpop.f32.mrb[10].mxu1 }
  0xff   :  { %v2982_v37 = vpop.f32.mrb[11].mxu0  ;;  %3327 = vmatmul.mubr.msk.f32.gmra.mrb[116].mxu0 %vm73_vm4, %v2519_v33  ;;  %v3149_v39 = vpop.f32.mrb[11].mxu1  ;;  %3494 = vmatmul.mubr.msk.f32.gmra.mrb[116].mxu1 %vm73_vm4, %v2618_v34  ;;  %v2526_v34 = vld [vmem:[%s5586_s0 + $0x390] sm:$0xff] }
 0x100   :  { %3329 = vmatprep.mubr.msk.f32.mxu0 %vm3682_vm0, %v3683_v6  ;;  %3496 = vmatprep.mubr.msk.f32.mxu1 %vm3682_vm0, %v3683_v6  ;;  %v2625_v37 = vld [vmem:[%s5586_s0 + $0x518] sm:$0xff] }
 0x102   :  { %v4521_v42 = vpop.f32.mrb[12].mxu0  ;;  %v4523_v43 = vpop.f32.mrb[12].mxu1 }
 0x103   :  { %v2985_v44 = vpop.f32.mrb[13].mxu0  ;;  %3330 = vmatmul.mubr.msk.f32.gmra.mrb[118].mxu0 %vm73_vm4, %v2520_v40  ;;  %v3152_v46 = vpop.f32.mrb[13].mxu1  ;;  %3497 = vmatmul.mubr.msk.f32.gmra.mrb[118].mxu1 %vm73_vm4, %v2619_v41 }
 0x104   :  { %3332 = vmatprep.mubr.msk.f32.mxu0 %vm3682_vm0, %v3683_v6  ;;  %3499 = vmatprep.mubr.msk.f32.mxu1 %vm3682_vm0, %v3683_v6 }
 0x106   :  { %v4539_v49 = vpop.f32.mrb[14].mxu0  ;;  %v4541_v50 = vpop.f32.mrb[14].mxu1 }
 0x107   :  { %v2988_v51 = vpop.f32.mrb[15].mxu0  ;;  %3333 = vmatmul.mubr.msk.f32.gmra.mrb[120].mxu0 %vm73_vm4, %v2521_v47  ;;  %v3155_v53 = vpop.f32.mrb[15].mxu1  ;;  %3500 = vmatmul.mubr.msk.f32.gmra.mrb[120].mxu1 %vm73_vm4, %v2620_v48  ;;  %v2527_v47 = vld [vmem:[%s5586_s0 + $0x398] sm:$0xff]  ;;  %v2626_v48 = vld [vmem:[%s5586_s0 + $0x520] sm:$0xff] }
 0x108   :  { %3335 = vmatprep.mubr.msk.f32.mxu0 %vm3682_vm0, %v3683_v6  ;;  %3502 = vmatprep.mubr.msk.f32.mxu1 %vm3682_vm0, %v3683_v6 }
 0x10a   :  { %v4557_v56 = vpop.f32.mrb[16].mxu0  ;;  %v4559_v57 = vpop.f32.mrb[16].mxu1 }
 0x10b   :  { %v2991_v58 = vpop.f32.mrb[17].mxu0  ;;  %3336 = vmatmul.mubr.msk.f32.gmra.mrb[122].mxu0 %vm73_vm4, %v2522_v54  ;;  %v3158_v60 = vpop.f32.mrb[17].mxu1  ;;  %3503 = vmatmul.mubr.msk.f32.gmra.mrb[122].mxu1 %vm73_vm4, %v2621_v55  ;;  %v2536_v55 = vld [vmem:[%s5586_s0 + $0x3e0] sm:$0xff] }
 0x10c   :  { %3338 = vmatprep.mubr.msk.f32.mxu0 %vm3682_vm0, %v3683_v6  ;;  %3505 = vmatprep.mubr.msk.f32.mxu1 %vm3682_vm0, %v3683_v6  ;;  %v2528_v60 = vld [vmem:[%s5586_s0 + $0x3a0] sm:$0xff] }
 0x10e   :  { %v4575_v1 = vpop.f32.mrb[18].mxu0  ;;  %v4577_v3 = vpop.f32.mrb[18].mxu1 }
 0x10f   :  { %v2994_v4 = vpop.f32.mrb[19].mxu0  ;;  %3339 = vmatmul.mubr.msk.f32.gmra.mrb[124].mxu0 %vm73_vm4, %v2523_v61  ;;  %v3161_v9 = vpop.f32.mrb[19].mxu1  ;;  %3506 = vmatmul.mubr.msk.f32.gmra.mrb[124].mxu1 %vm73_vm4, %v2622_v62  ;;  %v2627_v61 = vld [vmem:[%s5586_s0 + $0x528] sm:$0xff] }
 0x110   :  { %3341 = vmatprep.mubr.msk.f32.mxu0 %vm3682_vm0, %v3683_v6  ;;  %3508 = vmatprep.mubr.msk.f32.mxu1 %vm3682_vm0, %v3683_v6 }
 0x112   :  { %v4593_v13 = vpop.f32.mrb[20].mxu0  ;;  %v4595_v16 = vpop.f32.mrb[20].mxu1 }
 0x113   :  { %v2997_v18 = vpop.f32.mrb[21].mxu0  ;;  %3342 = vmatmul.mubr.msk.f32.gmra.mrb[126].mxu0 %vm73_vm4, %v2524_v11  ;;  %v3164_v20 = vpop.f32.mrb[21].mxu1  ;;  %3509 = vmatmul.mubr.msk.f32.gmra.mrb[126].mxu1 %vm73_vm4, %v2623_v12 }
 0x114   :  { %3344 = vmatprep.mubr.msk.f32.mxu0 %vm3682_vm0, %v3683_v6  ;;  %3511 = vmatprep.mubr.msk.f32.mxu1 %vm3682_vm0, %v3683_v6  ;;  %v2529_v18 = vld [vmem:[%s5586_s0 + $0x3a8] sm:$0xff]  ;;  %v2628_v20 = vld [vmem:[%s5586_s0 + $0x530] sm:$0xff] }
 0x116   :  { %v4611_v26 = vpop.f32.mrb[22].mxu0  ;;  %v4613_v27 = vpop.f32.mrb[22].mxu1 }
 0x117   :  { %v3000_v30 = vpop.f32.mrb[23].mxu0  ;;  %3345 = vmatmul.mubr.msk.f32.gmra.mrb[128].mxu0 %vm73_vm4, %v2525_v23  ;;  %v3167_v33 = vpop.f32.mrb[23].mxu1  ;;  %3512 = vmatmul.mubr.msk.f32.gmra.mrb[128].mxu1 %vm73_vm4, %v2624_v25 }
 0x118   :  { %3347 = vmatprep.mubr.msk.f32.mxu0 %vm3682_vm0, %v3683_v6  ;;  %3514 = vmatprep.mubr.msk.f32.mxu1 %vm3682_vm0, %v3683_v6  ;;  %v2535_v33 = vld [vmem:[%s5586_s0 + $0x3d8] sm:$0xff] }
 0x11a   :  { %v4629_v39 = vpop.f32.mrb[24].mxu0  ;;  %v4631_v40 = vpop.f32.mrb[24].mxu1 }
 0x11b   :  { %v3003_v41 = vpop.f32.mrb[25].mxu0  ;;  %3348 = vmatmul.mubr.msk.f32.gmra.mrb[130].mxu0 %vm73_vm4, %v2526_v34  ;;  %v3170_v46 = vpop.f32.mrb[25].mxu1  ;;  %3515 = vmatmul.mubr.msk.f32.gmra.mrb[130].mxu1 %vm73_vm4, %v2625_v37  ;;  %v2530_v37 = vld [vmem:[%s5586_s0 + $0x3b0] sm:$0xff] }
 0x11c   :  { %3350 = vmatprep.mubr.msk.f32.mxu0 %vm3682_vm0, %v3683_v6  ;;  %3517 = vmatprep.mubr.msk.f32.mxu1 %vm3682_vm0, %v3683_v6  ;;  %v2629_v41 = vld [vmem:[%s5586_s0 + $0x538] sm:$0xff] }
 0x11e   :  { %v4647_v51 = vpop.f32.mrb[26].mxu0  ;;  %v4649_v53 = vpop.f32.mrb[26].mxu1 }
 0x11f   :  { %v3006_v54 = vpop.f32.mrb[27].mxu0  ;;  %3351 = vmatmul.mubr.msk.f32.gmra.mrb[132].mxu0 %vm73_vm4, %v2527_v47  ;;  %v3173_v58 = vpop.f32.mrb[27].mxu1  ;;  %3518 = vmatmul.mubr.msk.f32.gmra.mrb[132].mxu1 %vm73_vm4, %v2626_v48 }
 0x120   :  { %3353 = vmatprep.mubr.msk.f32.mxu0 %vm3682_vm0, %v3683_v6  ;;  %3520 = vmatprep.mubr.msk.f32.mxu1 %vm3682_vm0, %v3683_v6 }
 0x122   :  { %v4665_v62 = vpop.f32.mrb[28].mxu0  ;;  %v4667_v4 = vpop.f32.mrb[28].mxu1 }
 0x123   :  { %v3009_v9 = vpop.f32.mrb[29].mxu0  ;;  %3354 = vmatmul.mubr.msk.f32.gmra.mrb[134].mxu0 %vm73_vm4, %v2528_v60  ;;  %v3176_v12 = vpop.f32.mrb[29].mxu1  ;;  %3521 = vmatmul.mubr.msk.f32.gmra.mrb[134].mxu1 %vm73_vm4, %v2627_v61  ;;  %v2531_v60 = vld [vmem:[%s5586_s0 + $0x3b8] sm:$0xff]  ;;  %v2630_v61 = vld [vmem:[%s5586_s0 + $0x540] sm:$0xff] }
 0x124   :  { %3356 = vmatprep.mubr.msk.f32.mxu0 %vm3682_vm0, %v3683_v6  ;;  %3523 = vmatprep.mubr.msk.f32.mxu1 %vm3682_vm0, %v3683_v6 }
 0x126   :  { %v4683_v23 = vpop.f32.mrb[30].mxu0  ;;  %v4685_v25 = vpop.f32.mrb[30].mxu1 }
 0x127   :  { %v3012_v30 = vpop.f32.mrb[31].mxu0  ;;  %3357 = vmatmul.mubr.msk.f32.gmra.mrb[136].mxu0 %vm73_vm4, %v2529_v18  ;;  %v3179_v34 = vpop.f32.mrb[31].mxu1  ;;  %3524 = vmatmul.mubr.msk.f32.gmra.mrb[136].mxu1 %vm73_vm4, %v2628_v20  ;;  %v2534_v20 = vld [vmem:[%s5586_s0 + $0x3d0] sm:$0xff] }
 0x128   :  { %3359 = vmatprep.mubr.msk.f32.mxu0 %vm3682_vm0, %v3683_v6  ;;  %3526 = vmatprep.mubr.msk.f32.mxu1 %vm3682_vm0, %v3683_v6  ;;  %v2532_v34 = vld [vmem:[%s5586_s0 + $0x3c0] sm:$0xff] }
 0x12a   :  { %v4701_v46 = vpop.f32.mrb[32].mxu0  ;;  %v4703_v47 = vpop.f32.mrb[32].mxu1 }
 0x12b   :  { %v3015_v48 = vpop.f32.mrb[33].mxu0  ;;  %3360 = vmatmul.mubr.msk.f32.gmra.mrb[138].mxu0 %vm73_vm4, %v2530_v37  ;;  %v3182_v58 = vpop.f32.mrb[33].mxu1  ;;  %3527 = vmatmul.mubr.msk.f32.gmra.mrb[138].mxu1 %vm73_vm4, %v2629_v41  ;;  %v2631_v37 = vld [vmem:[%s5586_s0 + $0x548] sm:$0xff] }
 0x12c   :  { %3362 = vmatprep.mubr.msk.f32.mxu0 %vm3682_vm0, %v3683_v6  ;;  %3529 = vmatprep.mubr.msk.f32.mxu1 %vm3682_vm0, %v3683_v6 }
 0x12e   :  { %v4719_v9 = vpop.f32.mrb[34].mxu0  ;;  %v4721_v12 = vpop.f32.mrb[34].mxu1 }
 0x12f   :  { %v3018_v18 = vpop.f32.mrb[35].mxu0  ;;  %3363 = vmatmul.mubr.msk.f32.gmra.mrb[140].mxu0 %vm73_vm4, %v2531_v60  ;;  %v3185_v30 = vpop.f32.mrb[35].mxu1  ;;  %3530 = vmatmul.mubr.msk.f32.gmra.mrb[140].mxu1 %vm73_vm4, %v2630_v61 }
 0x130   :  { %3365 = vmatprep.mubr.msk.f32.mxu0 %vm3682_vm0, %v3683_v6  ;;  %3532 = vmatprep.mubr.msk.f32.mxu1 %vm3682_vm0, %v3683_v6  ;;  %v2533_v18 = vld [vmem:[%s5586_s0 + $0x3c8] sm:$0xff]  ;;  %v2632_v30 = vld [vmem:[%s5586_s0 + $0x550] sm:$0xff] }
 0x132   :  { %v4737_v41 = vpop.f32.mrb[36].mxu0  ;;  %v4739_v48 = vpop.f32.mrb[36].mxu1 }
 0x133   :  { %v3021_v58 = vpop.f32.mrb[37].mxu0  ;;  %3366 = vmatmul.mubr.msk.f32.gmra.mrb[142].mxu0 %vm73_vm4, %v2532_v34  ;;  %v3188_v61 = vpop.f32.mrb[37].mxu1  ;;  %3533 = vmatmul.mubr.msk.f32.gmra.mrb[142].mxu1 %vm73_vm4, %v2631_v37 }
 0x134   :  { %3368 = vmatprep.mubr.msk.f32.mxu0 %vm3682_vm0, %v3683_v6  ;;  %3535 = vmatprep.mubr.msk.f32.mxu1 %vm3682_vm0, %v3683_v6 }
 0x136   :  { %v4755_v58 = vpop.f32.mrb[38].mxu0  ;;  %v4757_v34 = vpop.f32.mrb[38].mxu1 }
 0x137   :  { %v3024_v61 = vpop.f32.mrb[39].mxu0  ;;  %3369 = vmatmul.mubr.msk.f32.gmra.mrb[144].mxu0 %vm73_vm4, %v2533_v18  ;;  %v3191_v60 = vpop.f32.mrb[39].mxu1  ;;  %3536 = vmatmul.mubr.msk.f32.gmra.mrb[144].mxu1 %vm73_vm4, %v2632_v30 }
 0x138   :  { %3371 = vmatprep.mubr.msk.f32.mxu0 %vm3682_vm0, %v3683_v6  ;;  %3538 = vmatprep.mubr.msk.f32.mxu1 %vm3682_vm0, %v3683_v6  ;;  %v2633_v61 = vld [vmem:[%s5586_s0 + $0x558] sm:$0xff] }
 0x13a   :  { %v4773_v37 = vpop.f32.mrb[40].mxu0  ;;  %v4775_v18 = vpop.f32.mrb[40].mxu1 }
 0x13b   :  { %v3027_v60 = vpop.f32.mrb[41].mxu0  ;;  %3372 = vmatmul.mubr.msk.f32.gmra.mrb[146].mxu0 %vm73_vm4, %v2534_v20  ;;  %v3194_v54 = vpop.f32.mrb[41].mxu1  ;;  %3539 = vmatmul.mubr.msk.f32.gmra.mrb[146].mxu1 %vm73_vm4, %v2633_v61 }
 0x13c   :  { %3374 = vmatprep.mubr.msk.f32.mxu0 %vm3682_vm0, %v3683_v6  ;;  %3541 = vmatprep.mubr.msk.f32.mxu1 %vm3682_vm0, %v3683_v6  ;;  %v2634_v60 = vld [vmem:[%s5586_s0 + $0x560] sm:$0xff] }
 0x13e   :  { %v4791_v30 = vpop.f32.mrb[42].mxu0  ;;  %v4793_v20 = vpop.f32.mrb[42].mxu1 }
 0x13f   :  { %v3030_v54 = vpop.f32.mrb[43].mxu0  ;;  %3375 = vmatmul.mubr.msk.f32.gmra.mrb[148].mxu0 %vm73_vm4, %v2535_v33  ;;  %v3197_v11 = vpop.f32.mrb[43].mxu1  ;;  %3542 = vmatmul.mubr.msk.f32.gmra.mrb[148].mxu1 %vm73_vm4, %v2634_v60 }
 0x140   :  { %3377 = vmatprep.mubr.msk.f32.mxu0 %vm3682_vm0, %v3683_v6  ;;  %3544 = vmatprep.mubr.msk.f32.mxu1 %vm3682_vm0, %v3683_v6  ;;  %v2635_v54 = vld [vmem:[%s5586_s0 + $0x568] sm:$0xff] }
 0x142   :  { %v4809_v61 = vpop.f32.mrb[44].mxu0  ;;  %v4811_v33 = vpop.f32.mrb[44].mxu1 }
 0x143   :  { %v3033_v11 = vpop.f32.mrb[45].mxu0  ;;  %3378 = vmatmul.mubr.msk.f32.gmra.mrb[150].mxu0 %vm73_vm4, %v2536_v55  ;;  %v3200_v44 = vpop.f32.mrb[45].mxu1  ;;  %3545 = vmatmul.mubr.msk.f32.gmra.mrb[150].mxu1 %vm73_vm4, %v2635_v54 }
 0x144   :  { %3380 = vmatprep.mubr.msk.f32.mxu0 %vm3682_vm0, %v3683_v6  ;;  %3547 = vmatprep.mubr.msk.f32.mxu1 %vm3682_vm0, %v3683_v6  ;;  %v2636_v11 = vld [vmem:[%s5586_s0 + $0x570] sm:$0xff] }
 0x146   :  { %v4827_v60 = vpop.f32.mrb[46].mxu0  ;;  %v4829_v55 = vpop.f32.mrb[46].mxu1 }
 0x147   :  { %v3036_v44 = vpop.f32.mrb[47].mxu0  ;;  %3381 = vmatmul.mubr.msk.f32.gmra.mrb[152].mxu0 %vm73_vm4, %v2537_v32  ;;  %v3203_v19 = vpop.f32.mrb[47].mxu1  ;;  %3548 = vmatmul.mubr.msk.f32.gmra.mrb[152].mxu1 %vm73_vm4, %v2636_v11 }
 0x148   :  { %3383 = vmatprep.mubr.msk.f32.mxu0 %vm3682_vm0, %v3683_v6  ;;  %3550 = vmatprep.mubr.msk.f32.mxu1 %vm3682_vm0, %v3683_v6  ;;  %v2637_v44 = vld [vmem:[%s5586_s0 + $0x578] sm:$0xff] }
 0x14a   :  { %v4845_v54 = vpop.f32.mrb[48].mxu0  ;;  %v4847_v32 = vpop.f32.mrb[48].mxu1 }
 0x14b   :  { %5640 = vst [vmem:[#allocation2_spill] sm:$0xff] %v4847_v32  ;;  %v3039_v19 = vpop.f32.mrb[49].mxu0  ;;  %3384 = vmatmul.mubr.msk.f32.gmra.mrb[154].mxu0 %vm73_vm4, %v2538_v5  ;;  %v3206_v59 = vpop.f32.mrb[49].mxu1  ;;  %3551 = vmatmul.mubr.msk.f32.gmra.mrb[154].mxu1 %vm73_vm4, %v2637_v44 }
 0x14c   :  { %3386 = vmatprep.mubr.msk.f32.mxu0 %vm3682_vm0, %v3683_v6  ;;  %3553 = vmatprep.mubr.msk.f32.mxu1 %vm3682_vm0, %v3683_v6  ;;  %v2638_v19 = vld [vmem:[%s5586_s0 + $0x580] sm:$0xff] }
 0x14e   :  { %v4863_v11 = vpop.f32.mrb[50].mxu0  ;;  %v4865_v5 = vpop.f32.mrb[50].mxu1 }
 0x14f   :  { %5641 = vst [vmem:[#allocation3_spill] sm:$0xff] %v4863_v11  ;;  %5642 = vst [vmem:[#allocation4_spill] sm:$0xff] %v4865_v5  ;;  %v3042_v59 = vpop.f32.mrb[51].mxu0  ;;  %3387 = vmatmul.mubr.msk.f32.gmra.mrb[156].mxu0 %vm73_vm4, %v2539_v52  ;;  %v3209_v45 = vpop.f32.mrb[51].mxu1  ;;  %3554 = vmatmul.mubr.msk.f32.gmra.mrb[156].mxu1 %vm73_vm4, %v2638_v19 }
 0x150   :  { %3389 = vmatprep.mubr.msk.f32.mxu0 %vm3682_vm0, %v3683_v6  ;;  %3556 = vmatprep.mubr.msk.f32.mxu1 %vm3682_vm0, %v3683_v6  ;;  %v2639_v59 = vld [vmem:[%s5586_s0 + $0x588] sm:$0xff] }
 0x152   :  { %v4881_v44 = vpop.f32.mrb[52].mxu0  ;;  %v4883_v52 = vpop.f32.mrb[52].mxu1 }
 0x153   :  { %5643 = vst [vmem:[#allocation5_spill] sm:$0xff] %v4881_v44  ;;  %5644 = vst [vmem:[#allocation6_spill] sm:$0xff] %v4883_v52  ;;  %v3045_v45 = vpop.f32.mrb[53].mxu0  ;;  %3390 = vmatmul.mubr.msk.f32.gmra.mrb[158].mxu0 %vm73_vm4, %v2540_v38  ;;  %v3212_v31 = vpop.f32.mrb[53].mxu1  ;;  %3557 = vmatmul.mubr.msk.f32.gmra.mrb[158].mxu1 %vm73_vm4, %v2639_v59 }
 0x154   :  { %3392 = vmatprep.mubr.msk.f32.mxu0 %vm3682_vm0, %v3683_v6  ;;  %3559 = vmatprep.mubr.msk.f32.mxu1 %vm3682_vm0, %v3683_v6  ;;  %v2640_v45 = vld [vmem:[%s5586_s0 + $0x590] sm:$0xff] }
 0x156   :  { %v4899_v19 = vpop.f32.mrb[54].mxu0  ;;  %v4901_v38 = vpop.f32.mrb[54].mxu1 }
 0x157   :  { %5645 = vst [vmem:[#allocation7_spill] sm:$0xff] %v4899_v19  ;;  %5646 = vst [vmem:[#allocation8_spill] sm:$0xff] %v4901_v38  ;;  %v3048_v31 = vpop.f32.mrb[55].mxu0  ;;  %3393 = vmatmul.mubr.msk.f32.gmra.mrb[160].mxu0 %vm73_vm4, %v2541_v24  ;;  %v3215_v17 = vpop.f32.mrb[55].mxu1  ;;  %3560 = vmatmul.mubr.msk.f32.gmra.mrb[160].mxu1 %vm73_vm4, %v2640_v45  ;;  %v2543_v38 = vld [vmem:[%s5586_s0 + $0x418] sm:$0xff] }
 0x158   :  { %3395 = vmatprep.mubr.msk.f32.mxu0 %vm3682_vm0, %v3683_v6  ;;  %3562 = vmatprep.mubr.msk.f32.mxu1 %vm3682_vm0, %v3683_v6  ;;  %v2641_v31 = vld [vmem:[%s5586_s0 + $0x598] sm:$0xff] }
 0x15a   :  { %v4917_v59 = vpop.f32.mrb[56].mxu0  ;;  %v4919_v24 = vpop.f32.mrb[56].mxu1 }
 0x15b   :  { %5647 = vst [vmem:[#allocation9_spill] sm:$0xff] %v4917_v59  ;;  %5648 = vst [vmem:[#allocation10_spill] sm:$0xff] %v4919_v24  ;;  %v3051_v17 = vpop.f32.mrb[57].mxu0  ;;  %3396 = vmatmul.mubr.msk.f32.gmra.mrb[162].mxu0 %vm73_vm4, %v2542_v10  ;;  %v3218_v2 = vpop.f32.mrb[57].mxu1  ;;  %3563 = vmatmul.mubr.msk.f32.gmra.mrb[162].mxu1 %vm73_vm4, %v2641_v31  ;;  %v2544_v59 = vld [vmem:[%s5586_s0 + $0x420] sm:$0xff] }
 0x15c   :  { %3398 = vmatprep.mubr.msk.f32.mxu0 %vm3682_vm0, %v3683_v6  ;;  %3565 = vmatprep.mubr.msk.f32.mxu1 %vm3682_vm0, %v3683_v6  ;;  %v2642_v17 = vld [vmem:[%s5586_s0 + $0x5a0] sm:$0xff] }
 0x15e   :  { %v4935_v45 = vpop.f32.mrb[58].mxu0  ;;  %v4937_v10 = vpop.f32.mrb[58].mxu1 }
 0x15f   :  { %5649 = vst [vmem:[#allocation11_spill] sm:$0xff] %v4935_v45  ;;  %5650 = vst [vmem:[#allocation12_spill] sm:$0xff] %v4937_v10  ;;  %v3054_v2 = vpop.f32.mrb[59].mxu0  ;;  %3399 = vmatmul.mubr.msk.f32.gmra.mrb[164].mxu0 %vm73_vm4, %v2543_v38  ;;  %v3221_v24 = vpop.f32.mrb[59].mxu1  ;;  %3566 = vmatmul.mubr.msk.f32.gmra.mrb[164].mxu1 %vm73_vm4, %v2642_v17  ;;  %v2545_v45 = vld [vmem:[%s5586_s0 + $0x428] sm:$0xff] }
 0x160   :  { %3401 = vmatprep.mubr.msk.f32.mxu0 %vm3682_vm0, %v3683_v6  ;;  %3568 = vmatprep.mubr.msk.f32.mxu1 %vm3682_vm0, %v3683_v6  ;;  %v2643_v2 = vld [vmem:[%s5586_s0 + $0x5a8] sm:$0xff] }
 0x162   :  { %v4953_v31 = vpop.f32.mrb[60].mxu0  ;;  %v4955_v38 = vpop.f32.mrb[60].mxu1 }
 0x163   :  { %5651 = vst [vmem:[#allocation13_spill] sm:$0xff] %v4953_v31  ;;  %5652 = vst [vmem:[#allocation14_spill] sm:$0xff] %v4955_v38  ;;  %v3057_v24 = vpop.f32.mrb[61].mxu0  ;;  %3402 = vmatmul.mubr.msk.f32.gmra.mrb[166].mxu0 %vm73_vm4, %v2544_v59  ;;  %v3224_v10 = vpop.f32.mrb[61].mxu1  ;;  %3569 = vmatmul.mubr.msk.f32.gmra.mrb[166].mxu1 %vm73_vm4, %v2643_v2  ;;  %v2546_v31 = vld [vmem:[%s5586_s0 + $0x430] sm:$0xff] }
 0x164   :  { %3404 = vmatprep.mubr.msk.f32.mxu0 %vm3682_vm0, %v3683_v6  ;;  %3571 = vmatprep.mubr.msk.f32.mxu1 %vm3682_vm0, %v3683_v6  ;;  %v2644_v24 = vld [vmem:[%s5586_s0 + $0x5b0] sm:$0xff] }
 0x166   :  { %v4971_v17 = vpop.f32.mrb[62].mxu0  ;;  %v4973_v59 = vpop.f32.mrb[62].mxu1 }
 0x167   :  { %5653 = vst [vmem:[#allocation15_spill] sm:$0xff] %v4971_v17  ;;  %5654 = vst [vmem:[#allocation16_spill] sm:$0xff] %v4973_v59  ;;  %v3060_v10 = vpop.f32.mrb[63].mxu0  ;;  %3405 = vmatmul.mubr.msk.f32.gmra.mrb[168].mxu0 %vm73_vm4, %v2545_v45  ;;  %v3227_v38 = vpop.f32.mrb[63].mxu1  ;;  %3572 = vmatmul.mubr.msk.f32.gmra.mrb[168].mxu1 %vm73_vm4, %v2644_v24  ;;  %v2547_v17 = vld [vmem:[%s5586_s0 + $0x438] sm:$0xff] }
 0x168   :  { %3407 = vmatprep.mubr.msk.f32.mxu0 %vm3682_vm0, %v3683_v6  ;;  %3574 = vmatprep.mubr.msk.f32.mxu1 %vm3682_vm0, %v3683_v6  ;;  %v2645_v10 = vld [vmem:[%s5586_s0 + $0x5b8] sm:$0xff] }
 0x16a   :  { %v4989_v2 = vpop.f32.mrb[64].mxu0  ;;  %v4991_v45 = vpop.f32.mrb[64].mxu1 }
 0x16b   :  { %5655 = vst [vmem:[#allocation17_spill] sm:$0xff] %v4989_v2  ;;  %5656 = vst [vmem:[#allocation18_spill] sm:$0xff] %v4991_v45  ;;  %v3063_v38 = vpop.f32.mrb[65].mxu0  ;;  %3408 = vmatmul.mubr.msk.f32.gmra.mrb[170].mxu0 %vm73_vm4, %v2546_v31  ;;  %v3230_v59 = vpop.f32.mrb[65].mxu1  ;;  %3575 = vmatmul.mubr.msk.f32.gmra.mrb[170].mxu1 %vm73_vm4, %v2645_v10  ;;  %v2548_v2 = vld [vmem:[%s5586_s0 + $0x440] sm:$0xff] }
 0x16c   :  { %3410 = vmatprep.mubr.msk.f32.mxu0 %vm3682_vm0, %v3683_v6  ;;  %3577 = vmatprep.mubr.msk.f32.mxu1 %vm3682_vm0, %v3683_v6  ;;  %v2646_v38 = vld [vmem:[%s5586_s0 + $0x5c0] sm:$0xff] }
 0x16e   :  { %v5007_v24 = vpop.f32.mrb[66].mxu0  ;;  %v5009_v31 = vpop.f32.mrb[66].mxu1 }
 0x16f   :  { %5657 = vst [vmem:[#allocation19_spill] sm:$0xff] %v5007_v24  ;;  %5658 = vst [vmem:[#allocation20_spill] sm:$0xff] %v5009_v31  ;;  %v3066_v59 = vpop.f32.mrb[67].mxu0  ;;  %3411 = vmatmul.mubr.msk.f32.gmra.mrb[172].mxu0 %vm73_vm4, %v2547_v17  ;;  %v3233_v45 = vpop.f32.mrb[67].mxu1  ;;  %3578 = vmatmul.mubr.msk.f32.gmra.mrb[172].mxu1 %vm73_vm4, %v2646_v38  ;;  %v2549_v24 = vld [vmem:[%s5586_s0 + $0x448] sm:$0xff] }
 0x170   :  { %3413 = vmatprep.mubr.msk.f32.mxu0 %vm3682_vm0, %v3683_v6  ;;  %3580 = vmatprep.mubr.msk.f32.mxu1 %vm3682_vm0, %v3683_v6  ;;  %v2647_v59 = vld [vmem:[%s5586_s0 + $0x5c8] sm:$0xff] }
 0x172   :  { %v5025_v10 = vpop.f32.mrb[68].mxu0  ;;  %v5027_v17 = vpop.f32.mrb[68].mxu1 }
 0x173   :  { %5659 = vst [vmem:[#allocation21_spill] sm:$0xff] %v5025_v10  ;;  %5660 = vst [vmem:[#allocation22_spill] sm:$0xff] %v5027_v17  ;;  %v3069_v45 = vpop.f32.mrb[69].mxu0  ;;  %3414 = vmatmul.mubr.msk.f32.gmra.mrb[174].mxu0 %vm73_vm4, %v2548_v2  ;;  %v3236_v31 = vpop.f32.mrb[69].mxu1  ;;  %3581 = vmatmul.mubr.msk.f32.gmra.mrb[174].mxu1 %vm73_vm4, %v2647_v59  ;;  %v2550_v10 = vld [vmem:[%s5586_s0 + $0x450] sm:$0xff] }
 0x174   :  { %3416 = vmatprep.mubr.msk.f32.mxu0 %vm3682_vm0, %v3683_v6  ;;  %3583 = vmatprep.mubr.msk.f32.mxu1 %vm3682_vm0, %v3683_v6  ;;  %v2648_v45 = vld [vmem:[%s5586_s0 + $0x5d0] sm:$0xff] }
 0x176   :  { %v5043_v38 = vpop.f32.mrb[70].mxu0  ;;  %v5045_v2 = vpop.f32.mrb[70].mxu1 }
 0x177   :  { %5661 = vst [vmem:[#allocation23_spill] sm:$0xff] %v5043_v38  ;;  %5662 = vst [vmem:[#allocation24_spill] sm:$0xff] %v5045_v2  ;;  %v3072_v31 = vpop.f32.mrb[71].mxu0  ;;  %3417 = vmatmul.mubr.msk.f32.gmra.mrb[176].mxu0 %vm73_vm4, %v2549_v24  ;;  %v3239_v17 = vpop.f32.mrb[71].mxu1  ;;  %3584 = vmatmul.mubr.msk.f32.gmra.mrb[176].mxu1 %vm73_vm4, %v2648_v45  ;;  %v2551_v38 = vld [vmem:[%s5586_s0 + $0x458] sm:$0xff] }
 0x178   :  { %3419 = vmatprep.mubr.msk.f32.mxu0 %vm3682_vm0, %v3683_v6  ;;  %3586 = vmatprep.mubr.msk.f32.mxu1 %vm3682_vm0, %v3683_v6  ;;  %v2649_v31 = vld [vmem:[%s5586_s0 + $0x5d8] sm:$0xff] }
 0x17a   :  { %v5061_v59 = vpop.f32.mrb[72].mxu0  ;;  %v5063_v24 = vpop.f32.mrb[72].mxu1 }
 0x17b   :  { %5663 = vst [vmem:[#allocation25_spill] sm:$0xff] %v5061_v59  ;;  %5664 = vst [vmem:[#allocation26_spill] sm:$0xff] %v5063_v24  ;;  %v3075_v17 = vpop.f32.mrb[73].mxu0  ;;  %3420 = vmatmul.mubr.msk.f32.gmra.mrb[178].mxu0 %vm73_vm4, %v2550_v10  ;;  %v3242_v2 = vpop.f32.mrb[73].mxu1  ;;  %3587 = vmatmul.mubr.msk.f32.gmra.mrb[178].mxu1 %vm73_vm4, %v2649_v31  ;;  %v2552_v59 = vld [vmem:[%s5586_s0 + $0x460] sm:$0xff] }
 0x17c   :  { %3422 = vmatprep.mubr.msk.f32.mxu0 %vm3682_vm0, %v3683_v6  ;;  %3589 = vmatprep.mubr.msk.f32.mxu1 %vm3682_vm0, %v3683_v6  ;;  %v2650_v17 = vld [vmem:[%s5586_s0 + $0x5e0] sm:$0xff] }
 0x17e   :  { %v5079_v45 = vpop.f32.mrb[74].mxu0  ;;  %v5081_v10 = vpop.f32.mrb[74].mxu1 }
 0x17f   :  { %5665 = vst [vmem:[#allocation27_spill] sm:$0xff] %v5079_v45  ;;  %5666 = vst [vmem:[#allocation28_spill] sm:$0xff] %v5081_v10  ;;  %v3078_v2 = vpop.f32.mrb[75].mxu0  ;;  %3423 = vmatmul.mubr.msk.f32.gmra.mrb[180].mxu0 %vm73_vm4, %v2551_v38  ;;  %v3245_v24 = vpop.f32.mrb[75].mxu1  ;;  %3590 = vmatmul.mubr.msk.f32.gmra.mrb[180].mxu1 %vm73_vm4, %v2650_v17  ;;  %v2553_v45 = vld [vmem:[%s5586_s0 + $0x468] sm:$0xff] }
 0x180   :  { %3425 = vmatprep.mubr.msk.f32.mxu0 %vm3682_vm0, %v3683_v6  ;;  %3592 = vmatprep.mubr.msk.f32.mxu1 %vm3682_vm0, %v3683_v6  ;;  %v2651_v2 = vld [vmem:[%s5586_s0 + $0x5e8] sm:$0xff] }
 0x182   :  { %v5097_v31 = vpop.f32.mrb[76].mxu0  ;;  %v5099_v38 = vpop.f32.mrb[76].mxu1 }
 0x183   :  { %5667 = vst [vmem:[#allocation29_spill] sm:$0xff] %v5097_v31  ;;  %5668 = vst [vmem:[#allocation30_spill] sm:$0xff] %v5099_v38  ;;  %v3081_v24 = vpop.f32.mrb[77].mxu0  ;;  %3426 = vmatmul.mubr.msk.f32.gmra.mrb[182].mxu0 %vm73_vm4, %v2552_v59  ;;  %v3248_v10 = vpop.f32.mrb[77].mxu1  ;;  %3593 = vmatmul.mubr.msk.f32.gmra.mrb[182].mxu1 %vm73_vm4, %v2651_v2  ;;  %v2554_v31 = vld [vmem:[%s5586_s0 + $0x470] sm:$0xff] }
 0x184   :  { %3428 = vmatprep.mubr.msk.f32.mxu0 %vm3682_vm0, %v3683_v6  ;;  %3595 = vmatprep.mubr.msk.f32.mxu1 %vm3682_vm0, %v3683_v6  ;;  %v2652_v24 = vld [vmem:[%s5586_s0 + $0x5f0] sm:$0xff] }
 0x186   :  { %v5115_v17 = vpop.f32.mrb[78].mxu0  ;;  %v5117_v59 = vpop.f32.mrb[78].mxu1 }
 0x187   :  { %5669 = vst [vmem:[#allocation31_spill] sm:$0xff] %v5115_v17  ;;  %5670 = vst [vmem:[#allocation32_spill] sm:$0xff] %v5117_v59  ;;  %v3084_v10 = vpop.f32.mrb[79].mxu0  ;;  %3429 = vmatmul.mubr.msk.f32.gmra.mrb[184].mxu0 %vm73_vm4, %v2553_v45  ;;  %v3251_v38 = vpop.f32.mrb[79].mxu1  ;;  %3596 = vmatmul.mubr.msk.f32.gmra.mrb[184].mxu1 %vm73_vm4, %v2652_v24  ;;  %v2555_v17 = vld [vmem:[%s5586_s0 + $0x478] sm:$0xff] }
 0x188   :  { %3431 = vmatprep.mubr.msk.f32.mxu0 %vm3682_vm0, %v3683_v6  ;;  %3598 = vmatprep.mubr.msk.f32.mxu1 %vm3682_vm0, %v3683_v6  ;;  %v2653_v10 = vld [vmem:[%s5586_s0 + $0x5f8] sm:$0xff] }
 0x18a   :  { %v5133_v2 = vpop.f32.mrb[80].mxu0  ;;  %v5135_v45 = vpop.f32.mrb[80].mxu1 }
 0x18b   :  { %5671 = vst [vmem:[#allocation33_spill] sm:$0xff] %v5133_v2  ;;  %5672 = vst [vmem:[#allocation34_spill] sm:$0xff] %v5135_v45  ;;  %v3087_v38 = vpop.f32.mrb[81].mxu0  ;;  %3432 = vmatmul.mubr.msk.f32.gmra.mrb[186].mxu0 %vm73_vm4, %v2554_v31  ;;  %v3254_v59 = vpop.f32.mrb[81].mxu1  ;;  %3599 = vmatmul.mubr.msk.f32.gmra.mrb[186].mxu1 %vm73_vm4, %v2653_v10  ;;  %v2556_v2 = vld [vmem:[%s5586_s0 + $0x480] sm:$0xff] }
 0x18c   :  { %3434 = vmatprep.mubr.msk.f32.mxu0 %vm3682_vm0, %v3683_v6  ;;  %3601 = vmatprep.mubr.msk.f32.mxu1 %vm3682_vm0, %v3683_v6  ;;  %v2654_v38 = vld [vmem:[%s5586_s0 + $0x600] sm:$0xff] }
 0x18e   :  { %v5151_v24 = vpop.f32.mrb[82].mxu0  ;;  %v5153_v31 = vpop.f32.mrb[82].mxu1 }
 0x18f   :  { %5673 = vst [vmem:[#allocation35_spill] sm:$0xff] %v5151_v24  ;;  %5674 = vst [vmem:[#allocation36_spill] sm:$0xff] %v5153_v31  ;;  %v3090_v59 = vpop.f32.mrb[83].mxu0  ;;  %3435 = vmatmul.mubr.msk.f32.gmra.mrb[188].mxu0 %vm73_vm4, %v2555_v17  ;;  %v3257_v45 = vpop.f32.mrb[83].mxu1  ;;  %3602 = vmatmul.mubr.msk.f32.gmra.mrb[188].mxu1 %vm73_vm4, %v2654_v38  ;;  %v2557_v24 = vld [vmem:[%s5586_s0 + $0x488] sm:$0xff] }
 0x190   :  { %3437 = vmatprep.mubr.msk.f32.mxu0 %vm3682_vm0, %v3683_v6  ;;  %3604 = vmatprep.mubr.msk.f32.mxu1 %vm3682_vm0, %v3683_v6  ;;  %v2655_v59 = vld [vmem:[%s5586_s0 + $0x608] sm:$0xff] }
 0x192   :  { %v5169_v10 = vpop.f32.mrb[84].mxu0  ;;  %v5171_v17 = vpop.f32.mrb[84].mxu1 }
 0x193   :  { %5675 = vst [vmem:[#allocation37_spill] sm:$0xff] %v5169_v10  ;;  %5676 = vst [vmem:[#allocation38_spill] sm:$0xff] %v5171_v17  ;;  %v3093_v45 = vpop.f32.mrb[85].mxu0  ;;  %3438 = vmatmul.mubr.msk.f32.gmra.mrb[190].mxu0 %vm73_vm4, %v2556_v2  ;;  %v3260_v31 = vpop.f32.mrb[85].mxu1  ;;  %3605 = vmatmul.mubr.msk.f32.gmra.mrb[190].mxu1 %vm73_vm4, %v2655_v59  ;;  %v2558_v10 = vld [vmem:[%s5586_s0 + $0x490] sm:$0xff] }
 0x194   :  { %3440 = vmatprep.mubr.msk.f32.mxu0 %vm3682_vm0, %v3683_v6  ;;  %3607 = vmatprep.mubr.msk.f32.mxu1 %vm3682_vm0, %v3683_v6  ;;  %v2656_v45 = vld [vmem:[%s5586_s0 + $0x610] sm:$0xff] }
 0x196   :  { %v5187_v38 = vpop.f32.mrb[86].mxu0  ;;  %v5189_v2 = vpop.f32.mrb[86].mxu1 }
 0x197   :  { %5677 = vst [vmem:[#allocation39_spill] sm:$0xff] %v5187_v38  ;;  %5678 = vst [vmem:[#allocation40_spill] sm:$0xff] %v5189_v2  ;;  %v3096_v31 = vpop.f32.mrb[87].mxu0  ;;  %3441 = vmatmul.mubr.msk.f32.gmra.mrb[192].mxu0 %vm73_vm4, %v2557_v24  ;;  %v3263_v17 = vpop.f32.mrb[87].mxu1  ;;  %3608 = vmatmul.mubr.msk.f32.gmra.mrb[192].mxu1 %vm73_vm4, %v2656_v45 }
 0x198   :  { %3443 = vmatprep.mubr.msk.f32.mxu0 %vm3682_vm0, %v3683_v6  ;;  %3610 = vmatprep.mubr.msk.f32.mxu1 %vm3682_vm0, %v3683_v6  ;;  %v2657_v31 = vld [vmem:[%s5586_s0 + $0x618] sm:$0xff] }
 0x19a   :  { %v5205_v59 = vpop.f32.mrb[88].mxu0  ;;  %v5207_v24 = vpop.f32.mrb[88].mxu1 }
 0x19b   :  { %5679 = vst [vmem:[#allocation41_spill] sm:$0xff] %v5205_v59  ;;  %5680 = vst [vmem:[#allocation42_spill] sm:$0xff] %v5207_v24  ;;  %v3099_v17 = vpop.f32.mrb[89].mxu0  ;;  %3444 = vmatmul.mubr.msk.f32.gmra.mrb[194].mxu0 %vm73_vm4, %v2558_v10  ;;  %v3266_v2 = vpop.f32.mrb[89].mxu1  ;;  %3611 = vmatmul.mubr.msk.f32.gmra.mrb[194].mxu1 %vm73_vm4, %v2657_v31 }
 0x19e   :  { %v5213_v38 = vpop.f32.mrb[90].mxu0  ;;  %v5215_v6 = vpop.f32.mrb[90].mxu1 }
 0x19f   :  { %5681 = vst [vmem:[#allocation43_spill] sm:$0xff] %v5213_v38  ;;  %5682 = vst [vmem:[#allocation44_spill] sm:$0xff] %v5215_v6  ;;  %v3102_v19 = vpop.f32.mrb[91].mxu0  ;;  %v3269_v44 = vpop.f32.mrb[91].mxu1 }
 0x1a2   :  { %v5219_v5 = vpop.f32.mrb[92].mxu0  ;;  %v5221_v17 = vpop.f32.mrb[92].mxu1 }
 0x1a3   :  { %5683 = vst [vmem:[#allocation45_spill] sm:$0xff] %v5219_v5  ;;  %5684 = vst [vmem:[#allocation46_spill] sm:$0xff] %v5221_v17  ;;  %v3105_v11 = vpop.f32.mrb[93].mxu0  ;;  %v3272_v2 = vpop.f32.mrb[93].mxu1  ;;  %v5689_v17 = vmax.f32 %v4413_v63, %v4415_v0 }
 0x1a6   :  { %v5225_v45 = vpop.f32.mrb[94].mxu0  ;;  %v5227_v31 = vpop.f32.mrb[94].mxu1 }
 0x1a7   :  { %5685 = vst [vmem:[#allocation47_spill] sm:$0xff] %v5225_v45  ;;  %5686 = vst [vmem:[#allocation48_spill] sm:$0xff] %v5227_v31  ;;  %v3108_v24 = vpop.f32.mrb[95].mxu0  ;;  %v3275_v59 = vpop.f32.mrb[95].mxu1 }
 0x1a8   :  { %v5243_v59 = vld [vmem:[%s5587_s2] ss:$0 sm:$0xff] }
 0x1aa   :  { %v5231_v52 = vpop.f32.mrb[96].mxu0  ;;  %v5233_v44 = vpop.f32.mrb[96].mxu1 }
 0x1ab   :  { %5687 = vst [vmem:[#allocation49_spill] sm:$0xff] %v5231_v52  ;;  %5688 = vst [vmem:[#allocation50_spill] sm:$0xff] %v5233_v44  ;;  %v3111_v6 = vpop.f32.mrb[97].mxu0  ;;  %v3278_v38 = vpop.f32.mrb[97].mxu1 }
 0x1ac   :  { %v5690_v38 = vmax.f32 %v4431_v7, %v4433_v8 }
 0x1ae   :  { %v1354_v10 = vpop.f32.mrb[98].mxu0  ;;  %v1910_v2 = vpop.f32.mrb[98].mxu1 }
 0x1af   :  { %v1598_v5 = vmax.f32 %v5689_v17, %v1354_v10  ;;  %v3301_v24 = vpop.f32.mrb[99].mxu0  ;;  %v3468_v32 = vpop.f32.mrb[99].mxu1  ;;  %v5691_v10 = vmax.f32 %v4449_v14, %v4451_v15 }
 0x1b1   :  { %v2154_v19 = vmax.f32 %v1598_v5, %v1910_v2 }
 0x1b2   :  { %v1359_v31 = vpop.f32.mrb[100].mxu0  ;;  %v1915_v6 = vpop.f32.mrb[100].mxu1 }
 0x1b3   :  { %v2210_v45 = vadd.f32 %v5243_v59, %v2154_v19  ;;  %v1599_v11 = vmax.f32 %v5690_v38, %v1359_v31  ;;  %v3304_v44 = vpop.f32.mrb[101].mxu0  ;;  %v3471_v52 = vpop.f32.mrb[101].mxu1 }
 0x1b4   :  { %v5692_v44 = vmax.f32 %v4467_v21, %v4469_v22 }
 0x1b5   :  { %v2259_v63 = vmax.f32 %v2210_v45, 0.0  ;;  %v2155_v0 = vmax.f32 %v1599_v11, %v1915_v6 }
 0x1b6   :  { %v1364_v17 = vpop.f32.mrb[102].mxu0  ;;  %v1920_v32 = vpop.f32.mrb[102].mxu1 }
 0x1b7   :  { %2308 = vst [vmem:[%s5588_s3] sm:$0xff] %v2259_v63  ;;  %v2211_v5 = vadd.f32 %v5243_v59, %v2155_v0  ;;  %v1600_v19 = vmax.f32 %v5691_v10, %v1364_v17  ;;  %v3307_v2 = vpop.f32.mrb[103].mxu0  ;;  %v3474_v24 = vpop.f32.mrb[103].mxu1 }
 0x1b9   :  { %v2260_v7 = vmax.f32 %v2211_v5, 0.0  ;;  %v2156_v8 = vmax.f32 %v1600_v19, %v1920_v32  ;;  %v5693_v32 = vmax.f32 %v4485_v28, %v4487_v29 }
 0x1ba   :  { %v1369_v31 = vpop.f32.mrb[104].mxu0  ;;  %v1925_v52 = vpop.f32.mrb[104].mxu1 }
 0x1bb   :  { %2309 = vst [vmem:[%s5588_s3 + $0x8] sm:$0xff] %v2260_v7  ;;  %v2212_v45 = vadd.f32 %v5243_v59, %v2156_v8  ;;  %v1601_v11 = vmax.f32 %v5692_v44, %v1369_v31  ;;  %v3310_v6 = vpop.f32.mrb[105].mxu0  ;;  %v3477_v38 = vpop.f32.mrb[105].mxu1  ;;  %v5694_v8 = vmax.f32 %v4503_v35, %v4505_v36 }
 0x1bc   :  { %v5695_v38 = vmax.f32 %v4521_v42, %v4523_v43 }
 0x1bd   :  { %v2261_v14 = vmax.f32 %v2212_v45, 0.0  ;;  %v2157_v15 = vmax.f32 %v1601_v11, %v1925_v52 }
 0x1be   :  { %v1374_v63 = vpop.f32.mrb[106].mxu0  ;;  %v1930_v0 = vpop.f32.mrb[106].mxu1 }
 0x1bf   :  { %2310 = vst [vmem:[%s5588_s3 + $0x10] sm:$0xff] %v2261_v14  ;;  %v2213_v17 = vadd.f32 %v5243_v59, %v2157_v15  ;;  %v1602_v5 = vmax.f32 %v5693_v32, %v1374_v63  ;;  %v3313_v10 = vpop.f32.mrb[107].mxu0  ;;  %v3480_v19 = vpop.f32.mrb[107].mxu1 }
 0x1c1   :  { %v2262_v21 = vmax.f32 %v2213_v17, 0.0  ;;  %v2158_v22 = vmax.f32 %v1602_v5, %v1930_v0  ;;  %v5696_v5 = vmax.f32 %v4539_v49, %v4541_v50 }
 0x1c2   :  { %v1379_v2 = vpop.f32.mrb[108].mxu0  ;;  %v1935_v24 = vpop.f32.mrb[108].mxu1 }
 0x1c3   :  { %2311 = vst [vmem:[%s5588_s3 + $0x18] sm:$0xff] %v2262_v21  ;;  %v2214_v7 = vadd.f32 %v5243_v59, %v2158_v22  ;;  %v1603_v31 = vmax.f32 %v5694_v8, %v1379_v2  ;;  %v3316_v52 = vpop.f32.mrb[109].mxu0  ;;  %v3483_v45 = vpop.f32.mrb[109].mxu1 }
 0x1c5   :  { %v2263_v28 = vmax.f32 %v2214_v7, 0.0  ;;  %v2159_v29 = vmax.f32 %v1603_v31, %v1935_v24  ;;  %v5697_v7 = vmax.f32 %v4557_v56, %v4559_v57 }
 0x1c6   :  { %v1384_v44 = vpop.f32.mrb[110].mxu0  ;;  %v1940_v11 = vpop.f32.mrb[110].mxu1 }
 0x1c7   :  { %2312 = vst [vmem:[%s5588_s3 + $0x20] sm:$0xff] %v2263_v28  ;;  %v2215_v6 = vadd.f32 %v5243_v59, %v2159_v29  ;;  %v1604_v14 = vmax.f32 %v5695_v38, %v1384_v44  ;;  %v3319_v15 = vpop.f32.mrb[111].mxu0  ;;  %v3486_v63 = vpop.f32.mrb[111].mxu1  ;;  %v5698_v44 = vmax.f32 %v4575_v1, %v4577_v3 }
 0x1c9   :  { %v2264_v35 = vmax.f32 %v2215_v6, 0.0  ;;  %v2160_v36 = vmax.f32 %v1604_v14, %v1940_v11 }
 0x1ca   :  { %v1389_v0 = vpop.f32.mrb[112].mxu0  ;;  %v1945_v17 = vpop.f32.mrb[112].mxu1 }
 0x1cb   :  { %2313 = vst [vmem:[%s5588_s3 + $0x28] sm:$0xff] %v2264_v35  ;;  %v2216_v32 = vadd.f32 %v5243_v59, %v2160_v36  ;;  %v1605_v10 = vmax.f32 %v5696_v5, %v1389_v0  ;;  %v3322_v19 = vpop.f32.mrb[113].mxu0  ;;  %v3489_v21 = vpop.f32.mrb[113].mxu1  ;;  %v5699_v35 = vmax.f32 %v4593_v13, %v4595_v16 }
 0x1cc   :  { %v5700_v19 = vmax.f32 %v4611_v26, %v4613_v27 }
 0x1cd   :  { %v2265_v42 = vmax.f32 %v2216_v32, 0.0  ;;  %v2161_v43 = vmax.f32 %v1605_v10, %v1945_v17 }
 0x1ce   :  { %v1394_v22 = vpop.f32.mrb[114].mxu0  ;;  %v1950_v2 = vpop.f32.mrb[114].mxu1 }
 0x1cf   :  { %2314 = vst [vmem:[%s5588_s3 + $0x30] sm:$0xff] %v2265_v42  ;;  %v2217_v24 = vadd.f32 %v5243_v59, %v2161_v43  ;;  %v1606_v8 = vmax.f32 %v5697_v7, %v1394_v22  ;;  %v3325_v31 = vpop.f32.mrb[115].mxu0  ;;  %v3492_v52 = vpop.f32.mrb[115].mxu1  ;;  %v5701_v7 = vmax.f32 %v4629_v39, %v4631_v40 }
 0x1d1   :  { %v2266_v49 = vmax.f32 %v2217_v24, 0.0  ;;  %v2162_v50 = vmax.f32 %v1606_v8, %v1950_v2 }
 0x1d2   :  { %v1399_v45 = vpop.f32.mrb[116].mxu0  ;;  %v1955_v28 = vpop.f32.mrb[116].mxu1 }
 0x1d3   :  { %2315 = vst [vmem:[%s5588_s3 + $0x38] sm:$0xff] %v2266_v49  ;;  %v2218_v29 = vadd.f32 %v5243_v59, %v2162_v50  ;;  %v1607_v11 = vmax.f32 %v5698_v44, %v1399_v45  ;;  %v3328_v6 = vpop.f32.mrb[117].mxu0  ;;  %v3495_v38 = vpop.f32.mrb[117].mxu1 }
 0x1d5   :  { %v2267_v56 = vmax.f32 %v2218_v29, 0.0  ;;  %v2163_v57 = vmax.f32 %v1607_v11, %v1955_v28  ;;  %v5702_v28 = vmax.f32 %v4647_v51, %v4649_v53 }
 0x1d6   :  { %v1404_v14 = vpop.f32.mrb[118].mxu0  ;;  %v1960_v15 = vpop.f32.mrb[118].mxu1 }
 0x1d7   :  { %2316 = vst [vmem:[%s5588_s3 + $0x40] sm:$0xff] %v2267_v56  ;;  %v2219_v63 = vadd.f32 %v5243_v59, %v2163_v57  ;;  %v1608_v36 = vmax.f32 %v5699_v35, %v1404_v14  ;;  %v3331_v0 = vpop.f32.mrb[119].mxu0  ;;  %v3498_v17 = vpop.f32.mrb[119].mxu1  ;;  %v5703_v57 = vmax.f32 %v4665_v62, %v4667_v4 }
 0x1d8   :  { %v5704_v17 = vmax.f32 %v4683_v23, %v4685_v25 }
 0x1d9   :  { %v2268_v1 = vmax.f32 %v2219_v63, 0.0  ;;  %v2164_v3 = vmax.f32 %v1608_v36, %v1960_v15 }
 0x1da   :  { %v1409_v32 = vpop.f32.mrb[120].mxu0  ;;  %v1965_v5 = vpop.f32.mrb[120].mxu1 }
 0x1db   :  { %2317 = vst [vmem:[%s5588_s3 + $0x48] sm:$0xff] %v2268_v1  ;;  %v2220_v10 = vadd.f32 %v5243_v59, %v2164_v3  ;;  %v1609_v21 = vmax.f32 %v5700_v19, %v1409_v32  ;;  %v3334_v42 = vpop.f32.mrb[121].mxu0  ;;  %v3501_v43 = vpop.f32.mrb[121].mxu1 }
 0x1dd   :  { %v2269_v13 = vmax.f32 %v2220_v10, 0.0  ;;  %v2165_v16 = vmax.f32 %v1609_v21, %v1965_v5  ;;  %v5705_v21 = vmax.f32 %v4701_v46, %v4703_v47 }
 0x1de   :  { %v1414_v22 = vpop.f32.mrb[122].mxu0  ;;  %v1970_v2 = vpop.f32.mrb[122].mxu1 }
 0x1df   :  { %2318 = vst [vmem:[%s5588_s3 + $0x50] sm:$0xff] %v2269_v13  ;;  %v2221_v24 = vadd.f32 %v5243_v59, %v2165_v16  ;;  %v1610_v8 = vmax.f32 %v5701_v7, %v1414_v22  ;;  %v3337_v31 = vpop.f32.mrb[123].mxu0  ;;  %v3504_v52 = vpop.f32.mrb[123].mxu1 }
 0x1e1   :  { %v2270_v26 = vmax.f32 %v2221_v24, 0.0  ;;  %v2166_v27 = vmax.f32 %v1610_v8, %v1970_v2  ;;  %v5706_v24 = vmax.f32 %v4719_v9, %v4721_v12 }
 0x1e2   :  { %v1419_v49 = vpop.f32.mrb[124].mxu0  ;;  %v1975_v50 = vpop.f32.mrb[124].mxu1 }
 0x1e3   :  { %2319 = vst [vmem:[%s5588_s3 + $0x58] sm:$0xff] %v2270_v26  ;;  %v2222_v45 = vadd.f32 %v5243_v59, %v2166_v27  ;;  %v1611_v29 = vmax.f32 %v5702_v28, %v1419_v49  ;;  %v3340_v44 = vpop.f32.mrb[125].mxu0  ;;  %v3507_v11 = vpop.f32.mrb[125].mxu1  ;;  %v5707_v49 = vmax.f32 %v4737_v41, %v4739_v48 }
 0x1e5   :  { %v2271_v39 = vmax.f32 %v2222_v45, 0.0  ;;  %v2167_v40 = vmax.f32 %v1611_v29, %v1975_v50 }
 0x1e6   :  { %v1424_v6 = vpop.f32.mrb[126].mxu0  ;;  %v1980_v38 = vpop.f32.mrb[126].mxu1 }
 0x1e7   :  { %2320 = vst [vmem:[%s5588_s3 + $0x60] sm:$0xff] %v2271_v39  ;;  %v2223_v56 = vadd.f32 %v5243_v59, %v2167_v40  ;;  %v1612_v14 = vmax.f32 %v5703_v57, %v1424_v6  ;;  %v3343_v15 = vpop.f32.mrb[127].mxu0  ;;  %v3510_v63 = vpop.f32.mrb[127].mxu1  ;;  %v5708_v39 = vmax.f32 %v4755_v58, %v4757_v34 }
 0x1e8   :  { %v5709_v15 = vmax.f32 %v4773_v37, %v4775_v18 }
 0x1e9   :  { %v2272_v51 = vmax.f32 %v2223_v56, 0.0  ;;  %v2168_v53 = vmax.f32 %v1612_v14, %v1980_v38 }
 0x1ea   :  { %v1429_v35 = vpop.f32.mrb[128].mxu0  ;;  %v1985_v36 = vpop.f32.mrb[128].mxu1 }
 0x1eb   :  { %2321 = vst [vmem:[%s5588_s3 + $0x68] sm:$0xff] %v2272_v51  ;;  %v2224_v0 = vadd.f32 %v5243_v59, %v2168_v53  ;;  %v1613_v1 = vmax.f32 %v5704_v17, %v1429_v35  ;;  %v3346_v3 = vpop.f32.mrb[129].mxu0  ;;  %v3513_v32 = vpop.f32.mrb[129].mxu1  ;;  %v5710_v17 = vmax.f32 %v4791_v30, %v4793_v20 }
 0x1ed   :  { %v2273_v62 = vmax.f32 %v2224_v0, 0.0  ;;  %v2169_v4 = vmax.f32 %v1613_v1, %v1985_v36 }
 0x1ee   :  { %v1434_v5 = vpop.f32.mrb[130].mxu0  ;;  %v1990_v10 = vpop.f32.mrb[130].mxu1 }
 0x1ef   :  { %2322 = vst [vmem:[%s5588_s3 + $0x70] sm:$0xff] %v2273_v62  ;;  %v2225_v19 = vadd.f32 %v5243_v59, %v2169_v4  ;;  %v1614_v42 = vmax.f32 %v5705_v21, %v1434_v5  ;;  %v3349_v43 = vpop.f32.mrb[131].mxu0  ;;  %v3516_v13 = vpop.f32.mrb[131].mxu1 }
 0x1f1   :  { %v2274_v23 = vmax.f32 %v2225_v19, 0.0  ;;  %v2170_v25 = vmax.f32 %v1614_v42, %v1990_v10  ;;  %v5711_v10 = vmax.f32 %v4809_v61, %v4811_v33 }
 0x1f2   :  { %v1439_v16 = vpop.f32.mrb[132].mxu0  ;;  %v1995_v22 = vpop.f32.mrb[132].mxu1 }
 0x1f3   :  { %2323 = vst [vmem:[%s5588_s3 + $0x78] sm:$0xff] %v2274_v23  ;;  %v2226_v2 = vadd.f32 %v5243_v59, %v2170_v25  ;;  %v1615_v7 = vmax.f32 %v5706_v24, %v1439_v16  ;;  %v3352_v8 = vpop.f32.mrb[133].mxu0  ;;  %v3519_v31 = vpop.f32.mrb[133].mxu1  ;;  %v5712_v25 = vmax.f32 %v4827_v60, %v4829_v55 }
 0x1f4   :  { %v5713_v31 = vld [vmem:[#allocation2_spill] sm:$0xff] }
 0x1f5   :  { %v2275_v46 = vmax.f32 %v2226_v2, 0.0  ;;  %v2171_v47 = vmax.f32 %v1615_v7, %v1995_v22 }
 0x1f6   :  { %v1444_v52 = vpop.f32.mrb[134].mxu0  ;;  %v2000_v26 = vpop.f32.mrb[134].mxu1 }
 0x1f7   :  { %2324 = vst [vmem:[%s5588_s3 + $0x80] sm:$0xff] %v2275_v46  ;;  %v2227_v27 = vadd.f32 %v5243_v59, %v2171_v47  ;;  %v1616_v50 = vmax.f32 %v5707_v49, %v1444_v52  ;;  %v3355_v45 = vpop.f32.mrb[135].mxu0  ;;  %v3522_v28 = vpop.f32.mrb[135].mxu1  ;;  %v5714_v46 = vmax.f32 %v4845_v54, %v5713_v31 }
 0x1f8   :  { %v5715_v45 = vld [vmem:[#allocation3_spill] sm:$0xff]  ;;  %v5716_v28 = vld [vmem:[#allocation4_spill] sm:$0xff] }
 0x1f9   :  { %v2276_v9 = vmax.f32 %v2227_v27, 0.0  ;;  %v2172_v12 = vmax.f32 %v1616_v50, %v2000_v26 }
 0x1fa   :  { %v1449_v29 = vpop.f32.mrb[136].mxu0  ;;  %v2005_v44 = vpop.f32.mrb[136].mxu1 }
 0x1fb   :  { %2325 = vst [vmem:[%s5588_s3 + $0x88] sm:$0xff] %v2276_v9  ;;  %v2228_v11 = vadd.f32 %v5243_v59, %v2172_v12  ;;  %v1617_v40 = vmax.f32 %v5708_v39, %v1449_v29  ;;  %v3358_v6 = vpop.f32.mrb[137].mxu0  ;;  %v3525_v38 = vpop.f32.mrb[137].mxu1  ;;  %v5717_v9 = vmax.f32 %v5715_v45, %v5716_v28 }
 0x1fc   :  { %v5718_v38 = vld [vmem:[#allocation5_spill] sm:$0xff] }
 0x1fd   :  { %v2277_v41 = vmax.f32 %v2228_v11, 0.0  ;;  %v2173_v48 = vmax.f32 %v1617_v40, %v2005_v44 }
 0x1fe   :  { %v1454_v56 = vpop.f32.mrb[138].mxu0  ;;  %v2010_v57 = vpop.f32.mrb[138].mxu1 }
 0x1ff   :  { %2326 = vst [vmem:[%s5588_s3 + $0x90] sm:$0xff] %v2277_v41  ;;  %v2229_v14 = vadd.f32 %v5243_v59, %v2173_v48  ;;  %v1618_v63 = vmax.f32 %v5709_v15, %v1454_v56  ;;  %v3361_v51 = vpop.f32.mrb[139].mxu0  ;;  %v3528_v53 = vpop.f32.mrb[139].mxu1  ;;  %v5719_v41 = vld [vmem:[#allocation6_spill] sm:$0xff] }
 0x200   :  { %v5720_v48 = vmax.f32 %v5718_v38, %v5719_v41 }
 0x201   :  { %v2278_v58 = vmax.f32 %v2229_v14, 0.0  ;;  %v2174_v34 = vmax.f32 %v1618_v63, %v2010_v57 }
 0x202   :  { %v1459_v35 = vpop.f32.mrb[140].mxu0  ;;  %v2015_v36 = vpop.f32.mrb[140].mxu1 }
 0x203   :  { %2327 = vst [vmem:[%s5588_s3 + $0x98] sm:$0xff] %v2278_v58  ;;  %v2230_v0 = vadd.f32 %v5243_v59, %v2174_v34  ;;  %v1619_v1 = vmax.f32 %v5710_v17, %v1459_v35  ;;  %v3364_v3 = vpop.f32.mrb[141].mxu0  ;;  %v3531_v32 = vpop.f32.mrb[141].mxu1  ;;  %v5721_v34 = vld [vmem:[#allocation7_spill] sm:$0xff]  ;;  %v5722_v35 = vld [vmem:[#allocation8_spill] sm:$0xff] }
 0x205   :  { %v2279_v37 = vmax.f32 %v2230_v0, 0.0  ;;  %v2175_v18 = vmax.f32 %v1619_v1, %v2015_v36  ;;  %v5723_v36 = vmax.f32 %v5721_v34, %v5722_v35 }
 0x206   :  { %v1464_v62 = vpop.f32.mrb[142].mxu0  ;;  %v2020_v4 = vpop.f32.mrb[142].mxu1 }
 0x207   :  { %2328 = vst [vmem:[%s5588_s3 + $0xa0] sm:$0xff] %v2279_v37  ;;  %v2231_v5 = vadd.f32 %v5243_v59, %v2175_v18  ;;  %v1620_v19 = vmax.f32 %v5711_v10, %v1464_v62  ;;  %v3367_v21 = vpop.f32.mrb[143].mxu0  ;;  %v3534_v42 = vpop.f32.mrb[143].mxu1 }
 0x209   :  { %v2280_v30 = vmax.f32 %v2231_v5, 0.0  ;;  %v2176_v20 = vmax.f32 %v1620_v19, %v2020_v4  ;;  %v5724_v4 = vld [vmem:[#allocation9_spill] sm:$0xff]  ;;  %v5725_v5 = vld [vmem:[#allocation10_spill] sm:$0xff] }
 0x20a   :  { %v1469_v43 = vpop.f32.mrb[144].mxu0  ;;  %v2025_v13 = vpop.f32.mrb[144].mxu1  ;;  %v5726_v10 = vmax.f32 %v5724_v4, %v5725_v5 }
 0x20b   :  { %2329 = vst [vmem:[%s5588_s3 + $0xa8] sm:$0xff] %v2280_v30  ;;  %v2232_v23 = vadd.f32 %v5243_v59, %v2176_v20  ;;  %v1621_v16 = vmax.f32 %v5712_v25, %v1469_v43  ;;  %v3370_v22 = vpop.f32.mrb[145].mxu0  ;;  %v3537_v2 = vpop.f32.mrb[145].mxu1  ;;  %v5727_v25 = vld [vmem:[#allocation11_spill] sm:$0xff] }
 0x20d   :  { %v2281_v61 = vmax.f32 %v2232_v23, 0.0  ;;  %v2177_v33 = vmax.f32 %v1621_v16, %v2025_v13  ;;  %v5728_v16 = vld [vmem:[#allocation12_spill] sm:$0xff] }
 0x20e   :  { %v1474_v24 = vpop.f32.mrb[146].mxu0  ;;  %v2030_v7 = vpop.f32.mrb[146].mxu1  ;;  %v5729_v22 = vmax.f32 %v5727_v25, %v5728_v16 }
 0x20f   :  { %2330 = vst [vmem:[%s5588_s3 + $0xb0] sm:$0xff] %v2281_v61  ;;  %v2233_v8 = vadd.f32 %v5243_v59, %v2177_v33  ;;  %v1622_v47 = vmax.f32 %v5714_v46, %v1474_v24  ;;  %v3373_v52 = vpop.f32.mrb[147].mxu0  ;;  %v3540_v26 = vpop.f32.mrb[147].mxu1 }
 0x210   :  { %v5731_v52 = vld [vmem:[#allocation14_spill] sm:$0xff] }
 0x211   :  { %v2282_v60 = vmax.f32 %v2233_v8, 0.0  ;;  %v2178_v55 = vmax.f32 %v1622_v47, %v2030_v7  ;;  %v5730_v47 = vld [vmem:[#allocation13_spill] sm:$0xff] }
 0x212   :  { %v1479_v27 = vpop.f32.mrb[148].mxu0  ;;  %v2035_v49 = vpop.f32.mrb[148].mxu1  ;;  %v5732_v26 = vmax.f32 %v5730_v47, %v5731_v52 }
 0x213   :  { %2331 = vst [vmem:[%s5588_s3 + $0xb8] sm:$0xff] %v2282_v60  ;;  %v2234_v50 = vadd.f32 %v5243_v59, %v2178_v55  ;;  %v1623_v12 = vmax.f32 %v5717_v9, %v1479_v27  ;;  %v3376_v29 = vpop.f32.mrb[149].mxu0  ;;  %v3543_v44 = vpop.f32.mrb[149].mxu1 }
 0x214   :  { %v5734_v29 = vld [vmem:[#allocation16_spill] sm:$0xff] }
 0x215   :  { %v2283_v54 = vmax.f32 %v2234_v50, 0.0  ;;  %v2179_v11 = vmax.f32 %v1623_v12, %v2035_v49  ;;  %v5733_v12 = vld [vmem:[#allocation15_spill] sm:$0xff] }
 0x216   :  { %v1484_v39 = vpop.f32.mrb[150].mxu0  ;;  %v2040_v40 = vpop.f32.mrb[150].mxu1  ;;  %v5735_v44 = vmax.f32 %v5733_v12, %v5734_v29 }
 0x217   :  { %2332 = vst [vmem:[%s5588_s3 + $0xc0] sm:$0xff] %v2283_v54  ;;  %v2235_v6 = vadd.f32 %v5243_v59, %v2179_v11  ;;  %v1624_v56 = vmax.f32 %v5720_v48, %v1484_v39  ;;  %v3379_v57 = vpop.f32.mrb[151].mxu0  ;;  %v3546_v14 = vpop.f32.mrb[151].mxu1 }
 0x218   :  { %v5737_v57 = vld [vmem:[#allocation18_spill] sm:$0xff] }
 0x219   :  { %v2284_v15 = vmax.f32 %v2235_v6, 0.0  ;;  %v2180_v63 = vmax.f32 %v1624_v56, %v2040_v40  ;;  %v5736_v56 = vld [vmem:[#allocation17_spill] sm:$0xff] }
 0x21a   :  { %v1489_v51 = vpop.f32.mrb[152].mxu0  ;;  %v2045_v53 = vpop.f32.mrb[152].mxu1  ;;  %v5738_v14 = vmax.f32 %v5736_v56, %v5737_v57 }
 0x21b   :  { %2333 = vst [vmem:[%s5588_s3 + $0xc8] sm:$0xff] %v2284_v15  ;;  %v2236_v58 = vadd.f32 %v5243_v59, %v2180_v63  ;;  %v1625_v0 = vmax.f32 %v5723_v36, %v1489_v51  ;;  %v3382_v17 = vpop.f32.mrb[153].mxu0  ;;  %v3549_v1 = vpop.f32.mrb[153].mxu1 }
 0x21c   :  { %v5740_v17 = vld [vmem:[#allocation20_spill] sm:$0xff] }
 0x21d   :  { %v2285_v3 = vmax.f32 %v2236_v58, 0.0  ;;  %v2181_v32 = vmax.f32 %v1625_v0, %v2045_v53  ;;  %v5739_v0 = vld [vmem:[#allocation19_spill] sm:$0xff] }
 0x21e   :  { %v1494_v37 = vpop.f32.mrb[154].mxu0  ;;  %v2050_v18 = vpop.f32.mrb[154].mxu1  ;;  %v5741_v1 = vmax.f32 %v5739_v0, %v5740_v17 }
 0x21f   :  { %2334 = vst [vmem:[%s5588_s3 + $0xd0] sm:$0xff] %v2285_v3  ;;  %v2237_v62 = vadd.f32 %v5243_v59, %v2181_v32  ;;  %v1626_v19 = vmax.f32 %v5726_v10, %v1494_v37  ;;  %v3385_v21 = vpop.f32.mrb[155].mxu0  ;;  %v3552_v42 = vpop.f32.mrb[155].mxu1 }
 0x220   :  { %v5743_v21 = vld [vmem:[#allocation22_spill] sm:$0xff] }
 0x221   :  { %v2286_v30 = vmax.f32 %v2237_v62, 0.0  ;;  %v2182_v20 = vmax.f32 %v1626_v19, %v2050_v18  ;;  %v5742_v19 = vld [vmem:[#allocation21_spill] sm:$0xff] }
 0x222   :  { %v1499_v43 = vpop.f32.mrb[156].mxu0  ;;  %v2055_v13 = vpop.f32.mrb[156].mxu1  ;;  %v5744_v42 = vmax.f32 %v5742_v19, %v5743_v21 }
 0x223   :  { %2335 = vst [vmem:[%s5588_s3 + $0xd8] sm:$0xff] %v2286_v30  ;;  %v2238_v23 = vadd.f32 %v5243_v59, %v2182_v20  ;;  %v1627_v2 = vmax.f32 %v5729_v22, %v1499_v43  ;;  %v3388_v61 = vpop.f32.mrb[157].mxu0  ;;  %v3555_v33 = vpop.f32.mrb[157].mxu1 }
 0x224   :  { %v5746_v61 = vld [vmem:[#allocation24_spill] sm:$0xff] }
 0x225   :  { %v2287_v24 = vmax.f32 %v2238_v23, 0.0  ;;  %v2183_v7 = vmax.f32 %v1627_v2, %v2055_v13  ;;  %v5745_v2 = vld [vmem:[#allocation23_spill] sm:$0xff] }
 0x226   :  { %v1504_v8 = vpop.f32.mrb[158].mxu0  ;;  %v2060_v31 = vpop.f32.mrb[158].mxu1  ;;  %v5747_v33 = vmax.f32 %v5745_v2, %v5746_v61 }
 0x227   :  { %2336 = vst [vmem:[%s5588_s3 + $0xe0] sm:$0xff] %v2287_v24  ;;  %v2239_v46 = vadd.f32 %v5243_v59, %v2183_v7  ;;  %v1628_v60 = vmax.f32 %v5732_v26, %v1504_v8  ;;  %v3391_v55 = vpop.f32.mrb[159].mxu0  ;;  %v3558_v27 = vpop.f32.mrb[159].mxu1 }
 0x228   :  { %v5749_v55 = vld [vmem:[#allocation26_spill] sm:$0xff] }
 0x229   :  { %v2288_v49 = vmax.f32 %v2239_v46, 0.0  ;;  %v2184_v50 = vmax.f32 %v1628_v60, %v2060_v31  ;;  %v5748_v60 = vld [vmem:[#allocation25_spill] sm:$0xff] }
 0x22a   :  { %v1509_v45 = vpop.f32.mrb[160].mxu0  ;;  %v2065_v28 = vpop.f32.mrb[160].mxu1  ;;  %v5750_v27 = vmax.f32 %v5748_v60, %v5749_v55 }
 0x22b   :  { %2337 = vst [vmem:[%s5588_s3 + $0xe8] sm:$0xff] %v2288_v49  ;;  %v2240_v9 = vadd.f32 %v5243_v59, %v2184_v50  ;;  %v1629_v54 = vmax.f32 %v5735_v44, %v1509_v45  ;;  %v3394_v11 = vpop.f32.mrb[161].mxu0  ;;  %v3561_v39 = vpop.f32.mrb[161].mxu1 }
 0x22c   :  { %v5752_v11 = vld [vmem:[#allocation28_spill] sm:$0xff] }
 0x22d   :  { %v2289_v40 = vmax.f32 %v2240_v9, 0.0  ;;  %v2185_v6 = vmax.f32 %v1629_v54, %v2065_v28  ;;  %v5751_v54 = vld [vmem:[#allocation27_spill] sm:$0xff] }
 0x22e   :  { %v1514_v38 = vpop.f32.mrb[162].mxu0  ;;  %v2070_v41 = vpop.f32.mrb[162].mxu1  ;;  %v5753_v39 = vmax.f32 %v5751_v54, %v5752_v11 }
 0x22f   :  { %2338 = vst [vmem:[%s5588_s3 + $0xf0] sm:$0xff] %v2289_v40  ;;  %v2241_v48 = vadd.f32 %v5243_v59, %v2185_v6  ;;  %v1630_v15 = vmax.f32 %v5738_v14, %v1514_v38  ;;  %v3397_v63 = vpop.f32.mrb[163].mxu0  ;;  %v3564_v51 = vpop.f32.mrb[163].mxu1 }
 0x230   :  { %v5755_v63 = vld [vmem:[#allocation30_spill] sm:$0xff] }
 0x231   :  { %v2290_v53 = vmax.f32 %v2241_v48, 0.0  ;;  %v2186_v58 = vmax.f32 %v1630_v15, %v2070_v41  ;;  %v5754_v15 = vld [vmem:[#allocation29_spill] sm:$0xff] }
 0x232   :  { %v1519_v34 = vpop.f32.mrb[164].mxu0  ;;  %v2075_v35 = vpop.f32.mrb[164].mxu1  ;;  %v5756_v51 = vmax.f32 %v5754_v15, %v5755_v63 }
 0x233   :  { %2339 = vst [vmem:[%s5588_s3 + $0xf8] sm:$0xff] %v2290_v53  ;;  %v2242_v36 = vadd.f32 %v5243_v59, %v2186_v58  ;;  %v1631_v3 = vmax.f32 %v5741_v1, %v1519_v34  ;;  %v3400_v32 = vpop.f32.mrb[165].mxu0  ;;  %v3567_v37 = vpop.f32.mrb[165].mxu1 }
 0x234   :  { %v5758_v32 = vld [vmem:[#allocation32_spill] sm:$0xff] }
 0x235   :  { %v2291_v18 = vmax.f32 %v2242_v36, 0.0  ;;  %v2187_v62 = vmax.f32 %v1631_v3, %v2075_v35  ;;  %v5757_v3 = vld [vmem:[#allocation31_spill] sm:$0xff] }
 0x236   :  { %v1524_v4 = vpop.f32.mrb[166].mxu0  ;;  %v2080_v5 = vpop.f32.mrb[166].mxu1  ;;  %v5759_v37 = vmax.f32 %v5757_v3, %v5758_v32 }
 0x237   :  { %2340 = vst [vmem:[%s5588_s3 + $0x100] sm:$0xff] %v2291_v18  ;;  %v2243_v10 = vadd.f32 %v5243_v59, %v2187_v62  ;;  %v1632_v30 = vmax.f32 %v5744_v42, %v1524_v4  ;;  %v3403_v20 = vpop.f32.mrb[167].mxu0  ;;  %v3570_v43 = vpop.f32.mrb[167].mxu1 }
 0x238   :  { %v5761_v20 = vld [vmem:[#allocation34_spill] sm:$0xff] }
 0x239   :  { %v2292_v13 = vmax.f32 %v2243_v10, 0.0  ;;  %v2188_v23 = vmax.f32 %v1632_v30, %v2080_v5  ;;  %v5760_v30 = vld [vmem:[#allocation33_spill] sm:$0xff] }
 0x23a   :  { %v1529_v25 = vpop.f32.mrb[168].mxu0  ;;  %v2085_v16 = vpop.f32.mrb[168].mxu1  ;;  %v5762_v43 = vmax.f32 %v5760_v30, %v5761_v20 }
 0x23b   :  { %2341 = vst [vmem:[%s5588_s3 + $0x108] sm:$0xff] %v2292_v13  ;;  %v2244_v22 = vadd.f32 %v5243_v59, %v2188_v23  ;;  %v1633_v24 = vmax.f32 %v5747_v33, %v1529_v25  ;;  %v3406_v7 = vpop.f32.mrb[169].mxu0  ;;  %v3573_v8 = vpop.f32.mrb[169].mxu1 }
 0x23c   :  { %v5764_v7 = vld [vmem:[#allocation36_spill] sm:$0xff] }
 0x23d   :  { %v2293_v31 = vmax.f32 %v2244_v22, 0.0  ;;  %v2189_v46 = vmax.f32 %v1633_v24, %v2085_v16  ;;  %v5763_v24 = vld [vmem:[#allocation35_spill] sm:$0xff] }
 0x23e   :  { %v1534_v47 = vpop.f32.mrb[170].mxu0  ;;  %v2090_v52 = vpop.f32.mrb[170].mxu1  ;;  %v5765_v8 = vmax.f32 %v5763_v24, %v5764_v7 }
 0x23f   :  { %2342 = vst [vmem:[%s5588_s3 + $0x110] sm:$0xff] %v2293_v31  ;;  %v2245_v26 = vadd.f32 %v5243_v59, %v2189_v46  ;;  %v1634_v49 = vmax.f32 %v5750_v27, %v1534_v47  ;;  %v3409_v50 = vpop.f32.mrb[171].mxu0  ;;  %v3576_v45 = vpop.f32.mrb[171].mxu1 }
 0x240   :  { %v5767_v50 = vld [vmem:[#allocation38_spill] sm:$0xff] }
 0x241   :  { %v2294_v28 = vmax.f32 %v2245_v26, 0.0  ;;  %v2190_v9 = vmax.f32 %v1634_v49, %v2090_v52  ;;  %v5766_v49 = vld [vmem:[#allocation37_spill] sm:$0xff] }
 0x242   :  { %v1539_v12 = vpop.f32.mrb[172].mxu0  ;;  %v2095_v29 = vpop.f32.mrb[172].mxu1  ;;  %v5768_v45 = vmax.f32 %v5766_v49, %v5767_v50 }
 0x243   :  { %2343 = vst [vmem:[%s5588_s3 + $0x118] sm:$0xff] %v2294_v28  ;;  %v2246_v44 = vadd.f32 %v5243_v59, %v2190_v9  ;;  %v1635_v40 = vmax.f32 %v5753_v39, %v1539_v12  ;;  %v3412_v6 = vpop.f32.mrb[173].mxu0  ;;  %v3579_v38 = vpop.f32.mrb[173].mxu1 }
 0x244   :  { %v5770_v6 = vld [vmem:[#allocation40_spill] sm:$0xff] }
 0x245   :  { %v2295_v41 = vmax.f32 %v2246_v44, 0.0  ;;  %v2191_v48 = vmax.f32 %v1635_v40, %v2095_v29  ;;  %v5769_v40 = vld [vmem:[#allocation39_spill] sm:$0xff] }
 0x246   :  { %v1544_v56 = vpop.f32.mrb[174].mxu0  ;;  %v2100_v57 = vpop.f32.mrb[174].mxu1  ;;  %v5771_v38 = vmax.f32 %v5769_v40, %v5770_v6 }
 0x247   :  { %2344 = vst [vmem:[%s5588_s3 + $0x120] sm:$0xff] %v2295_v41  ;;  %v2247_v14 = vadd.f32 %v5243_v59, %v2191_v48  ;;  %v1636_v53 = vmax.f32 %v5756_v51, %v1544_v56  ;;  %v3415_v58 = vpop.f32.mrb[175].mxu0  ;;  %v3582_v34 = vpop.f32.mrb[175].mxu1 }
 0x248   :  { %v5773_v58 = vld [vmem:[#allocation42_spill] sm:$0xff] }
 0x249   :  { %v2296_v35 = vmax.f32 %v2247_v14, 0.0  ;;  %v2192_v36 = vmax.f32 %v1636_v53, %v2100_v57  ;;  %v5772_v53 = vld [vmem:[#allocation41_spill] sm:$0xff] }
 0x24a   :  { %v1549_v0 = vpop.f32.mrb[176].mxu0  ;;  %v2105_v17 = vpop.f32.mrb[176].mxu1  ;;  %v5774_v34 = vmax.f32 %v5772_v53, %v5773_v58 }
 0x24b   :  { %2345 = vst [vmem:[%s5588_s3 + $0x128] sm:$0xff] %v2296_v35  ;;  %v2248_v1 = vadd.f32 %v5243_v59, %v2192_v36  ;;  %v1637_v18 = vmax.f32 %v5759_v37, %v1549_v0  ;;  %v3418_v62 = vpop.f32.mrb[177].mxu0  ;;  %v3585_v4 = vpop.f32.mrb[177].mxu1 }
 0x24c   :  { %v5776_v62 = vld [vmem:[#allocation44_spill] sm:$0xff] }
 0x24d   :  { %v2297_v5 = vmax.f32 %v2248_v1, 0.0  ;;  %v2193_v10 = vmax.f32 %v1637_v18, %v2105_v17  ;;  %v5775_v18 = vld [vmem:[#allocation43_spill] sm:$0xff] }
 0x24e   :  { %v1554_v19 = vpop.f32.mrb[178].mxu0  ;;  %v2110_v21 = vpop.f32.mrb[178].mxu1  ;;  %v5777_v4 = vmax.f32 %v5775_v18, %v5776_v62 }
 0x24f   :  { %2346 = vst [vmem:[%s5588_s3 + $0x130] sm:$0xff] %v2297_v5  ;;  %v2249_v42 = vadd.f32 %v5243_v59, %v2193_v10  ;;  %v1638_v13 = vmax.f32 %v5762_v43, %v1554_v19  ;;  %v3421_v23 = vpop.f32.mrb[179].mxu0  ;;  %v3588_v25 = vpop.f32.mrb[179].mxu1 }
 0x250   :  { %v5779_v23 = vld [vmem:[#allocation46_spill] sm:$0xff] }
 0x251   :  { %v2298_v16 = vmax.f32 %v2249_v42, 0.0  ;;  %v2194_v22 = vmax.f32 %v1638_v13, %v2110_v21  ;;  %v5778_v13 = vld [vmem:[#allocation45_spill] sm:$0xff] }
 0x252   :  { %v1559_v2 = vpop.f32.mrb[180].mxu0  ;;  %v2115_v61 = vpop.f32.mrb[180].mxu1  ;;  %v5780_v25 = vmax.f32 %v5778_v13, %v5779_v23 }
 0x253   :  { %2347 = vst [vmem:[%s5588_s3 + $0x138] sm:$0xff] %v2298_v16  ;;  %v2250_v33 = vadd.f32 %v5243_v59, %v2194_v22  ;;  %v1639_v31 = vmax.f32 %v5765_v8, %v1559_v2  ;;  %v3424_v46 = vpop.f32.mrb[181].mxu0  ;;  %v3591_v47 = vpop.f32.mrb[181].mxu1 }
 0x254   :  { %v5782_v46 = vld [vmem:[#allocation48_spill] sm:$0xff] }
 0x255   :  { %v2299_v52 = vmax.f32 %v2250_v33, 0.0  ;;  %v2195_v26 = vmax.f32 %v1639_v31, %v2115_v61  ;;  %v5781_v31 = vld [vmem:[#allocation47_spill] sm:$0xff] }
 0x256   :  { %v1564_v60 = vpop.f32.mrb[182].mxu0  ;;  %v2120_v55 = vpop.f32.mrb[182].mxu1  ;;  %v5783_v47 = vmax.f32 %v5781_v31, %v5782_v46 }
 0x257   :  { %2348 = vst [vmem:[%s5588_s3 + $0x140] sm:$0xff] %v2299_v52  ;;  %v2251_v27 = vadd.f32 %v5243_v59, %v2195_v26  ;;  %v1640_v28 = vmax.f32 %v5768_v45, %v1564_v60  ;;  %v3427_v9 = vpop.f32.mrb[183].mxu0  ;;  %v3594_v12 = vpop.f32.mrb[183].mxu1 }
 0x258   :  { %v5785_v9 = vld [vmem:[#allocation50_spill] sm:$0xff] }
 0x259   :  { %v2300_v29 = vmax.f32 %v2251_v27, 0.0  ;;  %v2196_v44 = vmax.f32 %v1640_v28, %v2120_v55  ;;  %v5784_v28 = vld [vmem:[#allocation49_spill] sm:$0xff] }
 0x25a   :  { %v1569_v54 = vpop.f32.mrb[184].mxu0  ;;  %v2125_v11 = vpop.f32.mrb[184].mxu1  ;;  %v5786_v12 = vmax.f32 %v5784_v28, %v5785_v9 }
 0x25b   :  { %2349 = vst [vmem:[%s5588_s3 + $0x148] sm:$0xff] %v2300_v29  ;;  %v2252_v39 = vadd.f32 %v5243_v59, %v2196_v44  ;;  %v1641_v41 = vmax.f32 %v5771_v38, %v1569_v54  ;;  %v3430_v48 = vpop.f32.mrb[185].mxu0  ;;  %v3597_v56 = vpop.f32.mrb[185].mxu1 }
 0x25d   :  { %v2301_v57 = vmax.f32 %v2252_v39, 0.0  ;;  %v2197_v14 = vmax.f32 %v1641_v41, %v2125_v11 }
 0x25e   :  { %v1574_v15 = vpop.f32.mrb[186].mxu0  ;;  %v2130_v63 = vpop.f32.mrb[186].mxu1 }
 0x25f   :  { %2350 = vst [vmem:[%s5588_s3 + $0x150] sm:$0xff] %v2301_v57  ;;  %v2253_v51 = vadd.f32 %v5243_v59, %v2197_v14  ;;  %v1642_v35 = vmax.f32 %v5774_v34, %v1574_v15  ;;  %v3433_v36 = vpop.f32.mrb[187].mxu0  ;;  %v3600_v0 = vpop.f32.mrb[187].mxu1 }
 0x261   :  { %v2302_v17 = vmax.f32 %v2253_v51, 0.0  ;;  %v2198_v1 = vmax.f32 %v1642_v35, %v2130_v63 }
 0x262   :  { %v1579_v3 = vpop.f32.mrb[188].mxu0  ;;  %v2135_v32 = vpop.f32.mrb[188].mxu1 }
 0x263   :  { %2351 = vst [vmem:[%s5588_s3 + $0x158] sm:$0xff] %v2302_v17  ;;  %v2254_v37 = vadd.f32 %v5243_v59, %v2198_v1  ;;  %v1643_v5 = vmax.f32 %v5777_v4, %v1579_v3  ;;  %v3436_v10 = vpop.f32.mrb[189].mxu0  ;;  %v3603_v19 = vpop.f32.mrb[189].mxu1 }
 0x265   :  { %v2303_v21 = vmax.f32 %v2254_v37, 0.0  ;;  %v2199_v42 = vmax.f32 %v1643_v5, %v2135_v32 }
 0x266   :  { %v1584_v30 = vpop.f32.mrb[190].mxu0  ;;  %v2140_v20 = vpop.f32.mrb[190].mxu1 }
 0x267   :  { %2352 = vst [vmem:[%s5588_s3 + $0x160] sm:$0xff] %v2303_v21  ;;  %v2255_v43 = vadd.f32 %v5243_v59, %v2199_v42  ;;  %v1644_v16 = vmax.f32 %v5780_v25, %v1584_v30  ;;  %v3439_v22 = vpop.f32.mrb[191].mxu0  ;;  %v3606_v2 = vpop.f32.mrb[191].mxu1 }
 0x269   :  { %v2304_v61 = vmax.f32 %v2255_v43, 0.0  ;;  %v2200_v33 = vmax.f32 %v1644_v16, %v2140_v20 }
 0x26a   :  { %v1589_v24 = vpop.f32.mrb[192].mxu0  ;;  %v2145_v7 = vpop.f32.mrb[192].mxu1 }
 0x26b   :  { %2353 = vst [vmem:[%s5588_s3 + $0x168] sm:$0xff] %v2304_v61  ;;  %v2256_v8 = vadd.f32 %v5243_v59, %v2200_v33  ;;  %v1645_v52 = vmax.f32 %v5783_v47, %v1589_v24  ;;  %v3442_v26 = vpop.f32.mrb[193].mxu0  ;;  %v3609_v60 = vpop.f32.mrb[193].mxu1 }
 0x26d   :  { %v2305_v55 = vmax.f32 %v2256_v8, 0.0  ;;  %v2201_v27 = vmax.f32 %v1645_v52, %v2145_v7 }
 0x26e   :  { %v1594_v49 = vpop.f32.mrb[194].mxu0  ;;  %v2150_v50 = vpop.f32.mrb[194].mxu1 }
 0x26f   :  { %2354 = vst [vmem:[%s5588_s3 + $0x170] sm:$0xff] %v2305_v55  ;;  %v2257_v45 = vadd.f32 %v5243_v59, %v2201_v27  ;;  %v1646_v29 = vmax.f32 %v5786_v12, %v1594_v49  ;;  %v3445_v44 = vpop.f32.mrb[195].mxu0  ;;  %v3612_v54 = vpop.f32.mrb[195].mxu1 }
 0x271   :  { %v2306_v11 = vmax.f32 %v2257_v45, 0.0  ;;  %v2202_v39 = vmax.f32 %v1646_v29, %v2150_v50 }
 0x273   :  { %2355 = vst [vmem:[%s5588_s3 + $0x178] sm:$0xff] %v2306_v11  ;;  %v2258_v40 = vadd.f32 %v5243_v59, %v2202_v39 }
 0x275   :  { %v2307_v6 = vmax.f32 %v2258_v40, 0.0 }
 0x277   :  { %2356 = vst [vmem:[%s5588_s3 + $0x180] sm:$0xff] %v2307_v6 }

// kernel: forward.4
= control target key start
LH: loop header
LB: loop body
LE: loop exit
PB: predicated region body
PF: predicated region fallthrough
CT: control target
= control target key end

     0   :  { %v819_v0 = vmov 0.0|0.0   ;;  %vm47_vm0 = vcmask 179200   ;;  %v820_v30 = vmov 0.0   ;;  %vm69_vm1 = vcmask 1045504   ;;  %s1222_s1 = inlined_call_operand.vmem [shape: f32[150,128], index: 1, kind: input, shape index: {}]   ;;  %s1223_s0 = inlined_call_operand.vmem [shape: f32[4,56,150], index: 0, kind: input, shape index: {}]   ;;  %s1224_s2 = inlined_call_operand.vmem [shape: f32[1,128], index: 2, kind: input, shape index: {}]   ;;  %s1225_s3 = inlined_call_operand.vmem [shape: f32[56,128], index: 3, kind: output, shape index: {}]  }
   0x1   :  { %709 = vmatprep.subr.bf16.mxu0 %v819_v0  ;;  %v14_v1 = vld [vmem:[%s1222_s1] sm:$0xff]  ;;  %v15_v2 = vld [vmem:[%s1222_s1 + $0x8] sm:$0xff]  ;;  %736 = vmatprep.subr.bf16.mxu1 %v819_v0  ;;  %v16_v3 = vld [vmem:[%s1222_s1 + $0x10] sm:$0xff] }
   0x2   :  { %v852_v4 = vpack.c.bf16 %v15_v2, %v14_v1  ;;  %v17_v5 = vld [vmem:[%s1222_s1 + $0x18] sm:$0xff]  ;;  %v18_v7 = vld [vmem:[%s1222_s1 + $0x20] sm:$0xff]  ;;  %v19_v8 = vld [vmem:[%s1222_s1 + $0x28] sm:$0xff] }
   0x3   :  { %v859_v6 = vpack.c.bf16 %v17_v5, %v16_v3  ;;  %v34_v9 = vld [vmem:[%s1223_s0 + $0x8] sm:$0xff]  ;;  %v874_v10 = vpack.c.bf16 %v19_v8, %v18_v7  ;;  %v643_v11 = vld [vmem:[%s1223_s0 + $0x78] sm:$0xff]  ;;  %v20_v12 = vld [vmem:[%s1222_s1 + $0x30] sm:$0xff] }
   0x4   :  { %711 = vmatpush1.bf16.msra.mxu0 %v852_v4  ;;  %738 = vmatpush1.bf16.msra.mxu1 %v852_v4  ;;  %v21_v13 = vld [vmem:[%s1222_s1 + $0x38] sm:$0xff]  ;;  %v22_v15 = vld [vmem:[%s1222_s1 + $0x40] sm:$0xff]  ;;  %v23_v16 = vld [vmem:[%s1222_s1 + $0x48] sm:$0xff] }
   0x5   :  { %712 = vmatprep.subr.bf16.mxu0 %v819_v0  ;;  %739 = vmatprep.subr.bf16.mxu1 %v819_v0  ;;  %v891_v14 = vpack.c.bf16 %v21_v13, %v20_v12  ;;  %v903_v17 = vpack.c.bf16 %v23_v16, %v22_v15  ;;  %v24_v18 = vld [vmem:[%s1222_s1 + $0x50] sm:$0xff]  ;;  %v25_v19 = vld [vmem:[%s1222_s1 + $0x58] sm:$0xff]  ;;  %v26_v21 = vld [vmem:[%s1222_s1 + $0x60] sm:$0xff] }
   0x6   :  { %635 = vmatprep.mubr.msk.f32.mxu0 %vm47_vm0, %v34_v9  ;;  %657 = vmatprep.mubr.msk.f32.mxu1 %vm47_vm0, %v643_v11  ;;  %v915_v20 = vpack.c.bf16 %v25_v19, %v24_v18  ;;  %v27_v22 = vld [vmem:[%s1222_s1 + $0x68] sm:$0xff]  ;;  %v28_v24 = vld [vmem:[%s1222_s1 + $0x70] sm:$0xff]  ;;  %v29_v25 = vld [vmem:[%s1222_s1 + $0x78] sm:$0xff] }
   0x7   :  { %v927_v23 = vpack.c.bf16 %v27_v22, %v26_v21  ;;  %v939_v26 = vpack.c.bf16 %v29_v25, %v28_v24  ;;  %v30_v27 = vld [vmem:[%s1222_s1 + $0x80] sm:$0xff]  ;;  %v31_v28 = vld [vmem:[%s1222_s1 + $0x88] sm:$0xff]  ;;  %v961_v31 = vld [vmem:[%s1222_s1 + $0x90] sm:$0x3f] }
   0x8   :  { %714 = vmatpush1.bf16.msra.mxu0 %v859_v6  ;;  %741 = vmatpush1.bf16.msra.mxu1 %v859_v6  ;;  %v951_v29 = vpack.c.bf16 %v31_v28, %v30_v27  ;;  %v33_v32 = vld [vmem:[%s1223_s0] sm:$0xff]  ;;  %v642_v33 = vld [vmem:[%s1223_s0 + $0x70] sm:$0xff]  ;;  %v36_v34 = vld [vmem:[%s1223_s0 + $0x18] sm:$0xff] }
   0x9   :  { %715 = vmatprep.subr.bf16.mxu0 %v819_v0  ;;  %742 = vmatprep.subr.bf16.mxu1 %v819_v0  ;;  %v35_v35 = vld [vmem:[%s1223_s0 + $0x10] sm:$0xff]  ;;  %v645_v36 = vld [vmem:[%s1223_s0 + $0x88] sm:$0xff]  ;;  %v644_v37 = vld [vmem:[%s1223_s0 + $0x80] sm:$0xff] }
   0xa   :  { %v38_v38 = vld [vmem:[%s1223_s0 + $0x28] sm:$0xff]  ;;  %v37_v39 = vld [vmem:[%s1223_s0 + $0x20] sm:$0xff]  ;;  %v647_v40 = vld [vmem:[%s1223_s0 + $0x98] sm:$0xff] }
   0xb   :  { %v646_v41 = vld [vmem:[%s1223_s0 + $0x90] sm:$0xff]  ;;  %v40_v42 = vld [vmem:[%s1223_s0 + $0x38] sm:$0xff]  ;;  %v649_v44 = vld [vmem:[%s1223_s0 + $0xa8] sm:$0xff] }
   0xc   :  { %717 = vmatpush1.bf16.msra.mxu0 %v874_v10  ;;  %744 = vmatpush1.bf16.msra.mxu1 %v874_v10  ;;  %v39_v43 = vld [vmem:[%s1223_s0 + $0x30] sm:$0xff]  ;;  %v648_v45 = vld [vmem:[%s1223_s0 + $0xa0] sm:$0xff]  ;;  %v42_v46 = vld [vmem:[%s1223_s0 + $0x48] sm:$0xff] }
   0xd   :  { %718 = vmatprep.subr.bf16.mxu0 %v819_v0  ;;  %745 = vmatprep.subr.bf16.mxu1 %v819_v0  ;;  %v41_v47 = vld [vmem:[%s1223_s0 + $0x40] sm:$0xff]  ;;  %v651_v48 = vld [vmem:[%s1223_s0 + $0xb8] sm:$0xff]  ;;  %v650_v49 = vld [vmem:[%s1223_s0 + $0xb0] sm:$0xff] }
   0xe   :  { %v44_v50 = vld [vmem:[%s1223_s0 + $0x58] sm:$0xff]  ;;  %v43_v51 = vld [vmem:[%s1223_s0 + $0x50] sm:$0xff]  ;;  %v653_v52 = vld [vmem:[%s1223_s0 + $0xc8] sm:$0xff] }
   0xf   :  { %v652_v53 = vld [vmem:[%s1223_s0 + $0xc0] sm:$0xff]  ;;  %v46_v54 = vld [vmem:[%s1223_s0 + $0x68] sm:$0xff]  ;;  %v655_v56 = vld [vmem:[%s1223_s0 + $0xd8] sm:$0xff] }
  0x10   :  { %720 = vmatpush1.bf16.msra.mxu0 %v891_v14  ;;  %747 = vmatpush1.bf16.msra.mxu1 %v891_v14  ;;  %v45_v55 = vld [vmem:[%s1223_s0 + $0x60] sm:$0xff]  ;;  %v654_v57 = vld [vmem:[%s1223_s0 + $0xd0] sm:$0xff]  ;;  %v665_v58 = vld [vmem:[%s1223_s0 + $0xe8] sm:$0xff] }
  0x11   :  { %721 = vmatprep.subr.bf16.mxu0 %v819_v0  ;;  %748 = vmatprep.subr.bf16.mxu1 %v819_v0  ;;  %v687_v59 = vld [vmem:[%s1223_s0 + $0x158] sm:$0xff]  ;;  %v664_v60 = vld [vmem:[%s1223_s0 + $0xe0] sm:$0xff]  ;;  %v686_v62 = vld [vmem:[%s1223_s0 + $0x150] sm:$0xff] }
  0x12   :  { %v667_v61 = vld [vmem:[%s1223_s0 + $0xf8] sm:$0xff]  ;;  %v689_v63 = vld [vmem:[%s1223_s0 + $0x168] sm:$0xff]  ;;  %v688_v2 = vld [vmem:[%s1223_s0 + $0x160] sm:$0xff] }
  0x13   :  { %v669_v1 = vld [vmem:[%s1223_s0 + $0x108] sm:$0xff]  ;;  %v691_v3 = vld [vmem:[%s1223_s0 + $0x178] sm:$0xff]  ;;  %v670_v8 = vld [vmem:[%s1223_s0 + $0x110] sm:$0xff] }
  0x14   :  { %723 = vmatpush1.bf16.msra.mxu0 %v903_v17  ;;  %750 = vmatpush1.bf16.msra.mxu1 %v903_v17  ;;  %v671_v5 = vld [vmem:[%s1223_s0 + $0x118] sm:$0xff]  ;;  %v693_v7 = vld [vmem:[%s1223_s0 + $0x188] sm:$0xff]  ;;  %v672_v12 = vld [vmem:[%s1223_s0 + $0x120] sm:$0xff] }
  0x15   :  { %724 = vmatprep.subr.bf16.mxu0 %v819_v0  ;;  %751 = vmatprep.subr.bf16.mxu1 %v819_v0  ;;  %v673_v9 = vld [vmem:[%s1223_s0 + $0x128] sm:$0xff]  ;;  %v695_v11 = vld [vmem:[%s1223_s0 + $0x198] sm:$0xff]  ;;  %v674_v16 = vld [vmem:[%s1223_s0 + $0x130] sm:$0xff] }
  0x16   :  { %v675_v13 = vld [vmem:[%s1223_s0 + $0x138] sm:$0xff]  ;;  %v697_v15 = vld [vmem:[%s1223_s0 + $0x1a8] sm:$0xff]  ;;  %v696_v18 = vld [vmem:[%s1223_s0 + $0x1a0] sm:$0xff] }
  0x17   :  { %v699_v19 = vld [vmem:[%s1223_s0 + $0x1b8] sm:$0xff]  ;;  %v698_v21 = vld [vmem:[%s1223_s0 + $0x1b0] sm:$0xff] }
  0x18   :  { %726 = vmatpush1.bf16.msra.mxu0 %v915_v20  ;;  %753 = vmatpush1.bf16.msra.mxu1 %v915_v20 }
  0x19   :  { %727 = vmatprep.subr.bf16.mxu0 %v819_v0  ;;  %754 = vmatprep.subr.bf16.mxu1 %v819_v0 }
  0x1c   :  { %729 = vmatpush1.bf16.msra.mxu0 %v927_v23  ;;  %756 = vmatpush1.bf16.msra.mxu1 %v927_v23 }
  0x1d   :  { %730 = vmatprep.subr.bf16.mxu0 %v819_v0  ;;  %757 = vmatprep.subr.bf16.mxu1 %v819_v0 }
  0x20   :  { %732 = vmatpush1.bf16.msra.mxu0 %v939_v26  ;;  %759 = vmatpush1.bf16.msra.mxu1 %v939_v26 }
  0x21   :  { %733 = vmatprep.subr.bf16.mxu0 %v819_v0  ;;  %760 = vmatprep.subr.bf16.mxu1 %v819_v0 }
  0x24   :  { %735 = vmatpush1.bf16.msra.mxu0 %v951_v29  ;;  %762 = vmatpush1.bf16.msra.mxu1 %v951_v29 }
  0x25   :  { %109 = vmatprep.subr.mxu0 %v820_v30  ;;  %245 = vmatprep.subr.mxu1 %v820_v30 }
  0x28   :  { %634 = vmatpush1.msk.msra.mxu0 %vm69_vm1, %v961_v31  ;;  %656 = vmatpush1.msk.msra.mxu1 %vm69_vm1, %v961_v31 }
  0x29   :  { %138 = vmatmul.mubr.f32.vlgmr.msra.gmra.mrb[0].mxu0 %v33_v32  ;;  %763 = vmatprep.subr.bf16.mxu0 %v819_v0 }
  0x2a   :  { %274 = vmatmul.mubr.f32.vlgmr.msra.gmra.mrb[0].mxu1 %v642_v33  ;;  %765 = vmatpush1.bf16.msra.mxu0 %v852_v4 }
  0x2b   :  { %790 = vmatprep.subr.bf16.mxu1 %v819_v0  ;;  %766 = vmatprep.subr.bf16.mxu0 %v819_v0 }
  0x2c   :  { %792 = vmatpush1.bf16.msra.mxu1 %v852_v4  ;;  %636 = vmatprep.mubr.msk.f32.mxu0 %vm47_vm0, %v36_v34  ;;  %v668_v4 = vld [vmem:[%s1223_s0 + $0x100] sm:$0xff] }
  0x2d   :  { %793 = vmatprep.subr.bf16.mxu1 %v819_v0  ;;  %143 = vmatmul.mubr.f32.gmra.mrb[2].mxu0 %v35_v35 }
  0x2e   :  { %768 = vmatpush1.bf16.msra.mxu0 %v859_v6  ;;  %658 = vmatprep.mubr.msk.f32.mxu1 %vm47_vm0, %v645_v36 }
  0x2f   :  { %769 = vmatprep.subr.bf16.mxu0 %v819_v0  ;;  %279 = vmatmul.mubr.f32.gmra.mrb[2].mxu1 %v644_v37 }
  0x30   :  { %795 = vmatpush1.bf16.msra.mxu1 %v859_v6  ;;  %637 = vmatprep.mubr.msk.f32.mxu0 %vm47_vm0, %v38_v38  ;;  %v690_v6 = vld [vmem:[%s1223_s0 + $0x170] sm:$0xff] }
  0x31   :  { %796 = vmatprep.subr.bf16.mxu1 %v819_v0  ;;  %148 = vmatmul.mubr.f32.gmra.mrb[4].mxu0 %v37_v39 }
  0x32   :  { %771 = vmatpush1.bf16.msra.mxu0 %v874_v10  ;;  %659 = vmatprep.mubr.msk.f32.mxu1 %vm47_vm0, %v647_v40 }
  0x33   :  { %772 = vmatprep.subr.bf16.mxu0 %v819_v0  ;;  %284 = vmatmul.mubr.f32.gmra.mrb[4].mxu1 %v646_v41 }
  0x34   :  { %798 = vmatpush1.bf16.msra.mxu1 %v874_v10  ;;  %638 = vmatprep.mubr.msk.f32.mxu0 %vm47_vm0, %v40_v42  ;;  %v692_v10 = vld [vmem:[%s1223_s0 + $0x180] sm:$0xff] }
  0x35   :  { %799 = vmatprep.subr.bf16.mxu1 %v819_v0  ;;  %153 = vmatmul.mubr.f32.gmra.mrb[6].mxu0 %v39_v43 }
  0x36   :  { %774 = vmatpush1.bf16.msra.mxu0 %v891_v14  ;;  %660 = vmatprep.mubr.msk.f32.mxu1 %vm47_vm0, %v649_v44 }
  0x37   :  { %775 = vmatprep.subr.bf16.mxu0 %v819_v0  ;;  %289 = vmatmul.mubr.f32.gmra.mrb[6].mxu1 %v648_v45 }
  0x38   :  { %801 = vmatpush1.bf16.msra.mxu1 %v891_v14  ;;  %639 = vmatprep.mubr.msk.f32.mxu0 %vm47_vm0, %v42_v46  ;;  %v694_v14 = vld [vmem:[%s1223_s0 + $0x190] sm:$0xff] }
  0x39   :  { %802 = vmatprep.subr.bf16.mxu1 %v819_v0  ;;  %158 = vmatmul.mubr.f32.gmra.mrb[8].mxu0 %v41_v47 }
  0x3a   :  { %777 = vmatpush1.bf16.msra.mxu0 %v903_v17  ;;  %661 = vmatprep.mubr.msk.f32.mxu1 %vm47_vm0, %v651_v48 }
  0x3b   :  { %778 = vmatprep.subr.bf16.mxu0 %v819_v0  ;;  %294 = vmatmul.mubr.f32.gmra.mrb[8].mxu1 %v650_v49 }
  0x3c   :  { %804 = vmatpush1.bf16.msra.mxu1 %v903_v17  ;;  %640 = vmatprep.mubr.msk.f32.mxu0 %vm47_vm0, %v44_v50  ;;  %v677_v17 = vld [vmem:[%s1223_s0 + $0x148] sm:$0xff] }
  0x3d   :  { %805 = vmatprep.subr.bf16.mxu1 %v819_v0  ;;  %163 = vmatmul.mubr.f32.gmra.mrb[10].mxu0 %v43_v51 }
  0x3e   :  { %780 = vmatpush1.bf16.msra.mxu0 %v915_v20  ;;  %662 = vmatprep.mubr.msk.f32.mxu1 %vm47_vm0, %v653_v52 }
  0x3f   :  { %781 = vmatprep.subr.bf16.mxu0 %v819_v0  ;;  %299 = vmatmul.mubr.f32.gmra.mrb[10].mxu1 %v652_v53 }
  0x40   :  { %807 = vmatpush1.bf16.msra.mxu1 %v915_v20  ;;  %641 = vmatprep.mubr.msk.f32.mxu0 %vm47_vm0, %v46_v54  ;;  %v676_v20 = vld [vmem:[%s1223_s0 + $0x140] sm:$0xff] }
  0x41   :  { %808 = vmatprep.subr.bf16.mxu1 %v819_v0  ;;  %168 = vmatmul.mubr.f32.gmra.mrb[12].mxu0 %v45_v55 }
  0x42   :  { %783 = vmatpush1.bf16.msra.mxu0 %v927_v23  ;;  %663 = vmatprep.mubr.msk.f32.mxu1 %vm47_vm0, %v655_v56 }
  0x43   :  { %784 = vmatprep.subr.bf16.mxu0 %v819_v0  ;;  %304 = vmatmul.mubr.f32.gmra.mrb[12].mxu1 %v654_v57 }
  0x44   :  { %810 = vmatpush1.bf16.msra.mxu1 %v927_v23  ;;  %679 = vmatprep.mubr.msk.f32.mxu0 %vm47_vm0, %v665_v58 }
  0x45   :  { %811 = vmatprep.subr.bf16.mxu1 %v819_v0  ;;  %701 = vmatprep.mubr.msk.f32.mxu1 %vm47_vm0, %v687_v59 }
  0x46   :  { %786 = vmatpush1.bf16.msra.mxu0 %v939_v26 }
  0x47   :  { %787 = vmatprep.subr.bf16.mxu0 %v819_v0 }
  0x48   :  { %813 = vmatpush1.bf16.msra.mxu1 %v939_v26 }
  0x49   :  { %814 = vmatprep.subr.bf16.mxu1 %v819_v0  ;;  %v666_v0 = vld [vmem:[%s1223_s0 + $0xf0] sm:$0xff] }
  0x4a   :  { %789 = vmatpush1.bf16.msra.mxu0 %v951_v29 }
  0x4b   :  { %388 = vmatprep.subr.mxu0 %v820_v30 }
  0x4c   :  { %816 = vmatpush1.bf16.msra.mxu1 %v951_v29 }
  0x4d   :  { %531 = vmatprep.subr.mxu1 %v820_v30 }
  0x4e   :  { %678 = vmatpush1.msk.msra.mxu0 %vm69_vm1, %v961_v31 }
  0x4f   :  { %417 = vmatmul.mubr.f32.vlgmr.msra.gmra.mrb[14].mxu0 %v664_v60 }
  0x50   :  { %700 = vmatpush1.msk.msra.mxu1 %vm69_vm1, %v961_v31  ;;  %680 = vmatprep.mubr.msk.f32.mxu0 %vm47_vm0, %v667_v61  ;;  %v708_v61 = vld [vmem:[%s1224_s2] ss:$0 sm:$0xff] }
  0x51   :  { %560 = vmatmul.mubr.f32.vlgmr.msra.gmra.mrb[14].mxu1 %v686_v62 }
  0x52   :  { %702 = vmatprep.mubr.msk.f32.mxu1 %vm47_vm0, %v689_v63 }
  0x53   :  { %422 = vmatmul.mubr.f32.gmra.mrb[16].mxu0 %v666_v0 }
  0x54   :  { %681 = vmatprep.mubr.msk.f32.mxu0 %vm47_vm0, %v669_v1 }
  0x55   :  { %565 = vmatmul.mubr.f32.gmra.mrb[16].mxu1 %v688_v2 }
  0x56   :  { %703 = vmatprep.mubr.msk.f32.mxu1 %vm47_vm0, %v691_v3 }
  0x57   :  { %427 = vmatmul.mubr.f32.gmra.mrb[18].mxu0 %v668_v4 }
  0x58   :  { %682 = vmatprep.mubr.msk.f32.mxu0 %vm47_vm0, %v671_v5 }
  0x59   :  { %570 = vmatmul.mubr.f32.gmra.mrb[18].mxu1 %v690_v6 }
  0x5a   :  { %704 = vmatprep.mubr.msk.f32.mxu1 %vm47_vm0, %v693_v7 }
  0x5b   :  { %432 = vmatmul.mubr.f32.gmra.mrb[20].mxu0 %v670_v8 }
  0x5c   :  { %683 = vmatprep.mubr.msk.f32.mxu0 %vm47_vm0, %v673_v9 }
  0x5d   :  { %575 = vmatmul.mubr.f32.gmra.mrb[20].mxu1 %v692_v10 }
  0x5e   :  { %705 = vmatprep.mubr.msk.f32.mxu1 %vm47_vm0, %v695_v11 }
  0x5f   :  { %437 = vmatmul.mubr.f32.gmra.mrb[22].mxu0 %v672_v12 }
  0x60   :  { %684 = vmatprep.mubr.msk.f32.mxu0 %vm47_vm0, %v675_v13 }
  0x61   :  { %580 = vmatmul.mubr.f32.gmra.mrb[22].mxu1 %v694_v14 }
  0x62   :  { %706 = vmatprep.mubr.msk.f32.mxu1 %vm47_vm0, %v697_v15 }
  0x63   :  { %442 = vmatmul.mubr.f32.gmra.mrb[24].mxu0 %v674_v16 }
  0x64   :  { %685 = vmatprep.mubr.msk.f32.mxu0 %vm47_vm0, %v677_v17 }
  0x65   :  { %585 = vmatmul.mubr.f32.gmra.mrb[24].mxu1 %v696_v18 }
  0x66   :  { %707 = vmatprep.mubr.msk.f32.mxu1 %vm47_vm0, %v699_v19 }
  0x67   :  { %447 = vmatmul.mubr.f32.gmra.mrb[26].mxu0 %v676_v20 }
  0x69   :  { %590 = vmatmul.mubr.f32.gmra.mrb[26].mxu1 %v698_v21 }
  0xfc   :  { %v139_v22 = vpop.f32.mrb[0].mxu0 }
  0xfd   :  { %v141_v23 = vpop.f32.mrb[1].mxu0  ;;  %v275_v24 = vpop.f32.mrb[0].mxu1 }
  0xfe   :  { %v309_v25 = vmax.f32 %v139_v22, %v275_v24  ;;  %v277_v26 = vpop.f32.mrb[1].mxu1 }
 0x100   :  { %v144_v27 = vpop.f32.mrb[2].mxu0 }
 0x101   :  { %v146_v28 = vpop.f32.mrb[3].mxu0 }
 0x102   :  { %v280_v29 = vpop.f32.mrb[2].mxu1 }
 0x103   :  { %v310_v30 = vmax.f32 %v144_v27, %v280_v29  ;;  %v282_v31 = vpop.f32.mrb[3].mxu1 }
 0x104   :  { %v149_v32 = vpop.f32.mrb[4].mxu0 }
 0x105   :  { %v151_v33 = vpop.f32.mrb[5].mxu0 }
 0x106   :  { %v285_v34 = vpop.f32.mrb[4].mxu1 }
 0x107   :  { %v311_v35 = vmax.f32 %v149_v32, %v285_v34  ;;  %v287_v36 = vpop.f32.mrb[5].mxu1 }
 0x108   :  { %v154_v37 = vpop.f32.mrb[6].mxu0 }
 0x109   :  { %v156_v38 = vpop.f32.mrb[7].mxu0 }
 0x10a   :  { %v290_v39 = vpop.f32.mrb[6].mxu1 }
 0x10b   :  { %v312_v40 = vmax.f32 %v154_v37, %v290_v39  ;;  %v292_v41 = vpop.f32.mrb[7].mxu1 }
 0x10c   :  { %v159_v42 = vpop.f32.mrb[8].mxu0 }
 0x10d   :  { %v161_v43 = vpop.f32.mrb[9].mxu0 }
 0x10e   :  { %v295_v44 = vpop.f32.mrb[8].mxu1 }
 0x10f   :  { %v313_v45 = vmax.f32 %v159_v42, %v295_v44  ;;  %v297_v46 = vpop.f32.mrb[9].mxu1 }
 0x110   :  { %v164_v47 = vpop.f32.mrb[10].mxu0 }
 0x111   :  { %v166_v48 = vpop.f32.mrb[11].mxu0 }
 0x112   :  { %v300_v49 = vpop.f32.mrb[10].mxu1 }
 0x113   :  { %v314_v50 = vmax.f32 %v164_v47, %v300_v49  ;;  %v302_v51 = vpop.f32.mrb[11].mxu1 }
 0x114   :  { %v169_v52 = vpop.f32.mrb[12].mxu0 }
 0x115   :  { %v171_v53 = vpop.f32.mrb[13].mxu0 }
 0x116   :  { %v305_v54 = vpop.f32.mrb[12].mxu1 }
 0x117   :  { %v315_v55 = vmax.f32 %v169_v52, %v305_v54  ;;  %v307_v56 = vpop.f32.mrb[13].mxu1 }
 0x122   :  { %v418_v57 = vpop.f32.mrb[14].mxu0 }
 0x123   :  { %v452_v58 = vmax.f32 %v309_v25, %v418_v57  ;;  %v420_v59 = vpop.f32.mrb[15].mxu0 }
 0x124   :  { %v561_v60 = vpop.f32.mrb[14].mxu1 }
 0x125   :  { %v595_v62 = vmax.f32 %v452_v58, %v561_v60  ;;  %v563_v63 = vpop.f32.mrb[15].mxu1 }
 0x126   :  { %v423_v0 = vpop.f32.mrb[16].mxu0 }
 0x127   :  { %v609_v1 = vadd.f32 %v708_v61, %v595_v62  ;;  %v453_v2 = vmax.f32 %v310_v30, %v423_v0  ;;  %v425_v3 = vpop.f32.mrb[17].mxu0 }
 0x128   :  { %v566_v4 = vpop.f32.mrb[16].mxu1 }
 0x129   :  { %v616_v5 = vmax.f32 %v609_v1, 0.0  ;;  %v596_v6 = vmax.f32 %v453_v2, %v566_v4  ;;  %v568_v7 = vpop.f32.mrb[17].mxu1 }
 0x12a   :  { %v428_v8 = vpop.f32.mrb[18].mxu0 }
 0x12b   :  { %623 = vst [vmem:[%s1225_s3] sm:$0xff] %v616_v5  ;;  %v610_v9 = vadd.f32 %v708_v61, %v596_v6  ;;  %v454_v10 = vmax.f32 %v311_v35, %v428_v8  ;;  %v430_v11 = vpop.f32.mrb[19].mxu0 }
 0x12c   :  { %v571_v12 = vpop.f32.mrb[18].mxu1 }
 0x12d   :  { %v617_v13 = vmax.f32 %v610_v9, 0.0  ;;  %v597_v14 = vmax.f32 %v454_v10, %v571_v12  ;;  %v573_v15 = vpop.f32.mrb[19].mxu1 }
 0x12e   :  { %v433_v16 = vpop.f32.mrb[20].mxu0 }
 0x12f   :  { %624 = vst [vmem:[%s1225_s3 + $0x8] sm:$0xff] %v617_v13  ;;  %v611_v17 = vadd.f32 %v708_v61, %v597_v14  ;;  %v455_v18 = vmax.f32 %v312_v40, %v433_v16  ;;  %v435_v19 = vpop.f32.mrb[21].mxu0 }
 0x130   :  { %v576_v20 = vpop.f32.mrb[20].mxu1 }
 0x131   :  { %v618_v21 = vmax.f32 %v611_v17, 0.0  ;;  %v598_v22 = vmax.f32 %v455_v18, %v576_v20  ;;  %v578_v23 = vpop.f32.mrb[21].mxu1 }
 0x132   :  { %v438_v24 = vpop.f32.mrb[22].mxu0 }
 0x133   :  { %625 = vst [vmem:[%s1225_s3 + $0x10] sm:$0xff] %v618_v21  ;;  %v612_v25 = vadd.f32 %v708_v61, %v598_v22  ;;  %v456_v26 = vmax.f32 %v313_v45, %v438_v24  ;;  %v440_v27 = vpop.f32.mrb[23].mxu0 }
 0x134   :  { %v581_v28 = vpop.f32.mrb[22].mxu1 }
 0x135   :  { %v619_v29 = vmax.f32 %v612_v25, 0.0  ;;  %v599_v30 = vmax.f32 %v456_v26, %v581_v28  ;;  %v583_v31 = vpop.f32.mrb[23].mxu1 }
 0x136   :  { %v443_v32 = vpop.f32.mrb[24].mxu0 }
 0x137   :  { %626 = vst [vmem:[%s1225_s3 + $0x18] sm:$0xff] %v619_v29  ;;  %v613_v33 = vadd.f32 %v708_v61, %v599_v30  ;;  %v457_v34 = vmax.f32 %v314_v50, %v443_v32  ;;  %v445_v35 = vpop.f32.mrb[25].mxu0 }
 0x138   :  { %v586_v36 = vpop.f32.mrb[24].mxu1 }
 0x139   :  { %v620_v37 = vmax.f32 %v613_v33, 0.0  ;;  %v600_v38 = vmax.f32 %v457_v34, %v586_v36  ;;  %v588_v39 = vpop.f32.mrb[25].mxu1 }
 0x13a   :  { %v448_v40 = vpop.f32.mrb[26].mxu0 }
 0x13b   :  { %627 = vst [vmem:[%s1225_s3 + $0x20] sm:$0xff] %v620_v37  ;;  %v614_v41 = vadd.f32 %v708_v61, %v600_v38  ;;  %v458_v42 = vmax.f32 %v315_v55, %v448_v40  ;;  %v450_v43 = vpop.f32.mrb[27].mxu0 }
 0x13c   :  { %v591_v44 = vpop.f32.mrb[26].mxu1 }
 0x13d   :  { %v621_v45 = vmax.f32 %v614_v41, 0.0  ;;  %v601_v46 = vmax.f32 %v458_v42, %v591_v44  ;;  %v593_v47 = vpop.f32.mrb[27].mxu1 }
 0x13f   :  { %628 = vst [vmem:[%s1225_s3 + $0x28] sm:$0xff] %v621_v45  ;;  %v615_v48 = vadd.f32 %v708_v61, %v601_v46 }
 0x141   :  { %v622_v49 = vmax.f32 %v615_v48, 0.0 }
 0x143   :  { %629 = vst [vmem:[%s1225_s3 + $0x30] sm:$0xff] %v622_v49 }

// kernel: forward.5
= control target key start
LH: loop header
LB: loop body
LE: loop exit
PB: predicated region body
PF: predicated region fallthrough
CT: control target
= control target key end

     0   :  { %v677_v2 = vmov 0.0|0.0   ;;  %vm87_vm0 = vcmask 130048   ;;  %vm678_vm1 = vmmov 0   ;;  %s1016_s1 = inlined_call_operand.vmem [shape: f32[400,128], index: 1, kind: input, shape index: {}]   ;;  %s1017_s0 = inlined_call_operand.vmem [shape: f32[8,400], index: 0, kind: input, shape index: {}]   ;;  %s1018_s3 = inlined_call_operand.vmem [shape: f32[128,128], index: 3, kind: input, shape index: {}]   ;;  %s1019_s5 = inlined_call_operand.vmem [shape: f32[128,128], index: 5, kind: input, shape index: {}]   ;;  %s1020_s2 = inlined_call_operand.vmem [shape: f32[1,128], index: 2, kind: input, shape index: {}]   ;;  %s1021_s4 = inlined_call_operand.vmem [shape: f32[1,128], index: 4, kind: input, shape index: {}]   ;;  %s1022_s6 = inlined_call_operand.vmem [shape: f32[1,128], index: 6, kind: input, shape index: {}]   ;;  %s1023_s7 = inlined_call_operand.vmem [shape: f32[8,128], index: 7, kind: output, shape index: {}]  }
   0x1   :  { %v46_v0 = vld [vmem:[%s1016_s1 + $0x80] sm:$0xff]  ;;  %v47_v1 = vld [vmem:[%s1016_s1 + $0x88] sm:$0xff]  ;;  %599 = vmatprep.subr.bf16.mxu1 %v677_v2  ;;  %v48_v10 = vld [vmem:[%s1016_s1 + $0x90] sm:$0xff] }
   0x2   :  { %v30_v3 = vld [vmem:[%s1016_s1] sm:$0xff]  ;;  %v567_v4 = vpack.c.bf16 %v47_v1, %v46_v0  ;;  %v31_v5 = vld [vmem:[%s1016_s1 + $0x8] sm:$0xff]  ;;  %v49_v11 = vld [vmem:[%s1016_s1 + $0x98] sm:$0xff] }
   0x3   :  { %v62_v6 = vld [vmem:[%s1016_s1 + $0x100] sm:$0xff]  ;;  %v63_v7 = vld [vmem:[%s1016_s1 + $0x108] sm:$0xff]  ;;  %v569_v8 = vpack.c.bf16 %v31_v5, %v30_v3  ;;  %v32_v12 = vld [vmem:[%s1016_s1 + $0x10] sm:$0xff]  ;;  %v571_v13 = vpack.c.bf16 %v49_v11, %v48_v10 }
   0x4   :  { %v600_v9 = vpack.c.bf16 %v63_v7, %v62_v6  ;;  %568 = vmatprep.subr.bf16.mxu0 %v567_v4  ;;  %v33_v14 = vld [vmem:[%s1016_s1 + $0x18] sm:$0xff]  ;;  %v64_v15 = vld [vmem:[%s1016_s1 + $0x110] sm:$0xff]  ;;  %v50_v19 = vld [vmem:[%s1016_s1 + $0xa0] sm:$0xff] }
   0x5   :  { %v65_v16 = vld [vmem:[%s1016_s1 + $0x118] sm:$0xff]  ;;  %570 = vmatpush3.bf16.msra.mxu0 %v569_v8  ;;  %v573_v17 = vpack.c.bf16 %v33_v14, %v32_v12  ;;  %v51_v20 = vld [vmem:[%s1016_s1 + $0xa8] sm:$0xff]  ;;  %v34_v21 = vld [vmem:[%s1016_s1 + $0x20] sm:$0xff] }
   0x6   :  { %601 = vmatpush1.bf16.msra.mxu1 %v600_v9  ;;  %v603_v18 = vpack.c.bf16 %v65_v16, %v64_v15  ;;  %572 = vmatprep.subr.bf16.mxu0 %v571_v13  ;;  %v575_v22 = vpack.c.bf16 %v51_v20, %v50_v19  ;;  %v35_v23 = vld [vmem:[%s1016_s1 + $0x28] sm:$0xff]  ;;  %v66_v24 = vld [vmem:[%s1016_s1 + $0x120] sm:$0xff]  ;;  %v52_v26 = vld [vmem:[%s1016_s1 + $0xb0] sm:$0xff] }
   0x7   :  { %602 = vmatprep.subr.bf16.mxu1 %v677_v2  ;;  %v67_v25 = vld [vmem:[%s1016_s1 + $0x128] sm:$0xff]  ;;  %v53_v27 = vld [vmem:[%s1016_s1 + $0xb8] sm:$0xff]  ;;  %v577_v28 = vpack.c.bf16 %v35_v23, %v34_v21  ;;  %v36_v30 = vld [vmem:[%s1016_s1 + $0x30] sm:$0xff] }
   0x8   :  { %v606_v29 = vpack.c.bf16 %v67_v25, %v66_v24  ;;  %v579_v31 = vpack.c.bf16 %v53_v27, %v52_v26  ;;  %v37_v32 = vld [vmem:[%s1016_s1 + $0x38] sm:$0xff]  ;;  %v68_v33 = vld [vmem:[%s1016_s1 + $0x130] sm:$0xff]  ;;  %v54_v35 = vld [vmem:[%s1016_s1 + $0xc0] sm:$0xff] }
   0x9   :  { %574 = vmatpush3.bf16.msra.mxu0 %v573_v17  ;;  %v69_v34 = vld [vmem:[%s1016_s1 + $0x138] sm:$0xff]  ;;  %v55_v36 = vld [vmem:[%s1016_s1 + $0xc8] sm:$0xff]  ;;  %v581_v37 = vpack.c.bf16 %v37_v32, %v36_v30  ;;  %v38_v39 = vld [vmem:[%s1016_s1 + $0x40] sm:$0xff] }
   0xa   :  { %604 = vmatpush1.bf16.msra.mxu1 %v603_v18  ;;  %576 = vmatprep.subr.bf16.mxu0 %v575_v22  ;;  %v609_v38 = vpack.c.bf16 %v69_v34, %v68_v33  ;;  %v583_v40 = vpack.c.bf16 %v55_v36, %v54_v35  ;;  %v39_v41 = vld [vmem:[%s1016_s1 + $0x48] sm:$0xff]  ;;  %v70_v42 = vld [vmem:[%s1016_s1 + $0x140] sm:$0xff]  ;;  %v56_v44 = vld [vmem:[%s1016_s1 + $0xd0] sm:$0xff] }
   0xb   :  { %605 = vmatprep.subr.bf16.mxu1 %v677_v2  ;;  %v71_v43 = vld [vmem:[%s1016_s1 + $0x148] sm:$0xff]  ;;  %v57_v45 = vld [vmem:[%s1016_s1 + $0xd8] sm:$0xff]  ;;  %v585_v46 = vpack.c.bf16 %v39_v41, %v38_v39  ;;  %v40_v48 = vld [vmem:[%s1016_s1 + $0x50] sm:$0xff]  ;;  %v679_v41 = vmov 0.0  }
   0xc   :  { %v612_v47 = vpack.c.bf16 %v71_v43, %v70_v42  ;;  %v41_v49 = vld [vmem:[%s1016_s1 + $0x58] sm:$0xff]  ;;  %v27_v50 = vld [vmem:[%s1017_s0 + $0x8] sm:$0xff]  ;;  %v587_v51 = vpack.c.bf16 %v57_v45, %v56_v44  ;;  %v72_v52 = vld [vmem:[%s1016_s1 + $0x150] sm:$0xff] }
   0xd   :  { %578 = vmatpush3.bf16.msra.mxu0 %v577_v28  ;;  %v73_v53 = vld [vmem:[%s1016_s1 + $0x158] sm:$0xff]  ;;  %v58_v55 = vld [vmem:[%s1016_s1 + $0xe0] sm:$0xff]  ;;  %v59_v56 = vld [vmem:[%s1016_s1 + $0xe8] sm:$0xff]  ;;  %155 = vmatprep.mubr.f32.mxu0 %v27_v50  ;;  %v589_v57 = vpack.c.bf16 %v41_v49, %v40_v48 }
   0xe   :  { %607 = vmatpush1.bf16.msra.mxu1 %v606_v29  ;;  %580 = vmatprep.subr.bf16.mxu0 %v579_v31  ;;  %v29_v54 = vld [vmem:[%s1017_s0 + $0x18] sm:$0xff]  ;;  %v615_v58 = vpack.c.bf16 %v73_v53, %v72_v52  ;;  %v42_v59 = vld [vmem:[%s1016_s1 + $0x60] sm:$0xff]  ;;  %v591_v60 = vpack.c.bf16 %v59_v56, %v58_v55  ;;  %v43_v61 = vld [vmem:[%s1016_s1 + $0x68] sm:$0xff] }
   0xf   :  { %608 = vmatprep.subr.bf16.mxu1 %v677_v2  ;;  %425 = vmatprep.mubr.msk.f32.mxu1 %vm87_vm0, %v29_v54  ;;  %v74_v62 = vld [vmem:[%s1016_s1 + $0x160] sm:$0xff]  ;;  %v75_v63 = vld [vmem:[%s1016_s1 + $0x168] sm:$0xff]  ;;  %v60_v0 = vld [vmem:[%s1016_s1 + $0xf0] sm:$0xff]  ;;  %v593_v3 = vpack.c.bf16 %v43_v61, %v42_v59 }
  0x10   :  { %v61_v1 = vld [vmem:[%s1016_s1 + $0xf8] sm:$0xff]  ;;  %v618_v4 = vpack.c.bf16 %v75_v63, %v74_v62  ;;  %v44_v5 = vld [vmem:[%s1016_s1 + $0x70] sm:$0xff]  ;;  %v78_v12 = vld [vmem:[%s1016_s1 + $0x180] sm:$0xff] }
  0x11   :  { %582 = vmatpush3.bf16.msra.mxu0 %v581_v37  ;;  %v595_v6 = vpack.c.bf16 %v61_v1, %v60_v0  ;;  %v45_v7 = vld [vmem:[%s1016_s1 + $0x78] sm:$0xff]  ;;  %v76_v8 = vld [vmem:[%s1016_s1 + $0x170] sm:$0xff]  ;;  %v79_v13 = vld [vmem:[%s1016_s1 + $0x188] sm:$0xff] }
  0x12   :  { %610 = vmatpush1.bf16.msra.mxu1 %v609_v38  ;;  %584 = vmatprep.subr.bf16.mxu0 %v583_v40  ;;  %v77_v9 = vld [vmem:[%s1016_s1 + $0x178] sm:$0xff]  ;;  %v597_v10 = vpack.c.bf16 %v45_v7, %v44_v5  ;;  %v232_v14 = vld [vmem:[%s1018_s3] sm:$0xff]  ;;  %v233_v15 = vld [vmem:[%s1018_s3 + $0x8] sm:$0xff]  ;;  %v624_v17 = vpack.c.bf16 %v79_v13, %v78_v12 }
  0x13   :  { %611 = vmatprep.subr.bf16.mxu1 %v677_v2  ;;  %v621_v11 = vpack.c.bf16 %v77_v9, %v76_v8  ;;  %v26_v16 = vld [vmem:[%s1017_s0] sm:$0xff]  ;;  %v627_v18 = vpack.c.bf16 %v233_v15, %v232_v14  ;;  %v234_v19 = vld [vmem:[%s1018_s3 + $0x10] sm:$0xff]  ;;  %v235_v20 = vld [vmem:[%s1018_s3 + $0x18] sm:$0xff] }
  0x14   :  { %v28_v21 = vld [vmem:[%s1017_s0 + $0x10] sm:$0xff]  ;;  %v630_v22 = vpack.c.bf16 %v235_v20, %v234_v19  ;;  %v236_v23 = vld [vmem:[%s1018_s3 + $0x20] sm:$0xff]  ;;  %v237_v24 = vld [vmem:[%s1018_s3 + $0x28] sm:$0xff] }
  0x15   :  { %586 = vmatpush3.bf16.msra.mxu0 %v585_v46  ;;  %v633_v25 = vpack.c.bf16 %v237_v24, %v236_v23  ;;  %v238_v26 = vld [vmem:[%s1018_s3 + $0x30] sm:$0xff]  ;;  %v239_v27 = vld [vmem:[%s1018_s3 + $0x38] sm:$0xff]  ;;  %v240_v29 = vld [vmem:[%s1018_s3 + $0x40] sm:$0xff] }
  0x16   :  { %613 = vmatpush1.bf16.msra.mxu1 %v612_v47  ;;  %588 = vmatprep.subr.bf16.mxu0 %v587_v51  ;;  %v636_v28 = vpack.c.bf16 %v239_v27, %v238_v26  ;;  %v241_v30 = vld [vmem:[%s1018_s3 + $0x48] sm:$0xff]  ;;  %v242_v32 = vld [vmem:[%s1018_s3 + $0x50] sm:$0xff]  ;;  %v243_v33 = vld [vmem:[%s1018_s3 + $0x58] sm:$0xff] }
  0x17   :  { %614 = vmatprep.subr.bf16.mxu1 %v677_v2  ;;  %v639_v31 = vpack.c.bf16 %v241_v30, %v240_v29  ;;  %v642_v34 = vpack.c.bf16 %v243_v33, %v242_v32  ;;  %v244_v35 = vld [vmem:[%s1018_s3 + $0x60] sm:$0xff]  ;;  %v245_v36 = vld [vmem:[%s1018_s3 + $0x68] sm:$0xff]  ;;  %v246_v38 = vld [vmem:[%s1018_s3 + $0x70] sm:$0xff] }
  0x18   :  { %v645_v37 = vpack.c.bf16 %v245_v36, %v244_v35  ;;  %v247_v39 = vld [vmem:[%s1018_s3 + $0x78] sm:$0xff]  ;;  %v326_v42 = vld [vmem:[%s1019_s5] sm:$0xff]  ;;  %v327_v43 = vld [vmem:[%s1019_s5 + $0x8] sm:$0xff] }
  0x19   :  { %590 = vmatpush3.bf16.msra.mxu0 %v589_v57  ;;  %v648_v40 = vpack.c.bf16 %v247_v39, %v246_v38  ;;  %v328_v44 = vld [vmem:[%s1019_s5 + $0x10] sm:$0xff]  ;;  %v651_v45 = vpack.c.bf16 %v327_v43, %v326_v42  ;;  %v329_v46 = vld [vmem:[%s1019_s5 + $0x18] sm:$0xff]  ;;  %v330_v48 = vld [vmem:[%s1019_s5 + $0x20] sm:$0xff] }
  0x1a   :  { %616 = vmatpush1.bf16.msra.mxu1 %v615_v58  ;;  %592 = vmatprep.subr.bf16.mxu0 %v591_v60  ;;  %v654_v47 = vpack.c.bf16 %v329_v46, %v328_v44  ;;  %v331_v49 = vld [vmem:[%s1019_s5 + $0x28] sm:$0xff]  ;;  %v332_v51 = vld [vmem:[%s1019_s5 + $0x30] sm:$0xff]  ;;  %v333_v52 = vld [vmem:[%s1019_s5 + $0x38] sm:$0xff] }
  0x1b   :  { %617 = vmatprep.subr.bf16.mxu1 %v677_v2  ;;  %v657_v50 = vpack.c.bf16 %v331_v49, %v330_v48  ;;  %v660_v53 = vpack.c.bf16 %v333_v52, %v332_v51  ;;  %v334_v54 = vld [vmem:[%s1019_s5 + $0x40] sm:$0xff]  ;;  %v335_v55 = vld [vmem:[%s1019_s5 + $0x48] sm:$0xff]  ;;  %v336_v57 = vld [vmem:[%s1019_s5 + $0x50] sm:$0xff] }
  0x1c   :  { %v663_v56 = vpack.c.bf16 %v335_v55, %v334_v54  ;;  %v337_v58 = vld [vmem:[%s1019_s5 + $0x58] sm:$0xff]  ;;  %v338_v60 = vld [vmem:[%s1019_s5 + $0x60] sm:$0xff]  ;;  %v339_v61 = vld [vmem:[%s1019_s5 + $0x68] sm:$0xff] }
  0x1d   :  { %594 = vmatpush3.bf16.msra.mxu0 %v593_v3  ;;  %v666_v59 = vpack.c.bf16 %v337_v58, %v336_v57  ;;  %v669_v62 = vpack.c.bf16 %v339_v61, %v338_v60  ;;  %v424_v1 = vld [vmem:[%s1020_s2] ss:$0 sm:$0xff]  ;;  %v340_v9 = vld [vmem:[%s1019_s5 + $0x70] sm:$0xff] }
  0x1e   :  { %619 = vmatpush1.bf16.msra.mxu1 %v618_v4  ;;  %596 = vmatprep.subr.bf16.mxu0 %v595_v6 }
  0x1f   :  { %620 = vmatprep.subr.bf16.mxu1 %v677_v2 }
  0x21   :  { %598 = vmatpush3.bf16.msra.mxu0 %v597_v10 }
  0x22   :  { %622 = vmatpush1.bf16.msra.mxu1 %v621_v11  ;;  %626 = vmatprep.subr.bf16.mxu0 %v677_v2  ;;  %v426_v11 = vld [vmem:[%s1021_s4] ss:$0 sm:$0xff] }
  0x23   :  { %623 = vmatprep.subr.bf16.mxu1 %v677_v2 }
  0x24   :  { %156 = vmatmul.mubr.f32.vlgmr.msra.gmra.mrb[0].mxu0 %v26_v16  ;;  %v427_v16 = vld [vmem:[%s1022_s6] ss:$0 sm:$0xff] }
  0x25   :  { %628 = vmatpush3.bf16.msra.mxu0 %v627_v18  ;;  %529 = vmatprep.mubr.msk.f32.mxu0 %vm678_vm1, %v679_v41 }
  0x26   :  { %625 = vmatpush1.bf16.msra.mxu1 %v624_v17  ;;  %629 = vmatprep.subr.bf16.mxu0 %v677_v2 }
  0x27   :  { %650 = vmatprep.subr.bf16.mxu1 %v677_v2 }
  0x29   :  { %226 = vmatmul.mubr.f32.vlgmr.msra.gmra.mrb[0].mxu1 %v28_v21  ;;  %631 = vmatpush3.bf16.msra.mxu0 %v630_v22 }
  0x2a   :  { %632 = vmatprep.subr.bf16.mxu0 %v677_v2  ;;  %564 = vmatprep.mubr.msk.f32.mxu1 %vm678_vm1, %v679_v41 }
  0x2b   :  { %652 = vmatpush3.bf16.msra.mxu1 %v651_v45 }
  0x2c   :  { %653 = vmatprep.subr.bf16.mxu1 %v677_v2 }
  0x2d   :  { %634 = vmatpush3.bf16.msra.mxu0 %v633_v25 }
  0x2e   :  { %635 = vmatprep.subr.bf16.mxu0 %v677_v2 }
  0x2f   :  { %655 = vmatpush3.bf16.msra.mxu1 %v654_v47 }
  0x30   :  { %656 = vmatprep.subr.bf16.mxu1 %v677_v2 }
  0x31   :  { %637 = vmatpush3.bf16.msra.mxu0 %v636_v28 }
  0x32   :  { %638 = vmatprep.subr.bf16.mxu0 %v677_v2 }
  0x33   :  { %658 = vmatpush3.bf16.msra.mxu1 %v657_v50 }
  0x34   :  { %659 = vmatprep.subr.bf16.mxu1 %v677_v2 }
  0x35   :  { %640 = vmatpush3.bf16.msra.mxu0 %v639_v31 }
  0x36   :  { %641 = vmatprep.subr.bf16.mxu0 %v677_v2 }
  0x37   :  { %661 = vmatpush3.bf16.msra.mxu1 %v660_v53 }
  0x38   :  { %662 = vmatprep.subr.bf16.mxu1 %v677_v2 }
  0x39   :  { %643 = vmatpush3.bf16.msra.mxu0 %v642_v34 }
  0x3a   :  { %644 = vmatprep.subr.bf16.mxu0 %v677_v2 }
  0x3b   :  { %664 = vmatpush3.bf16.msra.mxu1 %v663_v56 }
  0x3c   :  { %665 = vmatprep.subr.bf16.mxu1 %v677_v2 }
  0x3d   :  { %646 = vmatpush3.bf16.msra.mxu0 %v645_v37 }
  0x3e   :  { %647 = vmatprep.subr.bf16.mxu0 %v677_v2 }
  0x3f   :  { %667 = vmatpush3.bf16.msra.mxu1 %v666_v59 }
  0x40   :  { %668 = vmatprep.subr.bf16.mxu1 %v677_v2 }
  0x41   :  { %649 = vmatpush3.bf16.msra.mxu0 %v648_v40 }
  0x43   :  { %670 = vmatpush3.bf16.msra.mxu1 %v669_v62 }
  0x44   :  { %671 = vmatprep.subr.bf16.mxu1 %v677_v2  ;;  %v341_v2 = vld [vmem:[%s1019_s5 + $0x78] sm:$0xff] }
  0x45   :  { %v672_v10 = vpack.c.bf16 %v341_v2, %v340_v9 }
  0x47   :  { %673 = vmatpush3.bf16.msra.mxu1 %v672_v10 }
  0xf7   :  { %v460_v63 = vpop.f32.mrb[0].mxu0 }
  0xf8   :  { %v461_v0 = vpop.f32.mrb[1].mxu0 }
  0xf9   :  { %v462_v3 = vadd.f32 %v461_v0, %v460_v63 }
  0xfb   :  { %v158_v4 = vadd.f32 %v462_v3, %v424_v1 }
  0xfc   :  { %v227_v5 = vpop.f32.mrb[0].mxu1 }
  0xfd   :  { %v229_v6 = vpop.f32.mrb[1].mxu1  ;;  %v228_v7 = vadd.f32 %v227_v5, %v158_v4 }
  0xff   :  { %v231_v8 = vmax.f32 %v228_v7, 0.0 }
 0x101   :  { %530 = vmatmul.mubr.f32.vlgmr.msra.gmra.mrb[2].mxu0 %v231_v8 }
 0x1d4   :  { %v321_v12 = vpop.f32.mrb[2].mxu0 }
 0x1d5   :  { %v322_v13 = vadd.f32 %v426_v11, %v321_v12  ;;  %v531_v14 = vpop.f32.mrb[3].mxu0 }
 0x1d7   :  { %v325_v15 = vmax.f32 %v322_v13, 0.0 }
 0x1d9   :  { %565 = vmatmul.mubr.f32.vlgmr.msra.gmra.mrb[2].mxu1 %v325_v15 }
 0x2ac   :  { %v415_v17 = vpop.f32.mrb[2].mxu1 }
 0x2ad   :  { %v416_v18 = vadd.f32 %v427_v16, %v415_v17  ;;  %v566_v19 = vpop.f32.mrb[3].mxu1 }
 0x2af   :  { %419 = vst [vmem:[%s1023_s7] sm:$0xff] %v416_v18 }

</bundles_post_ra>
